<compile_context>
chip_gen: v5e
topology: v5e:2x2
jax: 0.10.0
libtpu: 0.0.40
codegen_flags: <defaults>
</compile_context>

<pallas_src>
import math

import numpy as np
import jax
import jax.numpy as jnp
from jax.experimental import pallas as pl
from jax.experimental.pallas import tpu as pltpu

# ------------------------- synthetic model config ---------------------------
PATCH = 16          # spatial patch size (VJEPA uses 16)
TUBELET = 2         # temporal tubelet size (VJEPA uses 2)
HIDDEN = 128        # hidden dim D
HEADS = 4
HEAD_DIM = HIDDEN // HEADS
MLP = 4 * HIDDEN
LAYERS = 2
LN_EPS = 1e-6

IMAGENET_MEAN = np.array([0.485, 0.456, 0.406], np.float32)
IMAGENET_STD = np.array([0.229, 0.224, 0.225], np.float32)


def _vmem_limit_bytes():
    # Per-generation scoped-VMEM budget: ~3/4 of physical VMEM
    # (~96 MiB on v5e/v6e, ~48 MiB on v7x); conservative 32 MiB fallback.
    try:
        info = pltpu.get_tpu_info()
        cap = getattr(info, "vmem_capacity_bytes", None)
        if not cap:
            cap = getattr(info, "vmem_size_bytes", None)
        if cap:
            return int(cap) * 3 // 4
    except Exception:
        pass
    return 32 * 1024 * 1024


VMEM_LIMIT = _vmem_limit_bytes()


# ------------------------------- helpers ------------------------------------
def _layer_norm(x, g, b):
    mu = jnp.mean(x, axis=-1, keepdims=True)
    var = jnp.mean(jnp.square(x - mu), axis=-1, keepdims=True)
    return (x - mu) * jax.lax.rsqrt(var + LN_EPS) * g + b


# ------------------------------- kernels ------------------------------------
def _patch_embed_kernel(x_ref, w_ref, b_ref, o_ref):
    # x: (TM, K) bf16 raw pixel patches (normalization folded into w/b).
    o_ref[...] = (
        jnp.dot(x_ref[...], w_ref[...], preferred_element_type=jnp.float32)
        + b_ref[...]
    )


def _encoder_kernel(x_ref, ln1g_ref, ln1b_ref, wqkv_ref, bqkv_ref, wo_ref,
                    bo_ref, ln2g_ref, ln2b_ref, w1_ref, b1_ref, w2_ref,
                    b2_ref, lnfg_ref, lnfb_ref, o_ref):
    # grid = (batch, layer).  The output block index is constant along the
    # layer axis, so the token block stays resident in VMEM across layers.
    # The tokens HBM buffer is donated (input_output_aliases={0: 0}).
    l = pl.program_id(1)
    last = pl.num_programs(1) - 1

    @pl.when(l == 0)
    def _():
        o_ref[...] = x_ref[...]

    x = o_ref[0]                                               # (N, D) f32

    # --- attention block (pre-LN) ---
    xn = _layer_norm(x, ln1g_ref[0], ln1b_ref[0]).astype(jnp.bfloat16)
    # Single lane-dense QKV projection (N,D)@(D,3D); 1/sqrt(head_dim) is
    # folded into the Q columns of wqkv/bqkv at weight-prep time.
    qkv = jnp.dot(xn, wqkv_ref[0],
                  preferred_element_type=jnp.float32) + bqkv_ref[0]  # (N, 3D)
    ctxs = []
    for h in range(HEADS):
        lo = h * HEAD_DIM
        qh = qkv[:, lo:lo + HEAD_DIM].astype(jnp.bfloat16)
        kh = qkv[:, HIDDEN + lo:HIDDEN + lo + HEAD_DIM].astype(jnp.bfloat16)
        vh = qkv[:, 2 * HIDDEN + lo:2 * HIDDEN + lo + HEAD_DIM].astype(jnp.bfloat16)
        s = jax.lax.dot_general(
            qh, kh, dimension_numbers=(((1,), (1,)), ((), ())),
            preferred_element_type=jnp.float32)                # (N, N)
        s = s - jnp.max(s, axis=-1, keepdims=True)
        p = jnp.exp(s)
        p = p * pl.reciprocal(jnp.sum(p, axis=-1, keepdims=True), approx=True)
        ctxs.append(jnp.dot(p.astype(jnp.bfloat16), vh,
                            preferred_element_type=jnp.float32))   # (N, dh)
    # Concatenate heads -> single lane-dense output projection (N,D)@(D,D).
    ctx = jnp.concatenate(ctxs, axis=-1).astype(jnp.bfloat16)      # (N, D)
    x = x + jnp.dot(ctx, wo_ref[0],
                    preferred_element_type=jnp.float32) + bo_ref[0]

    # --- MLP block (pre-LN) ---
    xn2 = _layer_norm(x, ln2g_ref[0], ln2b_ref[0]).astype(jnp.bfloat16)
    hmid = jnp.dot(xn2, w1_ref[0], preferred_element_type=jnp.float32) + b1_ref[0]
    hmid = jax.nn.gelu(hmid).astype(jnp.bfloat16)
    x = x + jnp.dot(hmid, w2_ref[0], preferred_element_type=jnp.float32) + b2_ref[0]

    @pl.when(l != last)
    def _():
        o_ref[0] = x

    @pl.when(l == last)
    def _():
        # final encoder LayerNorm, applied once on the last layer step (the
        # only store on that step).
        o_ref[0] = _layer_norm(x, lnfg_ref[...], lnfb_ref[...])


def _interp_t_kernel(x_ref, m_ref, o_ref):
    # out (T, F) = Wt (T, tp) @ x (tp, F): the temporal mode product of the
    # separable trilinear upsample.
    o_ref[0] = jnp.dot(m_ref[...], x_ref[0], preferred_element_type=jnp.float32)


def _make_interp_hw_kernel(th, hp):
    def kernel(x_ref, wh_ref, ww_ref, o_ref):
        # Fused h+w interpolation for one (frame, h-out tile): no y_h HBM
        # intermediate.  x: (1, hp, wp, D); wh: (th, hp); ww: (W, wp);
        # o: (1, th, W, D).
        x = x_ref[0]                                        # (hp, wp, D)
        ww = ww_ref[...]                                    # (W, wp)
        whm = wh_ref[...]                                   # (th, hp)
        for i in range(th):                                 # static unroll
            row = whm[i, 0] * x[0]                          # (wp, D)
            for k in range(1, hp):
                row = row + whm[i, k] * x[k]
            o_ref[0, i] = jnp.dot(ww, row, preferred_element_type=jnp.float32)
    return kernel


# ----------------------------- pallas wrappers ------------------------------
def _pick_row_tile(rows):
    for t in (512, 256, 128, 64, 32, 16, 8):
        if t <= rows and rows % t == 0:
            return t
    return rows


def patch_embed(x_patches, w, b):
    rows, k = x_patches.shape
    d = w.shape[1]
    tm = _pick_row_tile(rows)
    return pl.pallas_call(
        _patch_embed_kernel,
        out_shape=jax.ShapeDtypeStruct((rows, d), jnp.float32),
        grid=(rows // tm,),
        in_specs=[
            pl.BlockSpec((tm, k), lambda i: (i, 0)),
            pl.BlockSpec((k, d), lambda i: (0, 0)),
            pl.BlockSpec((1, d), lambda i: (0, 0)),
        ],
        out_specs=pl.BlockSpec((tm, d), lambda i: (i, 0)),
        compiler_params=pltpu.CompilerParams(
            dimension_semantics=("parallel",),
            vmem_limit_bytes=VMEM_LIMIT),
    )(x_patches, w, b)


def encoder_forward(tokens, s, lnf_g, lnf_b):
    b, n, d = tokens.shape
    n_layers = s["wqkv"].shape[0]

    def tok_map(bi, li):
        return (bi, 0, 0)

    def wmap3(bi, li):
        return (li, 0, 0)

    def const2(bi, li):
        return (0, 0)

    in_specs = [
        pl.BlockSpec((1, n, d), tok_map),                        # tokens
        pl.BlockSpec((1, 1, d), wmap3),                          # ln1_g
        pl.BlockSpec((1, 1, d), wmap3),                          # ln1_b
        pl.BlockSpec((1, d, 3 * d), wmap3),                      # wqkv (lane-dense)
        pl.BlockSpec((1, 1, 3 * d), wmap3),                      # bqkv
        pl.BlockSpec((1, d, d), wmap3),                          # wo (lane-dense)
        pl.BlockSpec((1, 1, d), wmap3),                          # bo
        pl.BlockSpec((1, 1, d), wmap3),                          # ln2_g
        pl.BlockSpec((1, 1, d), wmap3),                          # ln2_b
        pl.BlockSpec((1, d, MLP), wmap3),                        # w1
        pl.BlockSpec((1, 1, MLP), wmap3),                        # b1
        pl.BlockSpec((1, MLP, d), wmap3),                        # w2
        pl.BlockSpec((1, 1, d), wmap3),                          # b2
        pl.BlockSpec((1, d), const2),                            # lnf_g
        pl.BlockSpec((1, d), const2),                            # lnf_b
    ]
    return pl.pallas_call(
        _encoder_kernel,
        out_shape=jax.ShapeDtypeStruct((b, n, d), jnp.float32),
        grid=(b, n_layers),
        in_specs=in_specs,
        out_specs=pl.BlockSpec((1, n, d), tok_map),
        input_output_aliases={0: 0},                             # donate tokens
        compiler_params=pltpu.CompilerParams(
            dimension_semantics=("parallel", "arbitrary"),
            vmem_limit_bytes=VMEM_LIMIT),
    )(tokens, s["ln1_g"], s["ln1_b"], s["wqkv"], s["bqkv"], s["wo"], s["bo"],
      s["ln2_g"], s["ln2_b"], s["w1"], s["b1"], s["w2"], s["b2"], lnf_g, lnf_b)


def interp_t(x, m):
    """Apply Wt (T, tp) along axis 1 of x (B, tp, F)."""
    g, a_in, f = x.shape
    a_out = m.shape[0]
    return pl.pallas_call(
        _interp_t_kernel,
        out_shape=jax.ShapeDtypeStruct((g, a_out, f), jnp.float32),
        grid=(g,),
        in_specs=[
            pl.BlockSpec((1, a_in, f), lambda i: (i, 0, 0)),
            pl.BlockSpec((a_out, a_in), lambda i: (0, 0)),
        ],
        out_specs=pl.BlockSpec((1, a_out, f), lambda i: (i, 0, 0)),
        compiler_params=pltpu.CompilerParams(
            dimension_semantics=("parallel",),
            vmem_limit_bytes=VMEM_LIMIT),
    )(x, m)


def interp_hw(x, wh, ww, th=8):
    """Fused h+w interpolation: x (G, hp, wp, D) -> (G, H, W, D)."""
    g, hp_, wp_, d = x.shape
    h_out = wh.shape[0]
    w_out = ww.shape[0]
    th = th if h_out % th == 0 else h_out
    return pl.pallas_call(
        _make_interp_hw_kernel(th, hp_),
        out_shape=jax.ShapeDtypeStruct((g, h_out, w_out, d), jnp.float32),
        grid=(g, h_out // th),
        in_specs=[
            pl.BlockSpec((1, hp_, wp_, d), lambda i, j: (i, 0, 0, 0)),
            pl.BlockSpec((th, hp_), lambda i, j: (j, 0)),
            pl.BlockSpec((w_out, wp_), lambda i, j: (0, 0)),
        ],
        out_specs=pl.BlockSpec((1, th, w_out, d), lambda i, j: (i, j, 0, 0)),
        compiler_params=pltpu.CompilerParams(
            dimension_semantics=("parallel", "parallel"),
            vmem_limit_bytes=VMEM_LIMIT),
    )(x, wh, ww)


# ------------------------------- glue / math --------------------------------
def _linear_interp_matrix(out_size, in_size):
    """1-D linear interpolation matrix, PyTorch align_corners=False semantics."""
    w = np.zeros((out_size, in_size), np.float32)
    scale = in_size / out_size
    for o in range(out_size):
        src = (o + 0.5) * scale - 0.5
        if src < 0.0:
            src = 0.0
        i0 = min(int(np.floor(src)), in_size - 1)
        i1 = min(i0 + 1, in_size - 1)
        lam1 = min(max(src - i0, 0.0), 1.0)
        w[o, i0] += 1.0 - lam1
        w[o, i1] += lam1
    return w


def init_params(key):
    k_in = 3 * TUBELET * PATCH * PATCH
    keys = jax.random.split(key, 1 + LAYERS)
    params = {
        "patch_w": jax.random.normal(keys[0], (k_in, HIDDEN), jnp.float32) * 0.02,
        "patch_b": jnp.zeros((1, HIDDEN), jnp.float32),
        "lnf_g": jnp.ones((1, HIDDEN), jnp.float32),
        "lnf_b": jnp.zeros((1, HIDDEN), jnp.float32),
        "layers": [],
    }
    for l in range(LAYERS):
        lk = jax.random.split(keys[1 + l], 4)
        params["layers"].append((
            jnp.ones((1, HIDDEN), jnp.float32),                                  # ln1 gamma
            jnp.zeros((1, HIDDEN), jnp.float32),                                 # ln1 beta
            jax.random.normal(lk[0], (HIDDEN, 3 * HIDDEN), jnp.float32) * 0.02,  # Wqkv
            jnp.zeros((1, 3 * HIDDEN), jnp.float32),                             # bqkv
            jax.random.normal(lk[1], (HIDDEN, HIDDEN), jnp.float32) * 0.02,      # Wo
            jnp.zeros((1, HIDDEN), jnp.float32),                                 # bo
            jnp.ones((1, HIDDEN), jnp.float32),                                  # ln2 gamma
            jnp.zeros((1, HIDDEN), jnp.float32),                                 # ln2 beta
            jax.random.normal(lk[2], (HIDDEN, MLP), jnp.float32) * 0.02,         # W1
            jnp.zeros((1, MLP), jnp.float32),                                    # b1
            jax.random.normal(lk[3], (MLP, HIDDEN), jnp.float32) * 0.02,         # W2
            jnp.zeros((1, HIDDEN), jnp.float32),                                 # b2
        ))
    return params


def stack_layer_params(layers):
    """Stack per-layer params on a leading layer axis, keep QKV/Wo lane-dense,
    fold the softmax scale into the Q columns, cast matmul weights to bf16."""
    def stack(idx):
        return jnp.stack([lp[idx] for lp in layers], axis=0)

    ln1_g, ln1_b = stack(0), stack(1)
    wqkv, bqkv = stack(2), stack(3)                     # (L, D, 3D), (L, 1, 3D)
    wo, bo = stack(4), stack(5)                         # (L, D, D), (L, 1, D)
    ln2_g, ln2_b = stack(6), stack(7)
    w1, b1 = stack(8), stack(9)
    w2, b2 = stack(10), stack(11)

    scale = 1.0 / math.sqrt(HEAD_DIM)
    col_scale = jnp.concatenate([
        jnp.full((HIDDEN,), scale, jnp.float32),
        jnp.ones((2 * HIDDEN,), jnp.float32)], axis=0)
    wqkv = wqkv * col_scale[None, None, :]
    bqkv = bqkv * col_scale[None, None, :]

    return dict(
        ln1_g=ln1_g, ln1_b=ln1_b,
        wqkv=wqkv.astype(jnp.bfloat16), bqkv=bqkv,
        wo=wo.astype(jnp.bfloat16), bo=bo,
        ln2_g=ln2_g, ln2_b=ln2_b,
        w1=w1.astype(jnp.bfloat16), b1=b1,
        w2=w2.astype(jnp.bfloat16), b2=b2,
    )


def vjepa_feature_extractor(raw_video, params, height, width):
    """Forward pass. raw_video: (B, T, C, H, W) float32 pixels in [0, 255]."""
    B, T, C, H, W = raw_video.shape
    assert (H, W) == (height, width) and C == 3
    assert T % TUBELET == 0 and H % PATCH == 0 and W % PATCH == 0
    tp, hp, wp = T // TUBELET, H // PATCH, W // PATCH
    n_tokens = tp * hp * wp
    k_in = C * TUBELET * PATCH * PATCH

    # im2col tubelet patches (glue): cast to bf16 BEFORE the relayout so the
    # transpose moves half the bytes. Token order (t, h, w); column order
    # (c, kt, kh, kw), matching a Conv3d(D, C, 2, 16, 16) weight flatten.
    xr = raw_video.astype(jnp.bfloat16)
    xp = xr.reshape(B, tp, TUBELET, C, hp, PATCH, wp, PATCH)
    xp = xp.transpose(0, 1, 4, 6, 3, 2, 5, 7).reshape(B * n_tokens, k_in)

    # processor normalization (x/255, (x-mean)/std) folded into patch weights.
    rep = TUBELET * PATCH * PATCH
    col_scale = jnp.repeat(jnp.asarray(1.0 / (255.0 * IMAGENET_STD)), rep)
    col_shift = jnp.repeat(jnp.asarray(-IMAGENET_MEAN / IMAGENET_STD), rep)
    w_eff = (params["patch_w"] * col_scale[:, None]).astype(jnp.bfloat16)
    b_eff = params["patch_b"] + (col_shift @ params["patch_w"])[None, :]

    tokens = patch_embed(xp, w_eff, b_eff)              # (B*N, D) f32
    tokens = tokens.reshape(B, n_tokens, HIDDEN)

    # fused transformer stack (+ final LN on the last layer step)
    stacked = stack_layer_params(params["layers"])
    tokens = encoder_forward(tokens, stacked, params["lnf_g"], params["lnf_b"])

    # separable trilinear upsample (align_corners=False): t-mode matmul, then
    # a fused h+w kernel (no y_h HBM intermediate).
    wt = jnp.asarray(_linear_interp_matrix(T, tp))
    wh = jnp.asarray(_linear_interp_matrix(H, hp))
    ww = jnp.asarray(_linear_interp_matrix(W, wp))

    x_t = tokens.reshape(B, tp, hp * wp * HIDDEN)
    y_t = interp_t(x_t, wt)                             # (B, T, hp*wp*D)
    x_hw = y_t.reshape(B * T, hp, wp, HIDDEN)
    y = interp_hw(x_hw, wh, ww)                         # (B*T, H, W, D)

    return y.reshape(B, T, H, W, HIDDEN).astype(jnp.float32)


# --------------------------------- main --------------------------------------
if __name__ == "__main__":
    key = jax.random.PRNGKey(0)
    pkey, xkey = jax.random.split(key)

    B, T, C, HEIGHT, WIDTH = 2, 4, 3, 32, 32
    raw_video = jax.random.uniform(
        xkey, (B, T, C, HEIGHT, WIDTH), jnp.float32, minval=0.0, maxval=255.0)

    params = init_params(pkey)
    fwd = jax.jit(vjepa_feature_extractor, static_argnums=(2, 3))
    out = jax.block_until_ready(fwd(raw_video, params, HEIGHT, WIDTH))

    assert out.shape == (B, T, HEIGHT, WIDTH, HIDDEN), out.shape
    assert out.dtype == jnp.float32
    assert bool(jnp.all(jnp.isfinite(out)))
    print("KERNEL_OK")
</pallas_src>

<mosaic_0001>
module attributes {stable_mosaic.version = 11 : i64} {
  func.func @_patch_embed_kernel(%arg0: i32, %arg1: memref<16x1536xbf16, #tpu.memory_space<vmem>>, %arg2: memref<1536x128xbf16, #tpu.memory_space<vmem>>, %arg3: memref<1x128xf32, #tpu.memory_space<vmem>>, %arg4: memref<16x128xf32, #tpu.memory_space<vmem>>) attributes {dimension_semantics = [#tpu.dimension_semantics<parallel>], iteration_bounds = array<i64: 1>, scalar_prefetch = 0 : i64, scratch_operands = 0 : i64, tpu.core_type = #tpu.core_type<tc>, window_params = [{transform_indices = @transform_0, window_bounds = array<i64: 16, 1536>}, {pipeline_mode = #tpu.pipeline_mode<synchronous>, transform_indices = @transform_1, window_bounds = array<i64: 1536, 128>}, {pipeline_mode = #tpu.pipeline_mode<synchronous>, transform_indices = @transform_2, window_bounds = array<i64: 1, 128>}, {transform_indices = @transform_3, window_bounds = array<i64: 16, 128>}]} {
    %c0 = arith.constant 0 : index
    %c0_0 = arith.constant 0 : index
    %0 = vector.load %arg1[%c0, %c0_0] : memref<16x1536xbf16, #tpu.memory_space<vmem>>, vector<16x1536xbf16>
    %c0_1 = arith.constant 0 : index
    %c0_2 = arith.constant 0 : index
    %1 = vector.load %arg2[%c0_1, %c0_2] : memref<1536x128xbf16, #tpu.memory_space<vmem>>, vector<1536x128xbf16>
    %cst = arith.constant dense<0.000000e+00> : vector<16x128xf32>
    %2 = tpu.matmul %0, %1, %cst {dimension_numbers = #tpu.dot_dimension_numbers<[1], [0], [0], [1], [0, 0, 1, 1], [], []>} : vector<16x1536xbf16>, vector<1536x128xbf16>, vector<16x128xf32> -> vector<16x128xf32>
    %c0_3 = arith.constant 0 : index
    %c0_4 = arith.constant 0 : index
    %3 = vector.load %arg3[%c0_3, %c0_4] : memref<1x128xf32, #tpu.memory_space<vmem>>, vector<1x128xf32>
    %4 = vector.broadcast %3 : vector<1x128xf32> to vector<16x128xf32>
    %5 = arith.addf %2, %4 : vector<16x128xf32>
    %c0_5 = arith.constant 0 : index
    %c0_6 = arith.constant 0 : index
    %6 = vector.load %arg4[%c0_5, %c0_6] : memref<16x128xf32, #tpu.memory_space<vmem>>, vector<16x128xf32>
    tpu.vector_store %arg4[%c0_5, %c0_6], %5 {strides = array<i32>} : memref<16x128xf32, #tpu.memory_space<vmem>>, vector<16x128xf32>,
    return
  }
  func.func @transform_0(%arg0: i32) -> (i32, i32) {
    %c0_i32 = arith.constant 0 : i32
    %c0_i32_0 = arith.constant 0 : i32
    return %arg0, %c0_i32 : i32, i32
  }
  func.func @transform_1(%arg0: i32) -> (i32, i32) {
    %c0_i32 = arith.constant 0 : i32
    %c0_i32_0 = arith.constant 0 : i32
    %c0_i32_1 = arith.constant 0 : i32
    return %c0_i32, %c0_i32_0 : i32, i32
  }
  func.func @transform_2(%arg0: i32) -> (i32, i32) {
    %c0_i32 = arith.constant 0 : i32
    %c0_i32_0 = arith.constant 0 : i32
    %c0_i32_1 = arith.constant 0 : i32
    return %c0_i32, %c0_i32_0 : i32, i32
  }
  func.func @transform_3(%arg0: i32) -> (i32, i32) {
    %c0_i32 = arith.constant 0 : i32
    %c0_i32_0 = arith.constant 0 : i32
    return %arg0, %c0_i32 : i32, i32
  }
}

module attributes {stable_mosaic.version = 11 : i64} {
  func.func @_encoder_kernel(%arg0: i32, %arg1: i32, %arg2: memref<1x8x128xf32, #tpu.memory_space<vmem>>, %arg3: memref<1x1x128xf32, #tpu.memory_space<vmem>>, %arg4: memref<1x1x128xf32, #tpu.memory_space<vmem>>, %arg5: memref<1x128x384xbf16, #tpu.memory_space<vmem>>, %arg6: memref<1x1x384xf32, #tpu.memory_space<vmem>>, %arg7: memref<1x128x128xbf16, #tpu.memory_space<vmem>>, %arg8: memref<1x1x128xf32, #tpu.memory_space<vmem>>, %arg9: memref<1x1x128xf32, #tpu.memory_space<vmem>>, %arg10: memref<1x1x128xf32, #tpu.memory_space<vmem>>, %arg11: memref<1x128x512xbf16, #tpu.memory_space<vmem>>, %arg12: memref<1x1x512xf32, #tpu.memory_space<vmem>>, %arg13: memref<1x512x128xbf16, #tpu.memory_space<vmem>>, %arg14: memref<1x1x128xf32, #tpu.memory_space<vmem>>, %arg15: memref<1x128xf32, #tpu.memory_space<vmem>>, %arg16: memref<1x128xf32, #tpu.memory_space<vmem>>, %arg17: memref<1x8x128xf32, #tpu.memory_space<vmem>>) attributes {dimension_semantics = [#tpu.dimension_semantics<parallel>, #tpu.dimension_semantics<arbitrary>], iteration_bounds = array<i64: 2, 2>, scalar_prefetch = 0 : i64, scratch_operands = 0 : i64, tpu.core_type = #tpu.core_type<tc>, window_params = [{transform_indices = @transform_0, window_bounds = array<i64: 1, 8, 128>}, {transform_indices = @transform_1, window_bounds = array<i64: 1, 1, 128>}, {transform_indices = @transform_2, window_bounds = array<i64: 1, 1, 128>}, {transform_indices = @transform_3, window_bounds = array<i64: 1, 128, 384>}, {transform_indices = @transform_4, window_bounds = array<i64: 1, 1, 384>}, {transform_indices = @transform_5, window_bounds = array<i64: 1, 128, 128>}, {transform_indices = @transform_6, window_bounds = array<i64: 1, 1, 128>}, {transform_indices = @transform_7, window_bounds = array<i64: 1, 1, 128>}, {transform_indices = @transform_8, window_bounds = array<i64: 1, 1, 128>}, {transform_indices = @transform_9, window_bounds = array<i64: 1, 128, 512>}, {transform_indices = @transform_10, window_bounds = array<i64: 1, 1, 512>}, {transform_indices = @transform_11, window_bounds = array<i64: 1, 512, 128>}, {transform_indices = @transform_12, window_bounds = array<i64: 1, 1, 128>}, {pipeline_mode = #tpu.pipeline_mode<synchronous>, transform_indices = @transform_13, window_bounds = array<i64: 1, 128>}, {pipeline_mode = #tpu.pipeline_mode<synchronous>, transform_indices = @transform_14, window_bounds = array<i64: 1, 128>}, {transform_indices = @transform_15, window_bounds = array<i64: 1, 8, 128>}]} {
    %c0_i32 = arith.constant 0 : i32
    %0 = arith.cmpi eq, %arg1, %c0_i32 : i32
    %1 = arith.extui %0 : i1 to i32
    %c0_i32_0 = arith.constant 0 : i32
    %2 = arith.cmpi ne, %1, %c0_i32_0 : i32
    scf.if %2 {
      %c0_75 = arith.constant 0 : index
      %c0_76 = arith.constant 0 : index
      %c0_77 = arith.constant 0 : index
      %187 = vector.load %arg2[%c0_75, %c0_76, %c0_77] : memref<1x8x128xf32, #tpu.memory_space<vmem>>, vector<1x8x128xf32>
      %c0_78 = arith.constant 0 : index
      %c0_79 = arith.constant 0 : index
      %c0_80 = arith.constant 0 : index
      %188 = vector.load %arg17[%c0_78, %c0_79, %c0_80] : memref<1x8x128xf32, #tpu.memory_space<vmem>>, vector<1x8x128xf32>
      tpu.vector_store %arg17[%c0_78, %c0_79, %c0_80], %187 {strides = array<i32>} : memref<1x8x128xf32, #tpu.memory_space<vmem>>, vector<1x8x128xf32>,
    } else {
    }
    %c0 = arith.constant 0 : index
    %c0_1 = arith.constant 0 : index
    %c0_2 = arith.constant 0 : index
    %3 = vector.load %arg17[%c0, %c0_1, %c0_2] : memref<1x8x128xf32, #tpu.memory_space<vmem>>, vector<1x8x128xf32>
    %4 = vector.shape_cast %3 : vector<1x8x128xf32> to vector<8x128xf32>
    %c0_3 = arith.constant 0 : index
    %c0_4 = arith.constant 0 : index
    %c0_5 = arith.constant 0 : index
    %5 = vector.load %arg3[%c0_3, %c0_4, %c0_5] : memref<1x1x128xf32, #tpu.memory_space<vmem>>, vector<1x1x128xf32>
    %6 = vector.shape_cast %5 : vector<1x1x128xf32> to vector<1x128xf32>
    %c0_6 = arith.constant 0 : index
    %c0_7 = arith.constant 0 : index
    %c0_8 = arith.constant 0 : index
    %7 = vector.load %arg4[%c0_6, %c0_7, %c0_8] : memref<1x1x128xf32, #tpu.memory_space<vmem>>, vector<1x1x128xf32>
    %8 = vector.shape_cast %7 : vector<1x1x128xf32> to vector<1x128xf32>
    %cst = arith.constant dense<0.000000e+00> : vector<8xf32>
    %9 = vector.multi_reduction <add>, %4, %cst [1] : vector<8x128xf32> to vector<8xf32>
    %10 = vector.shape_cast %9 : vector<8xf32> to vector<8x1xf32>
    %cst_9 = arith.constant 1.280000e+02 : f32
    %11 = vector.broadcast %cst_9 : f32 to vector<8x1xf32>
    %12 = arith.divf %10, %11 : vector<8x1xf32>
    %13 = vector.broadcast %12 : vector<8x1xf32> to vector<8x128xf32>
    %14 = arith.subf %4, %13 : vector<8x128xf32>
    %15 = arith.mulf %14, %14 : vector<8x128xf32>
    %cst_10 = arith.constant dense<0.000000e+00> : vector<8xf32>
    %16 = vector.multi_reduction <add>, %15, %cst_10 [1] : vector<8x128xf32> to vector<8xf32>
    %17 = vector.shape_cast %16 : vector<8xf32> to vector<8x1xf32>
    %cst_11 = arith.constant 1.280000e+02 : f32
    %18 = vector.broadcast %cst_11 : f32 to vector<8x1xf32>
    %19 = arith.divf %17, %18 : vector<8x1xf32>
    %20 = vector.broadcast %12 : vector<8x1xf32> to vector<8x128xf32>
    %21 = arith.subf %4, %20 : vector<8x128xf32>
    %cst_12 = arith.constant 9.99999997E-7 : f32
    %22 = vector.broadcast %cst_12 : f32 to vector<8x1xf32>
    %23 = arith.addf %19, %22 : vector<8x1xf32>
    %24 = math.rsqrt %23 : vector<8x1xf32>
    %25 = vector.broadcast %24 : vector<8x1xf32> to vector<8x128xf32>
    %26 = arith.mulf %21, %25 : vector<8x128xf32>
    %27 = vector.broadcast %6 : vector<1x128xf32> to vector<8x128xf32>
    %28 = arith.mulf %26, %27 : vector<8x128xf32>
    %29 = vector.broadcast %8 : vector<1x128xf32> to vector<8x128xf32>
    %30 = arith.addf %28, %29 : vector<8x128xf32>
    %31 = arith.truncf %30 : vector<8x128xf32> to vector<8x128xbf16>
    %c0_13 = arith.constant 0 : index
    %c0_14 = arith.constant 0 : index
    %c0_15 = arith.constant 0 : index
    %32 = vector.load %arg5[%c0_13, %c0_14, %c0_15] : memref<1x128x384xbf16, #tpu.memory_space<vmem>>, vector<1x128x384xbf16>
    %33 = vector.shape_cast %32 : vector<1x128x384xbf16> to vector<128x384xbf16>
    %cst_16 = arith.constant dense<0.000000e+00> : vector<8x384xf32>
    %34 = tpu.matmul %31, %33, %cst_16 {dimension_numbers = #tpu.dot_dimension_numbers<[1], [0], [0], [1], [0, 0, 1, 1], [], []>} : vector<8x128xbf16>, vector<128x384xbf16>, vector<8x384xf32> -> vector<8x384xf32>
    %c0_17 = arith.constant 0 : index
    %c0_18 = arith.constant 0 : index
    %c0_19 = arith.constant 0 : index
    %35 = vector.load %arg6[%c0_17, %c0_18, %c0_19] : memref<1x1x384xf32, #tpu.memory_space<vmem>>, vector<1x1x384xf32>
    %36 = vector.shape_cast %35 : vector<1x1x384xf32> to vector<1x384xf32>
    %37 = vector.broadcast %36 : vector<1x384xf32> to vector<8x384xf32>
    %38 = arith.addf %34, %37 : vector<8x384xf32>
    %39 = vector.extract_strided_slice %38 {offsets = [0, 0], sizes = [8, 32], strides = [1, 1]} : vector<8x384xf32> to vector<8x32xf32>
    %40 = arith.truncf %39 : vector<8x32xf32> to vector<8x32xbf16>
    %41 = vector.extract_strided_slice %38 {offsets = [0, 128], sizes = [8, 32], strides = [1, 1]} : vector<8x384xf32> to vector<8x32xf32>
    %42 = arith.truncf %41 : vector<8x32xf32> to vector<8x32xbf16>
    %43 = vector.extract_strided_slice %38 {offsets = [0, 256], sizes = [8, 32], strides = [1, 1]} : vector<8x384xf32> to vector<8x32xf32>
    %44 = arith.truncf %43 : vector<8x32xf32> to vector<8x32xbf16>
    %cst_20 = arith.constant dense<0.000000e+00> : vector<8x8xf32>
    %45 = tpu.matmul %40, %42, %cst_20 {dimension_numbers = #tpu.dot_dimension_numbers<[1], [1], [0], [0], [0, 0, 1, 0], [], []>} : vector<8x32xbf16>, vector<8x32xbf16>, vector<8x8xf32> -> vector<8x8xf32>
    %cst_21 = arith.constant dense<0xFF800000> : vector<8xf32>
    %46 = vector.multi_reduction <maximumf>, %45, %cst_21 [1] : vector<8x8xf32> to vector<8xf32>
    %47 = vector.shape_cast %46 : vector<8xf32> to vector<8x1xf32>
    %48 = vector.broadcast %47 : vector<8x1xf32> to vector<8x8xf32>
    %49 = arith.subf %45, %48 : vector<8x8xf32>
    %50 = math.exp %49 : vector<8x8xf32>
    %cst_22 = arith.constant dense<0.000000e+00> : vector<8xf32>
    %51 = vector.multi_reduction <add>, %50, %cst_22 [1] : vector<8x8xf32> to vector<8xf32>
    %52 = vector.shape_cast %51 : vector<8xf32> to vector<8x1xf32>
    %53 = tpu.reciprocal %52 {approx = true} : vector<8x1xf32> -> vector<8x1xf32>
    %54 = vector.broadcast %53 : vector<8x1xf32> to vector<8x8xf32>
    %55 = arith.mulf %50, %54 : vector<8x8xf32>
    %56 = arith.truncf %55 : vector<8x8xf32> to vector<8x8xbf16>
    %cst_23 = arith.constant dense<0.000000e+00> : vector<8x32xf32>
    %57 = tpu.matmul %56, %44, %cst_23 {dimension_numbers = #tpu.dot_dimension_numbers<[1], [0], [0], [1], [0, 0, 1, 1], [], []>} : vector<8x8xbf16>, vector<8x32xbf16>, vector<8x32xf32> -> vector<8x32xf32>
    %58 = vector.extract_strided_slice %38 {offsets = [0, 32], sizes = [8, 32], strides = [1, 1]} : vector<8x384xf32> to vector<8x32xf32>
    %59 = arith.truncf %58 : vector<8x32xf32> to vector<8x32xbf16>
    %60 = vector.extract_strided_slice %38 {offsets = [0, 160], sizes = [8, 32], strides = [1, 1]} : vector<8x384xf32> to vector<8x32xf32>
    %61 = arith.truncf %60 : vector<8x32xf32> to vector<8x32xbf16>
    %62 = vector.extract_strided_slice %38 {offsets = [0, 288], sizes = [8, 32], strides = [1, 1]} : vector<8x384xf32> to vector<8x32xf32>
    %63 = arith.truncf %62 : vector<8x32xf32> to vector<8x32xbf16>
    %cst_24 = arith.constant dense<0.000000e+00> : vector<8x8xf32>
    %64 = tpu.matmul %59, %61, %cst_24 {dimension_numbers = #tpu.dot_dimension_numbers<[1], [1], [0], [0], [0, 0, 1, 0], [], []>} : vector<8x32xbf16>, vector<8x32xbf16>, vector<8x8xf32> -> vector<8x8xf32>
    %cst_25 = arith.constant dense<0xFF800000> : vector<8xf32>
    %65 = vector.multi_reduction <maximumf>, %64, %cst_25 [1] : vector<8x8xf32> to vector<8xf32>
    %66 = vector.shape_cast %65 : vector<8xf32> to vector<8x1xf32>
    %67 = vector.broadcast %66 : vector<8x1xf32> to vector<8x8xf32>
    %68 = arith.subf %64, %67 : vector<8x8xf32>
    %69 = math.exp %68 : vector<8x8xf32>
    %cst_26 = arith.constant dense<0.000000e+00> : vector<8xf32>
    %70 = vector.multi_reduction <add>, %69, %cst_26 [1] : vector<8x8xf32> to vector<8xf32>
    %71 = vector.shape_cast %70 : vector<8xf32> to vector<8x1xf32>
    %72 = tpu.reciprocal %71 {approx = true} : vector<8x1xf32> -> vector<8x1xf32>
    %73 = vector.broadcast %72 : vector<8x1xf32> to vector<8x8xf32>
    %74 = arith.mulf %69, %73 : vector<8x8xf32>
    %75 = arith.truncf %74 : vector<8x8xf32> to vector<8x8xbf16>
    %cst_27 = arith.constant dense<0.000000e+00> : vector<8x32xf32>
    %76 = tpu.matmul %75, %63, %cst_27 {dimension_numbers = #tpu.dot_dimension_numbers<[1], [0], [0], [1], [0, 0, 1, 1], [], []>} : vector<8x8xbf16>, vector<8x32xbf16>, vector<8x32xf32> -> vector<8x32xf32>
    %77 = vector.extract_strided_slice %38 {offsets = [0, 64], sizes = [8, 32], strides = [1, 1]} : vector<8x384xf32> to vector<8x32xf32>
    %78 = arith.truncf %77 : vector<8x32xf32> to vector<8x32xbf16>
    %79 = vector.extract_strided_slice %38 {offsets = [0, 192], sizes = [8, 32], strides = [1, 1]} : vector<8x384xf32> to vector<8x32xf32>
    %80 = arith.truncf %79 : vector<8x32xf32> to vector<8x32xbf16>
    %81 = vector.extract_strided_slice %38 {offsets = [0, 320], sizes = [8, 32], strides = [1, 1]} : vector<8x384xf32> to vector<8x32xf32>
    %82 = arith.truncf %81 : vector<8x32xf32> to vector<8x32xbf16>
    %cst_28 = arith.constant dense<0.000000e+00> : vector<8x8xf32>
    %83 = tpu.matmul %78, %80, %cst_28 {dimension_numbers = #tpu.dot_dimension_numbers<[1], [1], [0], [0], [0, 0, 1, 0], [], []>} : vector<8x32xbf16>, vector<8x32xbf16>, vector<8x8xf32> -> vector<8x8xf32>
    %cst_29 = arith.constant dense<0xFF800000> : vector<8xf32>
    %84 = vector.multi_reduction <maximumf>, %83, %cst_29 [1] : vector<8x8xf32> to vector<8xf32>
    %85 = vector.shape_cast %84 : vector<8xf32> to vector<8x1xf32>
    %86 = vector.broadcast %85 : vector<8x1xf32> to vector<8x8xf32>
    %87 = arith.subf %83, %86 : vector<8x8xf32>
    %88 = math.exp %87 : vector<8x8xf32>
    %cst_30 = arith.constant dense<0.000000e+00> : vector<8xf32>
    %89 = vector.multi_reduction <add>, %88, %cst_30 [1] : vector<8x8xf32> to vector<8xf32>
    %90 = vector.shape_cast %89 : vector<8xf32> to vector<8x1xf32>
    %91 = tpu.reciprocal %90 {approx = true} : vector<8x1xf32> -> vector<8x1xf32>
    %92 = vector.broadcast %91 : vector<8x1xf32> to vector<8x8xf32>
    %93 = arith.mulf %88, %92 : vector<8x8xf32>
    %94 = arith.truncf %93 : vector<8x8xf32> to vector<8x8xbf16>
    %cst_31 = arith.constant dense<0.000000e+00> : vector<8x32xf32>
    %95 = tpu.matmul %94, %82, %cst_31 {dimension_numbers = #tpu.dot_dimension_numbers<[1], [0], [0], [1], [0, 0, 1, 1], [], []>} : vector<8x8xbf16>, vector<8x32xbf16>, vector<8x32xf32> -> vector<8x32xf32>
    %96 = vector.extract_strided_slice %38 {offsets = [0, 96], sizes = [8, 32], strides = [1, 1]} : vector<8x384xf32> to vector<8x32xf32>
    %97 = arith.truncf %96 : vector<8x32xf32> to vector<8x32xbf16>
    %98 = vector.extract_strided_slice %38 {offsets = [0, 224], sizes = [8, 32], strides = [1, 1]} : vector<8x384xf32> to vector<8x32xf32>
    %99 = arith.truncf %98 : vector<8x32xf32> to vector<8x32xbf16>
    %100 = vector.extract_strided_slice %38 {offsets = [0, 352], sizes = [8, 32], strides = [1, 1]} : vector<8x384xf32> to vector<8x32xf32>
    %101 = arith.truncf %100 : vector<8x32xf32> to vector<8x32xbf16>
    %cst_32 = arith.constant dense<0.000000e+00> : vector<8x8xf32>
    %102 = tpu.matmul %97, %99, %cst_32 {dimension_numbers = #tpu.dot_dimension_numbers<[1], [1], [0], [0], [0, 0, 1, 0], [], []>} : vector<8x32xbf16>, vector<8x32xbf16>, vector<8x8xf32> -> vector<8x8xf32>
    %cst_33 = arith.constant dense<0xFF800000> : vector<8xf32>
    %103 = vector.multi_reduction <maximumf>, %102, %cst_33 [1] : vector<8x8xf32> to vector<8xf32>
    %104 = vector.shape_cast %103 : vector<8xf32> to vector<8x1xf32>
    %105 = vector.broadcast %104 : vector<8x1xf32> to vector<8x8xf32>
    %106 = arith.subf %102, %105 : vector<8x8xf32>
    %107 = math.exp %106 : vector<8x8xf32>
    %cst_34 = arith.constant dense<0.000000e+00> : vector<8xf32>
    %108 = vector.multi_reduction <add>, %107, %cst_34 [1] : vector<8x8xf32> to vector<8xf32>
    %109 = vector.shape_cast %108 : vector<8xf32> to vector<8x1xf32>
    %110 = tpu.reciprocal %109 {approx = true} : vector<8x1xf32> -> vector<8x1xf32>
    %111 = vector.broadcast %110 : vector<8x1xf32> to vector<8x8xf32>
    %112 = arith.mulf %107, %111 : vector<8x8xf32>
    %113 = arith.truncf %112 : vector<8x8xf32> to vector<8x8xbf16>
    %cst_35 = arith.constant dense<0.000000e+00> : vector<8x32xf32>
    %114 = tpu.matmul %113, %101, %cst_35 {dimension_numbers = #tpu.dot_dimension_numbers<[1], [0], [0], [1], [0, 0, 1, 1], [], []>} : vector<8x8xbf16>, vector<8x32xbf16>, vector<8x32xf32> -> vector<8x32xf32>
    %115 = tpu.concatenate %57, %76, %95, %114 in 1 : vector<8x32xf32>, vector<8x32xf32>, vector<8x32xf32>, vector<8x32xf32> -> vector<8x128xf32>
    %116 = arith.truncf %115 : vector<8x128xf32> to vector<8x128xbf16>
    %c0_36 = arith.constant 0 : index
    %c0_37 = arith.constant 0 : index
    %c0_38 = arith.constant 0 : index
    %117 = vector.load %arg7[%c0_36, %c0_37, %c0_38] : memref<1x128x128xbf16, #tpu.memory_space<vmem>>, vector<1x128x128xbf16>
    %118 = vector.shape_cast %117 : vector<1x128x128xbf16> to vector<128x128xbf16>
    %cst_39 = arith.constant dense<0.000000e+00> : vector<8x128xf32>
    %119 = tpu.matmul %116, %118, %cst_39 {dimension_numbers = #tpu.dot_dimension_numbers<[1], [0], [0], [1], [0, 0, 1, 1], [], []>} : vector<8x128xbf16>, vector<128x128xbf16>, vector<8x128xf32> -> vector<8x128xf32>
    %120 = arith.addf %4, %119 : vector<8x128xf32>
    %c0_40 = arith.constant 0 : index
    %c0_41 = arith.constant 0 : index
    %c0_42 = arith.constant 0 : index
    %121 = vector.load %arg8[%c0_40, %c0_41, %c0_42] : memref<1x1x128xf32, #tpu.memory_space<vmem>>, vector<1x1x128xf32>
    %122 = vector.shape_cast %121 : vector<1x1x128xf32> to vector<1x128xf32>
    %123 = vector.broadcast %122 : vector<1x128xf32> to vector<8x128xf32>
    %124 = arith.addf %120, %123 : vector<8x128xf32>
    %c0_43 = arith.constant 0 : index
    %c0_44 = arith.constant 0 : index
    %c0_45 = arith.constant 0 : index
    %125 = vector.load %arg9[%c0_43, %c0_44, %c0_45] : memref<1x1x128xf32, #tpu.memory_space<vmem>>, vector<1x1x128xf32>
    %126 = vector.shape_cast %125 : vector<1x1x128xf32> to vector<1x128xf32>
    %c0_46 = arith.constant 0 : index
    %c0_47 = arith.constant 0 : index
    %c0_48 = arith.constant 0 : index
    %127 = vector.load %arg10[%c0_46, %c0_47, %c0_48] : memref<1x1x128xf32, #tpu.memory_space<vmem>>, vector<1x1x128xf32>
    %128 = vector.shape_cast %127 : vector<1x1x128xf32> to vector<1x128xf32>
    %cst_49 = arith.constant dense<0.000000e+00> : vector<8xf32>
    %129 = vector.multi_reduction <add>, %124, %cst_49 [1] : vector<8x128xf32> to vector<8xf32>
    %130 = vector.shape_cast %129 : vector<8xf32> to vector<8x1xf32>
    %cst_50 = arith.constant 1.280000e+02 : f32
    %131 = vector.broadcast %cst_50 : f32 to vector<8x1xf32>
    %132 = arith.divf %130, %131 : vector<8x1xf32>
    %133 = vector.broadcast %132 : vector<8x1xf32> to vector<8x128xf32>
    %134 = arith.subf %124, %133 : vector<8x128xf32>
    %135 = arith.mulf %134, %134 : vector<8x128xf32>
    %cst_51 = arith.constant dense<0.000000e+00> : vector<8xf32>
    %136 = vector.multi_reduction <add>, %135, %cst_51 [1] : vector<8x128xf32> to vector<8xf32>
    %137 = vector.shape_cast %136 : vector<8xf32> to vector<8x1xf32>
    %cst_52 = arith.constant 1.280000e+02 : f32
    %138 = vector.broadcast %cst_52 : f32 to vector<8x1xf32>
    %139 = arith.divf %137, %138 : vector<8x1xf32>
    %140 = vector.broadcast %132 : vector<8x1xf32> to vector<8x128xf32>
    %141 = arith.subf %124, %140 : vector<8x128xf32>
    %cst_53 = arith.constant 9.99999997E-7 : f32
    %142 = vector.broadcast %cst_53 : f32 to vector<8x1xf32>
    %143 = arith.addf %139, %142 : vector<8x1xf32>
    %144 = math.rsqrt %143 : vector<8x1xf32>
    %145 = vector.broadcast %144 : vector<8x1xf32> to vector<8x128xf32>
    %146 = arith.mulf %141, %145 : vector<8x128xf32>
    %147 = vector.broadcast %126 : vector<1x128xf32> to vector<8x128xf32>
    %148 = arith.mulf %146, %147 : vector<8x128xf32>
    %149 = vector.broadcast %128 : vector<1x128xf32> to vector<8x128xf32>
    %150 = arith.addf %148, %149 : vector<8x128xf32>
    %151 = arith.truncf %150 : vector<8x128xf32> to vector<8x128xbf16>
    %c0_54 = arith.constant 0 : index
    %c0_55 = arith.constant 0 : index
    %c0_56 = arith.constant 0 : index
    %152 = vector.load %arg11[%c0_54, %c0_55, %c0_56] : memref<1x128x512xbf16, #tpu.memory_space<vmem>>, vector<1x128x512xbf16>
    %153 = vector.shape_cast %152 : vector<1x128x512xbf16> to vector<128x512xbf16>
    %cst_57 = arith.constant dense<0.000000e+00> : vector<8x512xf32>
    %154 = tpu.matmul %151, %153, %cst_57 {dimension_numbers = #tpu.dot_dimension_numbers<[1], [0], [0], [1], [0, 0, 1, 1], [], []>} : vector<8x128xbf16>, vector<128x512xbf16>, vector<8x512xf32> -> vector<8x512xf32>
    %c0_58 = arith.constant 0 : index
    %c0_59 = arith.constant 0 : index
    %c0_60 = arith.constant 0 : index
    %155 = vector.load %arg12[%c0_58, %c0_59, %c0_60] : memref<1x1x512xf32, #tpu.memory_space<vmem>>, vector<1x1x512xf32>
    %156 = vector.shape_cast %155 : vector<1x1x512xf32> to vector<1x512xf32>
    %157 = vector.broadcast %156 : vector<1x512xf32> to vector<8x512xf32>
    %158 = arith.addf %154, %157 : vector<8x512xf32>
    %159 = arith.mulf %158, %158 : vector<8x512xf32>
    %160 = arith.mulf %158, %159 : vector<8x512xf32>
    %cst_61 = arith.constant 4.471500e-02 : f32
    %161 = vector.broadcast %cst_61 : f32 to vector<8x512xf32>
    %162 = arith.mulf %161, %160 : vector<8x512xf32>
    %163 = arith.addf %158, %162 : vector<8x512xf32>
    %cst_62 = arith.constant 0.797884583 : f32
    %164 = vector.broadcast %cst_62 : f32 to vector<8x512xf32>
    %165 = arith.mulf %164, %163 : vector<8x512xf32>
    %166 = math.tanh %165 : vector<8x512xf32>
    %cst_63 = arith.constant 1.000000e+00 : f32
    %167 = vector.broadcast %cst_63 : f32 to vector<8x512xf32>
    %168 = arith.addf %167, %166 : vector<8x512xf32>
    %cst_64 = arith.constant 5.000000e-01 : f32
    %169 = vector.broadcast %cst_64 : f32 to vector<8x512xf32>
    %170 = arith.mulf %169, %168 : vector<8x512xf32>
    %171 = arith.mulf %158, %170 : vector<8x512xf32>
    %172 = arith.truncf %171 : vector<8x512xf32> to vector<8x512xbf16>
    %c0_65 = arith.constant 0 : index
    %c0_66 = arith.constant 0 : index
    %c0_67 = arith.constant 0 : index
    %173 = vector.load %arg13[%c0_65, %c0_66, %c0_67] : memref<1x512x128xbf16, #tpu.memory_space<vmem>>, vector<1x512x128xbf16>
    %174 = vector.shape_cast %173 : vector<1x512x128xbf16> to vector<512x128xbf16>
    %cst_68 = arith.constant dense<0.000000e+00> : vector<8x128xf32>
    %175 = tpu.matmul %172, %174, %cst_68 {dimension_numbers = #tpu.dot_dimension_numbers<[1], [0], [0], [1], [0, 0, 1, 1], [], []>} : vector<8x512xbf16>, vector<512x128xbf16>, vector<8x128xf32> -> vector<8x128xf32>
    %176 = arith.addf %124, %175 : vector<8x128xf32>
    %c0_69 = arith.constant 0 : index
    %c0_70 = arith.constant 0 : index
    %c0_71 = arith.constant 0 : index
    %177 = vector.load %arg14[%c0_69, %c0_70, %c0_71] : memref<1x1x128xf32, #tpu.memory_space<vmem>>, vector<1x1x128xf32>
    %178 = vector.shape_cast %177 : vector<1x1x128xf32> to vector<1x128xf32>
    %179 = vector.broadcast %178 : vector<1x128xf32> to vector<8x128xf32>
    %180 = arith.addf %176, %179 : vector<8x128xf32>
    %c1_i32 = arith.constant 1 : i32
    %181 = arith.cmpi ne, %arg1, %c1_i32 : i32
    %182 = arith.extui %181 : i1 to i32
    %c0_i32_72 = arith.constant 0 : i32
    %183 = arith.cmpi ne, %182, %c0_i32_72 : i32
    scf.if %183 {
      %c0_75 = arith.constant 0 : index
      %c0_76 = arith.constant 0 : index
      %c0_77 = arith.constant 0 : index
      %187 = vector.load %arg17[%c0_75, %c0_76, %c0_77] : memref<1x8x128xf32, #tpu.memory_space<vmem>>, vector<1x8x128xf32>
      %188 = vector.shape_cast %187 : vector<1x8x128xf32> to vector<8x128xf32>
      %189 = vector.shape_cast %180 : vector<8x128xf32> to vector<1x8x128xf32>
      tpu.vector_store %arg17[%c0_75, %c0_76, %c0_77], %189 {strides = array<i32>} : memref<1x8x128xf32, #tpu.memory_space<vmem>>, vector<1x8x128xf32>,
    } else {
    }
    %c1_i32_73 = arith.constant 1 : i32
    %184 = arith.cmpi eq, %arg1, %c1_i32_73 : i32
    %185 = arith.extui %184 : i1 to i32
    %c0_i32_74 = arith.constant 0 : i32
    %186 = arith.cmpi ne, %185, %c0_i32_74 : i32
    scf.if %186 {
      %c0_75 = arith.constant 0 : index
      %c0_76 = arith.constant 0 : index
      %187 = vector.load %arg15[%c0_75, %c0_76] : memref<1x128xf32, #tpu.memory_space<vmem>>, vector<1x128xf32>
      %c0_77 = arith.constant 0 : index
      %c0_78 = arith.constant 0 : index
      %188 = vector.load %arg16[%c0_77, %c0_78] : memref<1x128xf32, #tpu.memory_space<vmem>>, vector<1x128xf32>
      %cst_79 = arith.constant dense<0.000000e+00> : vector<8xf32>
      %189 = vector.multi_reduction <add>, %180, %cst_79 [1] : vector<8x128xf32> to vector<8xf32>
      %190 = vector.shape_cast %189 : vector<8xf32> to vector<8x1xf32>
      %cst_80 = arith.constant 1.280000e+02 : f32
      %191 = vector.broadcast %cst_80 : f32 to vector<8x1xf32>
      %192 = arith.divf %190, %191 : vector<8x1xf32>
      %193 = vector.broadcast %192 : vector<8x1xf32> to vector<8x128xf32>
      %194 = arith.subf %180, %193 : vector<8x128xf32>
      %195 = arith.mulf %194, %194 : vector<8x128xf32>
      %cst_81 = arith.constant dense<0.000000e+00> : vector<8xf32>
      %196 = vector.multi_reduction <add>, %195, %cst_81 [1] : vector<8x128xf32> to vector<8xf32>
      %197 = vector.shape_cast %196 : vector<8xf32> to vector<8x1xf32>
      %cst_82 = arith.constant 1.280000e+02 : f32
      %198 = vector.broadcast %cst_82 : f32 to vector<8x1xf32>
      %199 = arith.divf %197, %198 : vector<8x1xf32>
      %200 = vector.broadcast %192 : vector<8x1xf32> to vector<8x128xf32>
      %201 = arith.subf %180, %200 : vector<8x128xf32>
      %cst_83 = arith.constant 9.99999997E-7 : f32
      %202 = vector.broadcast %cst_83 : f32 to vector<8x1xf32>
      %203 = arith.addf %199, %202 : vector<8x1xf32>
      %204 = math.rsqrt %203 : vector<8x1xf32>
      %205 = vector.broadcast %204 : vector<8x1xf32> to vector<8x128xf32>
      %206 = arith.mulf %201, %205 : vector<8x128xf32>
      %207 = vector.broadcast %187 : vector<1x128xf32> to vector<8x128xf32>
      %208 = arith.mulf %206, %207 : vector<8x128xf32>
      %209 = vector.broadcast %188 : vector<1x128xf32> to vector<8x128xf32>
      %210 = arith.addf %208, %209 : vector<8x128xf32>
      %c0_84 = arith.constant 0 : index
      %c0_85 = arith.constant 0 : index
      %c0_86 = arith.constant 0 : index
      %211 = vector.load %arg17[%c0_84, %c0_85, %c0_86] : memref<1x8x128xf32, #tpu.memory_space<vmem>>, vector<1x8x128xf32>
      %212 = vector.shape_cast %211 : vector<1x8x128xf32> to vector<8x128xf32>
      %213 = vector.shape_cast %210 : vector<8x128xf32> to vector<1x8x128xf32>
      tpu.vector_store %arg17[%c0_84, %c0_85, %c0_86], %213 {strides = array<i32>} : memref<1x8x128xf32, #tpu.memory_space<vmem>>, vector<1x8x128xf32>,
    } else {
    }
    return
  }
  func.func @transform_0(%arg0: i32, %arg1: i32) -> (i32, i32, i32) {
    %c0_i32 = arith.constant 0 : i32
    %c0_i32_0 = arith.constant 0 : i32
    %c0_i32_1 = arith.constant 0 : i32
    return %arg0, %c0_i32, %c0_i32_0 : i32, i32, i32
  }
  func.func @transform_1(%arg0: i32, %arg1: i32) -> (i32, i32, i32) {
    %c0_i32 = arith.constant 0 : i32
    %c0_i32_0 = arith.constant 0 : i32
    %c0_i32_1 = arith.constant 0 : i32
    return %arg1, %c0_i32, %c0_i32_0 : i32, i32, i32
  }
  func.func @transform_2(%arg0: i32, %arg1: i32) -> (i32, i32, i32) {
    %c0_i32 = arith.constant 0 : i32
    %c0_i32_0 = arith.constant 0 : i32
    %c0_i32_1 = arith.constant 0 : i32
    return %arg1, %c0_i32, %c0_i32_0 : i32, i32, i32
  }
  func.func @transform_3(%arg0: i32, %arg1: i32) -> (i32, i32, i32) {
    %c0_i32 = arith.constant 0 : i32
    %c0_i32_0 = arith.constant 0 : i32
    %c0_i32_1 = arith.constant 0 : i32
    return %arg1, %c0_i32, %c0_i32_0 : i32, i32, i32
  }
  func.func @transform_4(%arg0: i32, %arg1: i32) -> (i32, i32, i32) {
    %c0_i32 = arith.constant 0 : i32
    %c0_i32_0 = arith.constant 0 : i32
    %c0_i32_1 = arith.constant 0 : i32
    return %arg1, %c0_i32, %c0_i32_0 : i32, i32, i32
  }
  func.func @transform_5(%arg0: i32, %arg1: i32) -> (i32, i32, i32) {
    %c0_i32 = arith.constant 0 : i32
    %c0_i32_0 = arith.constant 0 : i32
    %c0_i32_1 = arith.constant 0 : i32
    return %arg1, %c0_i32, %c0_i32_0 : i32, i32, i32
  }
  func.func @transform_6(%arg0: i32, %arg1: i32) -> (i32, i32, i32) {
    %c0_i32 = arith.constant 0 : i32
    %c0_i32_0 = arith.constant 0 : i32
    %c0_i32_1 = arith.constant 0 : i32
    return %arg1, %c0_i32, %c0_i32_0 : i32, i32, i32
  }
  func.func @transform_7(%arg0: i32, %arg1: i32) -> (i32, i32, i32) {
    %c0_i32 = arith.constant 0 : i32
    %c0_i32_0 = arith.constant 0 : i32
    %c0_i32_1 = arith.constant 0 : i32
    return %arg1, %c0_i32, %c0_i32_0 : i32, i32, i32
  }
  func.func @transform_8(%arg0: i32, %arg1: i32) -> (i32, i32, i32) {
    %c0_i32 = arith.constant 0 : i32
    %c0_i32_0 = arith.constant 0 : i32
    %c0_i32_1 = arith.constant 0 : i32
    return %arg1, %c0_i32, %c0_i32_0 : i32, i32, i32
  }
  func.func @transform_9(%arg0: i32, %arg1: i32) -> (i32, i32, i32) {
    %c0_i32 = arith.constant 0 : i32
    %c0_i32_0 = arith.constant 0 : i32
    %c0_i32_1 = arith.constant 0 : i32
    return %arg1, %c0_i32, %c0_i32_0 : i32, i32, i32
  }
  func.func @transform_10(%arg0: i32, %arg1: i32) -> (i32, i32, i32) {
    %c0_i32 = arith.constant 0 : i32
    %c0_i32_0 = arith.constant 0 : i32
    %c0_i32_1 = arith.constant 0 : i32
    return %arg1, %c0_i32, %c0_i32_0 : i32, i32, i32
  }
  func.func @transform_11(%arg0: i32, %arg1: i32) -> (i32, i32, i32) {
    %c0_i32 = arith.constant 0 : i32
    %c0_i32_0 = arith.constant 0 : i32
    %c0_i32_1 = arith.constant 0 : i32
    return %arg1, %c0_i32, %c0_i32_0 : i32, i32, i32
  }
  func.func @transform_12(%arg0: i32, %arg1: i32) -> (i32, i32, i32) {
    %c0_i32 = arith.constant 0 : i32
    %c0_i32_0 = arith.constant 0 : i32
    %c0_i32_1 = arith.constant 0 : i32
    return %arg1, %c0_i32, %c0_i32_0 : i32, i32, i32
  }
  func.func @transform_13(%arg0: i32, %arg1: i32) -> (i32, i32) {
    %c0_i32 = arith.constant 0 : i32
    %c0_i32_0 = arith.constant 0 : i32
    %c0_i32_1 = arith.constant 0 : i32
    return %c0_i32, %c0_i32_0 : i32, i32
  }
  func.func @transform_14(%arg0: i32, %arg1: i32) -> (i32, i32) {
    %c0_i32 = arith.constant 0 : i32
    %c0_i32_0 = arith.constant 0 : i32
    %c0_i32_1 = arith.constant 0 : i32
    return %c0_i32, %c0_i32_0 : i32, i32
  }
  func.func @transform_15(%arg0: i32, %arg1: i32) -> (i32, i32, i32) {
    %c0_i32 = arith.constant 0 : i32
    %c0_i32_0 = arith.constant 0 : i32
    %c0_i32_1 = arith.constant 0 : i32
    return %arg0, %c0_i32, %c0_i32_0 : i32, i32, i32
  }
}

module attributes {stable_mosaic.version = 11 : i64} {
  func.func @_interp_t_kernel(%arg0: i32, %arg1: memref<1x2x512xf32, #tpu.memory_space<vmem>>, %arg2: memref<4x2xf32, #tpu.memory_space<vmem>>, %arg3: memref<1x4x512xf32, #tpu.memory_space<vmem>>) attributes {dimension_semantics = [#tpu.dimension_semantics<parallel>], iteration_bounds = array<i64: 2>, scalar_prefetch = 0 : i64, scratch_operands = 0 : i64, tpu.core_type = #tpu.core_type<tc>, window_params = [{transform_indices = @transform_0, window_bounds = array<i64: 1, 2, 512>}, {pipeline_mode = #tpu.pipeline_mode<synchronous>, transform_indices = @transform_1, window_bounds = array<i64: 4, 2>}, {transform_indices = @transform_2, window_bounds = array<i64: 1, 4, 512>}]} {
    %c0 = arith.constant 0 : index
    %c0_0 = arith.constant 0 : index
    %0 = vector.load %arg2[%c0, %c0_0] : memref<4x2xf32, #tpu.memory_space<vmem>>, vector<4x2xf32>
    %c0_1 = arith.constant 0 : index
    %c0_2 = arith.constant 0 : index
    %c0_3 = arith.constant 0 : index
    %1 = vector.load %arg1[%c0_1, %c0_2, %c0_3] : memref<1x2x512xf32, #tpu.memory_space<vmem>>, vector<1x2x512xf32>
    %2 = vector.shape_cast %1 : vector<1x2x512xf32> to vector<2x512xf32>
    %cst = arith.constant dense<0.000000e+00> : vector<4x512xf32>
    %3 = tpu.matmul %0, %2, %cst {dimension_numbers = #tpu.dot_dimension_numbers<[1], [0], [0], [1], [0, 0, 1, 1], [], []>} : vector<4x2xf32>, vector<2x512xf32>, vector<4x512xf32> -> vector<4x512xf32>
    %c0_4 = arith.constant 0 : index
    %c0_5 = arith.constant 0 : index
    %c0_6 = arith.constant 0 : index
    %4 = vector.load %arg3[%c0_4, %c0_5, %c0_6] : memref<1x4x512xf32, #tpu.memory_space<vmem>>, vector<1x4x512xf32>
    %5 = vector.shape_cast %4 : vector<1x4x512xf32> to vector<4x512xf32>
    %6 = vector.shape_cast %3 : vector<4x512xf32> to vector<1x4x512xf32>
    tpu.vector_store %arg3[%c0_4, %c0_5, %c0_6], %6 {strides = array<i32>} : memref<1x4x512xf32, #tpu.memory_space<vmem>>, vector<1x4x512xf32>,
    return
  }
  func.func @transform_0(%arg0: i32) -> (i32, i32, i32) {
    %c0_i32 = arith.constant 0 : i32
    %c0_i32_0 = arith.constant 0 : i32
    %c0_i32_1 = arith.constant 0 : i32
    return %arg0, %c0_i32, %c0_i32_0 : i32, i32, i32
  }
  func.func @transform_1(%arg0: i32) -> (i32, i32) {
    %c0_i32 = arith.constant 0 : i32
    %c0_i32_0 = arith.constant 0 : i32
    %c0_i32_1 = arith.constant 0 : i32
    return %c0_i32, %c0_i32_0 : i32, i32
  }
  func.func @transform_2(%arg0: i32) -> (i32, i32, i32) {
    %c0_i32 = arith.constant 0 : i32
    %c0_i32_0 = arith.constant 0 : i32
    %c0_i32_1 = arith.constant 0 : i32
    return %arg0, %c0_i32, %c0_i32_0 : i32, i32, i32
  }
}

module attributes {stable_mosaic.version = 11 : i64} {
  func.func @kernel(%arg0: i32, %arg1: i32, %arg2: memref<1x2x2x128xf32, #tpu.memory_space<vmem>>, %arg3: memref<8x2xf32, #tpu.memory_space<vmem>>, %arg4: memref<32x2xf32, #tpu.memory_space<vmem>>, %arg5: memref<1x8x32x128xf32, #tpu.memory_space<vmem>>) attributes {dimension_semantics = [#tpu.dimension_semantics<parallel>, #tpu.dimension_semantics<parallel>], iteration_bounds = array<i64: 8, 4>, scalar_prefetch = 0 : i64, scratch_operands = 0 : i64, tpu.core_type = #tpu.core_type<tc>, window_params = [{transform_indices = @transform_0, window_bounds = array<i64: 1, 2, 2, 128>}, {transform_indices = @transform_1, window_bounds = array<i64: 8, 2>}, {pipeline_mode = #tpu.pipeline_mode<synchronous>, transform_indices = @transform_2, window_bounds = array<i64: 32, 2>}, {transform_indices = @transform_3, window_bounds = array<i64: 1, 8, 32, 128>}]} {
    %c0 = arith.constant 0 : index
    %c0_0 = arith.constant 0 : index
    %c0_1 = arith.constant 0 : index
    %c0_2 = arith.constant 0 : index
    %0 = vector.load %arg2[%c0, %c0_0, %c0_1, %c0_2] : memref<1x2x2x128xf32, #tpu.memory_space<vmem>>, vector<1x2x2x128xf32>
    %1 = vector.shape_cast %0 : vector<1x2x2x128xf32> to vector<2x2x128xf32>
    %c0_3 = arith.constant 0 : index
    %c0_4 = arith.constant 0 : index
    %2 = vector.load %arg4[%c0_3, %c0_4] : memref<32x2xf32, #tpu.memory_space<vmem>>, vector<32x2xf32>
    %c0_5 = arith.constant 0 : index
    %c0_6 = arith.constant 0 : index
    %3 = vector.load %arg3[%c0_5, %c0_6] : memref<8x2xf32, #tpu.memory_space<vmem>>, vector<8x2xf32>
    %4 = vector.extract_strided_slice %3 {offsets = [0, 0], sizes = [1, 1], strides = [1, 1]} : vector<8x2xf32> to vector<1x1xf32>
    %5 = vector.extract %4[0, 0] : f32 from vector<1x1xf32>
    %6 = vector.extract_strided_slice %1 {offsets = [0, 0, 0], sizes = [1, 2, 128], strides = [1, 1, 1]} : vector<2x2x128xf32> to vector<1x2x128xf32>
    %7 = vector.shape_cast %6 : vector<1x2x128xf32> to vector<2x128xf32>
    %8 = vector.broadcast %5 : f32 to vector<2x128xf32>
    %9 = arith.mulf %8, %7 : vector<2x128xf32>
    %10 = vector.extract_strided_slice %3 {offsets = [0, 1], sizes = [1, 1], strides = [1, 1]} : vector<8x2xf32> to vector<1x1xf32>
    %11 = vector.extract %10[0, 0] : f32 from vector<1x1xf32>
    %12 = vector.extract_strided_slice %1 {offsets = [1, 0, 0], sizes = [1, 2, 128], strides = [1, 1, 1]} : vector<2x2x128xf32> to vector<1x2x128xf32>
    %13 = vector.shape_cast %12 : vector<1x2x128xf32> to vector<2x128xf32>
    %14 = vector.broadcast %11 : f32 to vector<2x128xf32>
    %15 = arith.mulf %14, %13 : vector<2x128xf32>
    %16 = arith.addf %9, %15 : vector<2x128xf32>
    %cst = arith.constant dense<0.000000e+00> : vector<32x128xf32>
    %17 = tpu.matmul %2, %16, %cst {dimension_numbers = #tpu.dot_dimension_numbers<[1], [0], [0], [1], [0, 0, 1, 1], [], []>} : vector<32x2xf32>, vector<2x128xf32>, vector<32x128xf32> -> vector<32x128xf32>
    %c0_7 = arith.constant 0 : index
    %c0_8 = arith.constant 0 : index
    %c0_9 = arith.constant 0 : index
    %c0_10 = arith.constant 0 : index
    %18 = vector.load %arg5[%c0_7, %c0_8, %c0_9, %c0_10] : memref<1x8x32x128xf32, #tpu.memory_space<vmem>>, vector<1x1x32x128xf32>
    %19 = vector.shape_cast %18 : vector<1x1x32x128xf32> to vector<32x128xf32>
    %20 = vector.shape_cast %17 : vector<32x128xf32> to vector<1x1x32x128xf32>
    tpu.vector_store %arg5[%c0_7, %c0_8, %c0_9, %c0_10], %20 {strides = array<i32>} : memref<1x8x32x128xf32, #tpu.memory_space<vmem>>, vector<1x1x32x128xf32>,
    %21 = vector.extract_strided_slice %3 {offsets = [1, 0], sizes = [1, 1], strides = [1, 1]} : vector<8x2xf32> to vector<1x1xf32>
    %22 = vector.extract %21[0, 0] : f32 from vector<1x1xf32>
    %23 = vector.extract_strided_slice %1 {offsets = [0, 0, 0], sizes = [1, 2, 128], strides = [1, 1, 1]} : vector<2x2x128xf32> to vector<1x2x128xf32>
    %24 = vector.shape_cast %23 : vector<1x2x128xf32> to vector<2x128xf32>
    %25 = vector.broadcast %22 : f32 to vector<2x128xf32>
    %26 = arith.mulf %25, %24 : vector<2x128xf32>
    %27 = vector.extract_strided_slice %3 {offsets = [1, 1], sizes = [1, 1], strides = [1, 1]} : vector<8x2xf32> to vector<1x1xf32>
    %28 = vector.extract %27[0, 0] : f32 from vector<1x1xf32>
    %29 = vector.extract_strided_slice %1 {offsets = [1, 0, 0], sizes = [1, 2, 128], strides = [1, 1, 1]} : vector<2x2x128xf32> to vector<1x2x128xf32>
    %30 = vector.shape_cast %29 : vector<1x2x128xf32> to vector<2x128xf32>
    %31 = vector.broadcast %28 : f32 to vector<2x128xf32>
    %32 = arith.mulf %31, %30 : vector<2x128xf32>
    %33 = arith.addf %26, %32 : vector<2x128xf32>
    %cst_11 = arith.constant dense<0.000000e+00> : vector<32x128xf32>
    %34 = tpu.matmul %2, %33, %cst_11 {dimension_numbers = #tpu.dot_dimension_numbers<[1], [0], [0], [1], [0, 0, 1, 1], [], []>} : vector<32x2xf32>, vector<2x128xf32>, vector<32x128xf32> -> vector<32x128xf32>
    %c0_12 = arith.constant 0 : index
    %c1 = arith.constant 1 : index
    %c0_13 = arith.constant 0 : index
    %c0_14 = arith.constant 0 : index
    %35 = vector.load %arg5[%c0_12, %c1, %c0_13, %c0_14] : memref<1x8x32x128xf32, #tpu.memory_space<vmem>>, vector<1x1x32x128xf32>
    %36 = vector.shape_cast %35 : vector<1x1x32x128xf32> to vector<32x128xf32>
    %37 = vector.shape_cast %34 : vector<32x128xf32> to vector<1x1x32x128xf32>
    tpu.vector_store %arg5[%c0_12, %c1, %c0_13, %c0_14], %37 {strides = array<i32>} : memref<1x8x32x128xf32, #tpu.memory_space<vmem>>, vector<1x1x32x128xf32>,
    %38 = vector.extract_strided_slice %3 {offsets = [2, 0], sizes = [1, 1], strides = [1, 1]} : vector<8x2xf32> to vector<1x1xf32>
    %39 = vector.extract %38[0, 0] : f32 from vector<1x1xf32>
    %40 = vector.extract_strided_slice %1 {offsets = [0, 0, 0], sizes = [1, 2, 128], strides = [1, 1, 1]} : vector<2x2x128xf32> to vector<1x2x128xf32>
    %41 = vector.shape_cast %40 : vector<1x2x128xf32> to vector<2x128xf32>
    %42 = vector.broadcast %39 : f32 to vector<2x128xf32>
    %43 = arith.mulf %42, %41 : vector<2x128xf32>
    %44 = vector.extract_strided_slice %3 {offsets = [2, 1], sizes = [1, 1], strides = [1, 1]} : vector<8x2xf32> to vector<1x1xf32>
    %45 = vector.extract %44[0, 0] : f32 from vector<1x1xf32>
    %46 = vector.extract_strided_slice %1 {offsets = [1, 0, 0], sizes = [1, 2, 128], strides = [1, 1, 1]} : vector<2x2x128xf32> to vector<1x2x128xf32>
    %47 = vector.shape_cast %46 : vector<1x2x128xf32> to vector<2x128xf32>
    %48 = vector.broadcast %45 : f32 to vector<2x128xf32>
    %49 = arith.mulf %48, %47 : vector<2x128xf32>
    %50 = arith.addf %43, %49 : vector<2x128xf32>
    %cst_15 = arith.constant dense<0.000000e+00> : vector<32x128xf32>
    %51 = tpu.matmul %2, %50, %cst_15 {dimension_numbers = #tpu.dot_dimension_numbers<[1], [0], [0], [1], [0, 0, 1, 1], [], []>} : vector<32x2xf32>, vector<2x128xf32>, vector<32x128xf32> -> vector<32x128xf32>
    %c0_16 = arith.constant 0 : index
    %c2 = arith.constant 2 : index
    %c0_17 = arith.constant 0 : index
    %c0_18 = arith.constant 0 : index
    %52 = vector.load %arg5[%c0_16, %c2, %c0_17, %c0_18] : memref<1x8x32x128xf32, #tpu.memory_space<vmem>>, vector<1x1x32x128xf32>
    %53 = vector.shape_cast %52 : vector<1x1x32x128xf32> to vector<32x128xf32>
    %54 = vector.shape_cast %51 : vector<32x128xf32> to vector<1x1x32x128xf32>
    tpu.vector_store %arg5[%c0_16, %c2, %c0_17, %c0_18], %54 {strides = array<i32>} : memref<1x8x32x128xf32, #tpu.memory_space<vmem>>, vector<1x1x32x128xf32>,
    %55 = vector.extract_strided_slice %3 {offsets = [3, 0], sizes = [1, 1], strides = [1, 1]} : vector<8x2xf32> to vector<1x1xf32>
    %56 = vector.extract %55[0, 0] : f32 from vector<1x1xf32>
    %57 = vector.extract_strided_slice %1 {offsets = [0, 0, 0], sizes = [1, 2, 128], strides = [1, 1, 1]} : vector<2x2x128xf32> to vector<1x2x128xf32>
    %58 = vector.shape_cast %57 : vector<1x2x128xf32> to vector<2x128xf32>
    %59 = vector.broadcast %56 : f32 to vector<2x128xf32>
    %60 = arith.mulf %59, %58 : vector<2x128xf32>
    %61 = vector.extract_strided_slice %3 {offsets = [3, 1], sizes = [1, 1], strides = [1, 1]} : vector<8x2xf32> to vector<1x1xf32>
    %62 = vector.extract %61[0, 0] : f32 from vector<1x1xf32>
    %63 = vector.extract_strided_slice %1 {offsets = [1, 0, 0], sizes = [1, 2, 128], strides = [1, 1, 1]} : vector<2x2x128xf32> to vector<1x2x128xf32>
    %64 = vector.shape_cast %63 : vector<1x2x128xf32> to vector<2x128xf32>
    %65 = vector.broadcast %62 : f32 to vector<2x128xf32>
    %66 = arith.mulf %65, %64 : vector<2x128xf32>
    %67 = arith.addf %60, %66 : vector<2x128xf32>
    %cst_19 = arith.constant dense<0.000000e+00> : vector<32x128xf32>
    %68 = tpu.matmul %2, %67, %cst_19 {dimension_numbers = #tpu.dot_dimension_numbers<[1], [0], [0], [1], [0, 0, 1, 1], [], []>} : vector<32x2xf32>, vector<2x128xf32>, vector<32x128xf32> -> vector<32x128xf32>
    %c0_20 = arith.constant 0 : index
    %c3 = arith.constant 3 : index
    %c0_21 = arith.constant 0 : index
    %c0_22 = arith.constant 0 : index
    %69 = vector.load %arg5[%c0_20, %c3, %c0_21, %c0_22] : memref<1x8x32x128xf32, #tpu.memory_space<vmem>>, vector<1x1x32x128xf32>
    %70 = vector.shape_cast %69 : vector<1x1x32x128xf32> to vector<32x128xf32>
    %71 = vector.shape_cast %68 : vector<32x128xf32> to vector<1x1x32x128xf32>
    tpu.vector_store %arg5[%c0_20, %c3, %c0_21, %c0_22], %71 {strides = array<i32>} : memref<1x8x32x128xf32, #tpu.memory_space<vmem>>, vector<1x1x32x128xf32>,
    %72 = vector.extract_strided_slice %3 {offsets = [4, 0], sizes = [1, 1], strides = [1, 1]} : vector<8x2xf32> to vector<1x1xf32>
    %73 = vector.extract %72[0, 0] : f32 from vector<1x1xf32>
    %74 = vector.extract_strided_slice %1 {offsets = [0, 0, 0], sizes = [1, 2, 128], strides = [1, 1, 1]} : vector<2x2x128xf32> to vector<1x2x128xf32>
    %75 = vector.shape_cast %74 : vector<1x2x128xf32> to vector<2x128xf32>
    %76 = vector.broadcast %73 : f32 to vector<2x128xf32>
    %77 = arith.mulf %76, %75 : vector<2x128xf32>
    %78 = vector.extract_strided_slice %3 {offsets = [4, 1], sizes = [1, 1], strides = [1, 1]} : vector<8x2xf32> to vector<1x1xf32>
    %79 = vector.extract %78[0, 0] : f32 from vector<1x1xf32>
    %80 = vector.extract_strided_slice %1 {offsets = [1, 0, 0], sizes = [1, 2, 128], strides = [1, 1, 1]} : vector<2x2x128xf32> to vector<1x2x128xf32>
    %81 = vector.shape_cast %80 : vector<1x2x128xf32> to vector<2x128xf32>
    %82 = vector.broadcast %79 : f32 to vector<2x128xf32>
    %83 = arith.mulf %82, %81 : vector<2x128xf32>
    %84 = arith.addf %77, %83 : vector<2x128xf32>
    %cst_23 = arith.constant dense<0.000000e+00> : vector<32x128xf32>
    %85 = tpu.matmul %2, %84, %cst_23 {dimension_numbers = #tpu.dot_dimension_numbers<[1], [0], [0], [1], [0, 0, 1, 1], [], []>} : vector<32x2xf32>, vector<2x128xf32>, vector<32x128xf32> -> vector<32x128xf32>
    %c0_24 = arith.constant 0 : index
    %c4 = arith.constant 4 : index
    %c0_25 = arith.constant 0 : index
    %c0_26 = arith.constant 0 : index
    %86 = vector.load %arg5[%c0_24, %c4, %c0_25, %c0_26] : memref<1x8x32x128xf32, #tpu.memory_space<vmem>>, vector<1x1x32x128xf32>
    %87 = vector.shape_cast %86 : vector<1x1x32x128xf32> to vector<32x128xf32>
    %88 = vector.shape_cast %85 : vector<32x128xf32> to vector<1x1x32x128xf32>
    tpu.vector_store %arg5[%c0_24, %c4, %c0_25, %c0_26], %88 {strides = array<i32>} : memref<1x8x32x128xf32, #tpu.memory_space<vmem>>, vector<1x1x32x128xf32>,
    %89 = vector.extract_strided_slice %3 {offsets = [5, 0], sizes = [1, 1], strides = [1, 1]} : vector<8x2xf32> to vector<1x1xf32>
    %90 = vector.extract %89[0, 0] : f32 from vector<1x1xf32>
    %91 = vector.extract_strided_slice %1 {offsets = [0, 0, 0], sizes = [1, 2, 128], strides = [1, 1, 1]} : vector<2x2x128xf32> to vector<1x2x128xf32>
    %92 = vector.shape_cast %91 : vector<1x2x128xf32> to vector<2x128xf32>
    %93 = vector.broadcast %90 : f32 to vector<2x128xf32>
    %94 = arith.mulf %93, %92 : vector<2x128xf32>
    %95 = vector.extract_strided_slice %3 {offsets = [5, 1], sizes = [1, 1], strides = [1, 1]} : vector<8x2xf32> to vector<1x1xf32>
    %96 = vector.extract %95[0, 0] : f32 from vector<1x1xf32>
    %97 = vector.extract_strided_slice %1 {offsets = [1, 0, 0], sizes = [1, 2, 128], strides = [1, 1, 1]} : vector<2x2x128xf32> to vector<1x2x128xf32>
    %98 = vector.shape_cast %97 : vector<1x2x128xf32> to vector<2x128xf32>
    %99 = vector.broadcast %96 : f32 to vector<2x128xf32>
    %100 = arith.mulf %99, %98 : vector<2x128xf32>
    %101 = arith.addf %94, %100 : vector<2x128xf32>
    %cst_27 = arith.constant dense<0.000000e+00> : vector<32x128xf32>
    %102 = tpu.matmul %2, %101, %cst_27 {dimension_numbers = #tpu.dot_dimension_numbers<[1], [0], [0], [1], [0, 0, 1, 1], [], []>} : vector<32x2xf32>, vector<2x128xf32>, vector<32x128xf32> -> vector<32x128xf32>
    %c0_28 = arith.constant 0 : index
    %c5 = arith.constant 5 : index
    %c0_29 = arith.constant 0 : index
    %c0_30 = arith.constant 0 : index
    %103 = vector.load %arg5[%c0_28, %c5, %c0_29, %c0_30] : memref<1x8x32x128xf32, #tpu.memory_space<vmem>>, vector<1x1x32x128xf32>
    %104 = vector.shape_cast %103 : vector<1x1x32x128xf32> to vector<32x128xf32>
    %105 = vector.shape_cast %102 : vector<32x128xf32> to vector<1x1x32x128xf32>
    tpu.vector_store %arg5[%c0_28, %c5, %c0_29, %c0_30], %105 {strides = array<i32>} : memref<1x8x32x128xf32, #tpu.memory_space<vmem>>, vector<1x1x32x128xf32>,
    %106 = vector.extract_strided_slice %3 {offsets = [6, 0], sizes = [1, 1], strides = [1, 1]} : vector<8x2xf32> to vector<1x1xf32>
    %107 = vector.extract %106[0, 0] : f32 from vector<1x1xf32>
    %108 = vector.extract_strided_slice %1 {offsets = [0, 0, 0], sizes = [1, 2, 128], strides = [1, 1, 1]} : vector<2x2x128xf32> to vector<1x2x128xf32>
    %109 = vector.shape_cast %108 : vector<1x2x128xf32> to vector<2x128xf32>
    %110 = vector.broadcast %107 : f32 to vector<2x128xf32>
    %111 = arith.mulf %110, %109 : vector<2x128xf32>
    %112 = vector.extract_strided_slice %3 {offsets = [6, 1], sizes = [1, 1], strides = [1, 1]} : vector<8x2xf32> to vector<1x1xf32>
    %113 = vector.extract %112[0, 0] : f32 from vector<1x1xf32>
    %114 = vector.extract_strided_slice %1 {offsets = [1, 0, 0], sizes = [1, 2, 128], strides = [1, 1, 1]} : vector<2x2x128xf32> to vector<1x2x128xf32>
    %115 = vector.shape_cast %114 : vector<1x2x128xf32> to vector<2x128xf32>
    %116 = vector.broadcast %113 : f32 to vector<2x128xf32>
    %117 = arith.mulf %116, %115 : vector<2x128xf32>
    %118 = arith.addf %111, %117 : vector<2x128xf32>
    %cst_31 = arith.constant dense<0.000000e+00> : vector<32x128xf32>
    %119 = tpu.matmul %2, %118, %cst_31 {dimension_numbers = #tpu.dot_dimension_numbers<[1], [0], [0], [1], [0, 0, 1, 1], [], []>} : vector<32x2xf32>, vector<2x128xf32>, vector<32x128xf32> -> vector<32x128xf32>
    %c0_32 = arith.constant 0 : index
    %c6 = arith.constant 6 : index
    %c0_33 = arith.constant 0 : index
    %c0_34 = arith.constant 0 : index
    %120 = vector.load %arg5[%c0_32, %c6, %c0_33, %c0_34] : memref<1x8x32x128xf32, #tpu.memory_space<vmem>>, vector<1x1x32x128xf32>
    %121 = vector.shape_cast %120 : vector<1x1x32x128xf32> to vector<32x128xf32>
    %122 = vector.shape_cast %119 : vector<32x128xf32> to vector<1x1x32x128xf32>
    tpu.vector_store %arg5[%c0_32, %c6, %c0_33, %c0_34], %122 {strides = array<i32>} : memref<1x8x32x128xf32, #tpu.memory_space<vmem>>, vector<1x1x32x128xf32>,
    %123 = vector.extract_strided_slice %3 {offsets = [7, 0], sizes = [1, 1], strides = [1, 1]} : vector<8x2xf32> to vector<1x1xf32>
    %124 = vector.extract %123[0, 0] : f32 from vector<1x1xf32>
    %125 = vector.extract_strided_slice %1 {offsets = [0, 0, 0], sizes = [1, 2, 128], strides = [1, 1, 1]} : vector<2x2x128xf32> to vector<1x2x128xf32>
    %126 = vector.shape_cast %125 : vector<1x2x128xf32> to vector<2x128xf32>
    %127 = vector.broadcast %124 : f32 to vector<2x128xf32>
    %128 = arith.mulf %127, %126 : vector<2x128xf32>
    %129 = vector.extract_strided_slice %3 {offsets = [7, 1], sizes = [1, 1], strides = [1, 1]} : vector<8x2xf32> to vector<1x1xf32>
    %130 = vector.extract %129[0, 0] : f32 from vector<1x1xf32>
    %131 = vector.extract_strided_slice %1 {offsets = [1, 0, 0], sizes = [1, 2, 128], strides = [1, 1, 1]} : vector<2x2x128xf32> to vector<1x2x128xf32>
    %132 = vector.shape_cast %131 : vector<1x2x128xf32> to vector<2x128xf32>
    %133 = vector.broadcast %130 : f32 to vector<2x128xf32>
    %134 = arith.mulf %133, %132 : vector<2x128xf32>
    %135 = arith.addf %128, %134 : vector<2x128xf32>
    %cst_35 = arith.constant dense<0.000000e+00> : vector<32x128xf32>
    %136 = tpu.matmul %2, %135, %cst_35 {dimension_numbers = #tpu.dot_dimension_numbers<[1], [0], [0], [1], [0, 0, 1, 1], [], []>} : vector<32x2xf32>, vector<2x128xf32>, vector<32x128xf32> -> vector<32x128xf32>
    %c0_36 = arith.constant 0 : index
    %c7 = arith.constant 7 : index
    %c0_37 = arith.constant 0 : index
    %c0_38 = arith.constant 0 : index
    %137 = vector.load %arg5[%c0_36, %c7, %c0_37, %c0_38] : memref<1x8x32x128xf32, #tpu.memory_space<vmem>>, vector<1x1x32x128xf32>
    %138 = vector.shape_cast %137 : vector<1x1x32x128xf32> to vector<32x128xf32>
    %139 = vector.shape_cast %136 : vector<32x128xf32> to vector<1x1x32x128xf32>
    tpu.vector_store %arg5[%c0_36, %c7, %c0_37, %c0_38], %139 {strides = array<i32>} : memref<1x8x32x128xf32, #tpu.memory_space<vmem>>, vector<1x1x32x128xf32>,
    return
  }
  func.func @transform_0(%arg0: i32, %arg1: i32) -> (i32, i32, i32, i32) {
    %c0_i32 = arith.constant 0 : i32
    %c0_i32_0 = arith.constant 0 : i32
    %c0_i32_1 = arith.constant 0 : i32
    %c0_i32_2 = arith.constant 0 : i32
    return %arg0, %c0_i32, %c0_i32_0, %c0_i32_1 : i32, i32, i32, i32
  }
  func.func @transform_1(%arg0: i32, %arg1: i32) -> (i32, i32) {
    %c0_i32 = arith.constant 0 : i32
    %c0_i32_0 = arith.constant 0 : i32
    return %arg1, %c0_i32 : i32, i32
  }
  func.func @transform_2(%arg0: i32, %arg1: i32) -> (i32, i32) {
    %c0_i32 = arith.constant 0 : i32
    %c0_i32_0 = arith.constant 0 : i32
    %c0_i32_1 = arith.constant 0 : i32
    return %c0_i32, %c0_i32_0 : i32, i32
  }
  func.func @transform_3(%arg0: i32, %arg1: i32) -> (i32, i32, i32, i32) {
    %c0_i32 = arith.constant 0 : i32
    %c0_i32_0 = arith.constant 0 : i32
    %c0_i32_1 = arith.constant 0 : i32
    return %arg0, %arg1, %c0_i32, %c0_i32_0 : i32, i32, i32, i32
  }
}

</mosaic_0001>

<bundles_post_ra>
// kernel: mul.13
= control target key start
LH: loop header
LB: loop body
LE: loop exit
PB: predicated region body
PF: predicated region fallthrough
CT: control target
= control target key end

     0   :  { %s72_s0 = inlined_call_operand.vmem [shape: f32[3,512], index: 0, kind: input, shape index: {}]   ;;  %s73_s1 = inlined_call_operand.vmem [shape: f32[1536], index: 1, kind: output, shape index: {}]  }
   0x1   :  { %v32_v0 = vld [vmem:[%s72_s0 + $0xc] sm:$0xf]  ;;  %v33_v1 = vld [vmem:[%s72_s0 + $0x8] sm:$0xf]  ;;  %v34_v2 = vld [vmem:[%s72_s0 + $0x4] sm:$0xf] }
   0x2   :  { %7 = vst [vmem:[#allocation0 + $0x8] sm:$0xf] %v32_v0  ;;  %v16_v3 = vld [vmem:[%s72_s0] sm:$0xf] }
   0x3   :  { %11 = vst [vmem:[#allocation0 + $0x18] sm:$0xf] %v33_v1 }
   0x4   :  { %15 = vst [vmem:[#allocation0] sm:$0xf] %v34_v2 }
   0x5   :  { %17 = vst [vmem:[#allocation0 + $0x10] sm:$0xf] %v16_v3 }
   0x9   :  { %v29_v4 = vld [vmem:[#allocation0 + $0x8] sm:$0x7]  }
   0xa   :  { %v25_v5 = vld [vmem:[#allocation0 + $0x18] sm:$0x7]   ;;  %37 = vst [vmem:[%s73_s1 + $0x3] ss:$4 sm:$0x7] %v29_v4  }
   0xb   :  { %v21_v6 = vld [vmem:[#allocation0] sm:$0x7]   ;;  %36 = vst [vmem:[%s73_s1 + $0x2] ss:$4 sm:$0x7] %v25_v5  }
   0xc   :  { %v18_v7 = vld [vmem:[#allocation0 + $0x10] sm:$0x7]   ;;  %35 = vst [vmem:[%s73_s1 + $0x1] ss:$4 sm:$0x7] %v21_v6  }
   0xd   :  { %19 = vst [vmem:[%s73_s1] ss:$4 sm:$0x7] %v18_v7  }

// kernel: vjepa_feature_extractor.4
= control target key start
LH: loop header
LB: loop body
LE: loop exit
PB: predicated region body
PF: predicated region fallthrough
CT: control target
= control target key end

     0   :  { %s1962_s1 = inlined_call_operand.vmem [shape: bf16[1536,128], index: 1, kind: input, shape index: {}]   ;;  %s1963_s2 = inlined_call_operand.vmem [shape: f32[1,128], index: 2, kind: input, shape index: {}]   ;;  %s1964_s0 = inlined_call_operand.vmem [shape: bf16[16,1536], index: 0, kind: input, shape index: {}]   ;;  %s1965_s3 = inlined_call_operand.vmem [shape: f32[16,128], index: 3, kind: output, shape index: {}]  }
   0x1   :  { %v1483_v0 = vld [vmem:[%s1962_s1 + $0x38] sm:$0xff]  ;;  %v1482_v4 = vld [vmem:[%s1962_s1 + $0x30] sm:$0xff]  ;;  %v1481_v8 = vld [vmem:[%s1962_s1 + $0x28] sm:$0xff] }
   0x2   :  { %v1491_v1 = vld [vmem:[%s1962_s1 + $0x78] sm:$0xff]  ;;  %858 = vmatpush.bf16.msra.mxu0 %v1483_v0  ;;  %v1490_v5 = vld [vmem:[%s1962_s1 + $0x70] sm:$0xff]  ;;  %v1489_v9 = vld [vmem:[%s1962_s1 + $0x68] sm:$0xff] }
   0x3   :  { %v1499_v2 = vld [vmem:[%s1962_s1 + $0xb8] sm:$0xff]  ;;  %872 = vmatpush.bf16.msra.mxu1 %v1491_v1  ;;  %v1498_v6 = vld [vmem:[%s1962_s1 + $0xb0] sm:$0xff]  ;;  %v1497_v10 = vld [vmem:[%s1962_s1 + $0xa8] sm:$0xff] }
   0x4   :  { %v1507_v3 = vld [vmem:[%s1962_s1 + $0xf8] sm:$0xff]  ;;  %886 = vmatpush.bf16.msra.mxu2 %v1499_v2  ;;  %v1506_v7 = vld [vmem:[%s1962_s1 + $0xf0] sm:$0xff]  ;;  %v1505_v11 = vld [vmem:[%s1962_s1 + $0xe8] sm:$0xff] }
   0x5   :  { %900 = vmatpush.bf16.msra.mxu3 %v1507_v3  ;;  %v1480_v12 = vld [vmem:[%s1962_s1 + $0x20] sm:$0xff]  ;;  %v1479_v16 = vld [vmem:[%s1962_s1 + $0x18] sm:$0xff]  ;;  %v1478_v20 = vld [vmem:[%s1962_s1 + $0x10] sm:$0xff] }
   0x6   :  { %859 = vmatpush.bf16.msra.mxu0 %v1482_v4  ;;  %v1488_v13 = vld [vmem:[%s1962_s1 + $0x60] sm:$0xff]  ;;  %v1487_v17 = vld [vmem:[%s1962_s1 + $0x58] sm:$0xff]  ;;  %v1486_v21 = vld [vmem:[%s1962_s1 + $0x50] sm:$0xff] }
   0x7   :  { %873 = vmatpush.bf16.msra.mxu1 %v1490_v5  ;;  %v1496_v14 = vld [vmem:[%s1962_s1 + $0xa0] sm:$0xff]  ;;  %v1495_v18 = vld [vmem:[%s1962_s1 + $0x98] sm:$0xff]  ;;  %v1494_v22 = vld [vmem:[%s1962_s1 + $0x90] sm:$0xff] }
   0x8   :  { %887 = vmatpush.bf16.msra.mxu2 %v1498_v6  ;;  %v1504_v15 = vld [vmem:[%s1962_s1 + $0xe0] sm:$0xff]  ;;  %v1503_v19 = vld [vmem:[%s1962_s1 + $0xd8] sm:$0xff]  ;;  %v1502_v23 = vld [vmem:[%s1962_s1 + $0xd0] sm:$0xff] }
   0x9   :  { %901 = vmatpush.bf16.msra.mxu3 %v1506_v7  ;;  %v1477_v24 = vld [vmem:[%s1962_s1 + $0x8] sm:$0xff]  ;;  %v1476_v28 = vld [vmem:[%s1962_s1] sm:$0xff]  ;;  %v1515_v32 = vld [vmem:[%s1962_s1 + $0x138] sm:$0xff] }
   0xa   :  { %860 = vmatpush.bf16.msra.mxu0 %v1481_v8  ;;  %v1485_v25 = vld [vmem:[%s1962_s1 + $0x48] sm:$0xff]  ;;  %v1484_v29 = vld [vmem:[%s1962_s1 + $0x40] sm:$0xff]  ;;  %v1523_v33 = vld [vmem:[%s1962_s1 + $0x178] sm:$0xff] }
   0xb   :  { %874 = vmatpush.bf16.msra.mxu1 %v1489_v9  ;;  %v1493_v26 = vld [vmem:[%s1962_s1 + $0x88] sm:$0xff]  ;;  %v1492_v30 = vld [vmem:[%s1962_s1 + $0x80] sm:$0xff]  ;;  %v1470_v35 = vld [vmem:[%s1964_s0 + $0x2c] sm:$0xf0] }
   0xc   :  { %888 = vmatpush.bf16.msra.mxu2 %v1497_v10  ;;  %v1501_v27 = vld [vmem:[%s1962_s1 + $0xc8] sm:$0xff]  ;;  %v1500_v31 = vld [vmem:[%s1962_s1 + $0xc0] sm:$0xff]  ;;  %v1471_v37 = vld [vmem:[%s1964_s0 + $0x34] sm:$0xf0] }
   0xd   :  { %902 = vmatpush.bf16.msra.mxu3 %v1505_v11  ;;  %v1034_v34 = vld [vmem:[%s1964_s0] sm:$0xf]  ;;  %v1042_v36 = vld [vmem:[%s1964_s0 + $0x8] sm:$0xf]  ;;  %v1464_v38 = vld [vmem:[%s1964_s0 + $0x4] sm:$0xf] }
   0xe   :  { %861 = vmatpush.bf16.msra.mxu0 %v1480_v12  ;;  %v1036_v39 = vld [vmem:[%s1964_s0 + $0x30] sm:$0xf0]  ;;  %v1465_v40 = vld [vmem:[%s1964_s0 + $0xc] sm:$0xf]  ;;  %v1044_v41 = vld [vmem:[%s1964_s0 + $0x38] sm:$0xf0]  ;;  %v1035_v44 = vor.u32 %v1470_v35, %v1034_v34  ;;  %v1043_v45 = vor.u32 %v1471_v37, %v1042_v36 }
   0xf   :  { %875 = vmatpush.bf16.msra.mxu1 %v1488_v13  ;;  %v1531_v42 = vld [vmem:[%s1962_s1 + $0x1b8] sm:$0xff]  ;;  %v1039_v46 = vor.u32 %v1464_v38, %v1036_v39  ;;  %v1047_v47 = vor.u32 %v1465_v40, %v1044_v41  ;;  %v1514_v48 = vld [vmem:[%s1962_s1 + $0x130] sm:$0xff]  ;;  %v1513_v52 = vld [vmem:[%s1962_s1 + $0x128] sm:$0xff] }
  0x10   :  { %889 = vmatpush.bf16.msra.mxu2 %v1496_v14  ;;  %v1539_v43 = vld [vmem:[%s1962_s1 + $0x1f8] sm:$0xff]  ;;  %v1522_v49 = vld [vmem:[%s1962_s1 + $0x170] sm:$0xff]  ;;  %v1521_v53 = vld [vmem:[%s1962_s1 + $0x168] sm:$0xff] }
  0x11   :  { %903 = vmatpush.bf16.msra.mxu3 %v1504_v15  ;;  %v1530_v50 = vld [vmem:[%s1962_s1 + $0x1b0] sm:$0xff]  ;;  %v1529_v54 = vld [vmem:[%s1962_s1 + $0x1a8] sm:$0xff]  ;;  %v1512_v56 = vld [vmem:[%s1962_s1 + $0x120] sm:$0xff] }
  0x12   :  { %862 = vmatpush.bf16.msra.mxu0 %v1479_v16  ;;  %v1538_v51 = vld [vmem:[%s1962_s1 + $0x1f0] sm:$0xff]  ;;  %v1537_v55 = vld [vmem:[%s1962_s1 + $0x1e8] sm:$0xff]  ;;  %v1520_v57 = vld [vmem:[%s1962_s1 + $0x160] sm:$0xff] }
  0x13   :  { %876 = vmatpush.bf16.msra.mxu1 %v1487_v17  ;;  %v1528_v58 = vld [vmem:[%s1962_s1 + $0x1a0] sm:$0xff]  ;;  %v1511_v60 = vld [vmem:[%s1962_s1 + $0x118] sm:$0xff]  ;;  %v1510_v0 = vld [vmem:[%s1962_s1 + $0x110] sm:$0xff] }
  0x14   :  { %890 = vmatpush.bf16.msra.mxu2 %v1495_v18  ;;  %v1536_v59 = vld [vmem:[%s1962_s1 + $0x1e0] sm:$0xff]  ;;  %v1519_v61 = vld [vmem:[%s1962_s1 + $0x158] sm:$0xff]  ;;  %v1518_v1 = vld [vmem:[%s1962_s1 + $0x150] sm:$0xff] }
  0x15   :  { %904 = vmatpush.bf16.msra.mxu3 %v1503_v19  ;;  %v1527_v62 = vld [vmem:[%s1962_s1 + $0x198] sm:$0xff]  ;;  %v1526_v2 = vld [vmem:[%s1962_s1 + $0x190] sm:$0xff]  ;;  %v1509_v4 = vld [vmem:[%s1962_s1 + $0x108] sm:$0xff] }
  0x16   :  { %863 = vmatpush.bf16.msra.mxu0 %v1478_v20  ;;  %v1535_v63 = vld [vmem:[%s1962_s1 + $0x1d8] sm:$0xff]  ;;  %v1534_v3 = vld [vmem:[%s1962_s1 + $0x1d0] sm:$0xff]  ;;  %v1517_v5 = vld [vmem:[%s1962_s1 + $0x148] sm:$0xff] }
  0x17   :  { %877 = vmatpush.bf16.msra.mxu1 %v1486_v21  ;;  %v1525_v6 = vld [vmem:[%s1962_s1 + $0x188] sm:$0xff]  ;;  %v1508_v8 = vld [vmem:[%s1962_s1 + $0x100] sm:$0xff]  ;;  %v1547_v12 = vld [vmem:[%s1962_s1 + $0x238] sm:$0xff] }
  0x18   :  { %891 = vmatpush.bf16.msra.mxu2 %v1494_v22  ;;  %v1533_v7 = vld [vmem:[%s1962_s1 + $0x1c8] sm:$0xff]  ;;  %v1516_v9 = vld [vmem:[%s1962_s1 + $0x140] sm:$0xff]  ;;  %v1555_v13 = vld [vmem:[%s1962_s1 + $0x278] sm:$0xff] }
  0x19   :  { %905 = vmatpush.bf16.msra.mxu3 %v1502_v23  ;;  %v1524_v10 = vld [vmem:[%s1962_s1 + $0x180] sm:$0xff]  ;;  %v1050_v14 = vld [vmem:[%s1964_s0 + $0x10] sm:$0xf]  ;;  %v1058_v16 = vld [vmem:[%s1964_s0 + $0x18] sm:$0xf] }
  0x1a   :  { %864 = vmatpush.bf16.msra.mxu0 %v1477_v24  ;;  %v1532_v11 = vld [vmem:[%s1962_s1 + $0x1c0] sm:$0xff]  ;;  %v1473_v17 = vld [vmem:[%s1964_s0 + $0x44] sm:$0xf0]  ;;  %v1466_v18 = vld [vmem:[%s1964_s0 + $0x14] sm:$0xf] }
  0x1b   :  { %878 = vmatpush.bf16.msra.mxu1 %v1485_v25  ;;  %v1472_v15 = vld [vmem:[%s1964_s0 + $0x3c] sm:$0xf0]  ;;  %v1052_v19 = vld [vmem:[%s1964_s0 + $0x40] sm:$0xf0]  ;;  %v1467_v20 = vld [vmem:[%s1964_s0 + $0x1c] sm:$0xf]  ;;  %v1059_v25 = vor.u32 %v1473_v17, %v1058_v16 }
  0x1c   :  { %892 = vmatpush.bf16.msra.mxu2 %v1493_v26  ;;  %v1060_v21 = vld [vmem:[%s1964_s0 + $0x48] sm:$0xf0]  ;;  %v1563_v22 = vld [vmem:[%s1962_s1 + $0x2b8] sm:$0xff]  ;;  %v1051_v24 = vor.u32 %v1472_v15, %v1050_v14  ;;  %v1055_v26 = vor.u32 %v1466_v18, %v1052_v19  ;;  %v1544_v36 = vld [vmem:[%s1962_s1 + $0x220] sm:$0xff] }
  0x1d   :  { %906 = vmatpush.bf16.msra.mxu3 %v1501_v27  ;;  %v1571_v23 = vld [vmem:[%s1962_s1 + $0x2f8] sm:$0xff]  ;;  %v1063_v27 = vor.u32 %v1467_v20, %v1060_v21  ;;  %v1561_v34 = vld [vmem:[%s1962_s1 + $0x2a8] sm:$0xff]  ;;  %v1552_v37 = vld [vmem:[%s1962_s1 + $0x260] sm:$0xff] }
  0x1e   :  { %865 = vmatpush.bf16.msra.mxu0 %v1476_v28  ;;  %v1546_v28 = vld [vmem:[%s1962_s1 + $0x230] sm:$0xff]  ;;  %v1569_v35 = vld [vmem:[%s1962_s1 + $0x2e8] sm:$0xff]  ;;  %v1560_v38 = vld [vmem:[%s1962_s1 + $0x2a0] sm:$0xff] }
  0x1f   :  { %879 = vmatpush.bf16.msra.mxu1 %v1484_v29  ;;  %v1554_v29 = vld [vmem:[%s1962_s1 + $0x270] sm:$0xff]  ;;  %v1568_v39 = vld [vmem:[%s1962_s1 + $0x2e0] sm:$0xff]  ;;  %v1543_v40 = vld [vmem:[%s1962_s1 + $0x218] sm:$0xff] }
  0x20   :  { %893 = vmatpush.bf16.msra.mxu2 %v1492_v30  ;;  %v1562_v30 = vld [vmem:[%s1962_s1 + $0x2b0] sm:$0xff]  ;;  %v1551_v41 = vld [vmem:[%s1962_s1 + $0x258] sm:$0xff] }
  0x21   :  { %907 = vmatpush.bf16.msra.mxu3 %v1500_v31  ;;  %866 = vmatmul.bf16.vlgmr.msra.gmra.mxu0 %v1035_v44  ;;  %v1570_v31 = vld [vmem:[%s1962_s1 + $0x2f0] sm:$0xff] }
  0x22   :  { %914 = vmatpush.bf16.msrb.mxu0 %v1515_v32  ;;  %880 = vmatmul.bf16.vlgmr.msra.gmra.mxu1 %v1039_v46  ;;  %v1545_v32 = vld [vmem:[%s1962_s1 + $0x228] sm:$0xff]  ;;  %v1542_v44 = vld [vmem:[%s1962_s1 + $0x210] sm:$0xff] }
  0x23   :  { %928 = vmatpush.bf16.msrb.mxu1 %v1523_v33  ;;  %894 = vmatmul.bf16.vlgmr.msra.gmra.mxu2 %v1043_v45  ;;  %v1553_v33 = vld [vmem:[%s1962_s1 + $0x268] sm:$0xff]  ;;  %v1550_v45 = vld [vmem:[%s1962_s1 + $0x250] sm:$0xff] }
  0x24   :  { %942 = vmatpush.bf16.msrb.mxu2 %v1531_v42  ;;  %908 = vmatmul.bf16.vlgmr.msra.gmra.mxu3 %v1047_v47  ;;  %v1559_v42 = vld [vmem:[%s1962_s1 + $0x298] sm:$0xff]  ;;  %v1558_v46 = vld [vmem:[%s1962_s1 + $0x290] sm:$0xff] }
  0x25   :  { %956 = vmatpush.bf16.msrb.mxu3 %v1539_v43  ;;  %v1567_v43 = vld [vmem:[%s1962_s1 + $0x2d8] sm:$0xff]  ;;  %v1566_v47 = vld [vmem:[%s1962_s1 + $0x2d0] sm:$0xff] }
  0x26   :  { %915 = vmatpush.bf16.msrb.mxu0 %v1514_v48  ;;  %v1541_v48 = vld [vmem:[%s1962_s1 + $0x208] sm:$0xff] }
  0x27   :  { %929 = vmatpush.bf16.msrb.mxu1 %v1522_v49  ;;  %v1549_v49 = vld [vmem:[%s1962_s1 + $0x248] sm:$0xff] }
  0x28   :  { %943 = vmatpush.bf16.msrb.mxu2 %v1530_v50  ;;  %v1557_v50 = vld [vmem:[%s1962_s1 + $0x288] sm:$0xff] }
  0x29   :  { %957 = vmatpush.bf16.msrb.mxu3 %v1538_v51  ;;  %v1565_v51 = vld [vmem:[%s1962_s1 + $0x2c8] sm:$0xff] }
  0x2a   :  { %916 = vmatpush.bf16.msrb.mxu0 %v1513_v52  ;;  %v1540_v52 = vld [vmem:[%s1962_s1 + $0x200] sm:$0xff] }
  0x2b   :  { %930 = vmatpush.bf16.msrb.mxu1 %v1521_v53  ;;  %v1548_v53 = vld [vmem:[%s1962_s1 + $0x240] sm:$0xff] }
  0x2c   :  { %944 = vmatpush.bf16.msrb.mxu2 %v1529_v54  ;;  %v1556_v54 = vld [vmem:[%s1962_s1 + $0x280] sm:$0xff] }
  0x2d   :  { %958 = vmatpush.bf16.msrb.mxu3 %v1537_v55  ;;  %v1564_v55 = vld [vmem:[%s1962_s1 + $0x2c0] sm:$0xff] }
  0x2e   :  { %917 = vmatpush.bf16.msrb.mxu0 %v1512_v56  ;;  %v1066_v56 = vld [vmem:[%s1964_s0 + $0x20] sm:$0xf] }
  0x2f   :  { %931 = vmatpush.bf16.msrb.mxu1 %v1520_v57  ;;  %v1474_v57 = vld [vmem:[%s1964_s0 + $0x4c] sm:$0xf0] }
  0x30   :  { %945 = vmatpush.bf16.msrb.mxu2 %v1528_v58  ;;  %v1468_v58 = vld [vmem:[%s1964_s0 + $0x24] sm:$0xf] }
  0x31   :  { %959 = vmatpush.bf16.msrb.mxu3 %v1536_v59  ;;  %v1068_v59 = vld [vmem:[%s1964_s0 + $0x50] sm:$0xf0] }
  0x32   :  { %918 = vmatpush.bf16.msrb.mxu0 %v1511_v60  ;;  %v1074_v60 = vld [vmem:[%s1964_s0 + $0x28] sm:$0xf] }
  0x33   :  { %932 = vmatpush.bf16.msrb.mxu1 %v1519_v61  ;;  %v1475_v61 = vld [vmem:[%s1964_s0 + $0x54] sm:$0xf0] }
  0x34   :  { %946 = vmatpush.bf16.msrb.mxu2 %v1527_v62  ;;  %v1469_v62 = vld [vmem:[%s1964_s0 + $0x2c] sm:$0xf] }
  0x35   :  { %960 = vmatpush.bf16.msrb.mxu3 %v1535_v63  ;;  %v1076_v63 = vld [vmem:[%s1964_s0 + $0x58] sm:$0xf0] }
  0x36   :  { %919 = vmatpush.bf16.msrb.mxu0 %v1510_v0  ;;  %v1067_v0 = vor.u32 %v1474_v57, %v1066_v56 }
  0x37   :  { %933 = vmatpush.bf16.msrb.mxu1 %v1518_v1  ;;  %v1071_v1 = vor.u32 %v1468_v58, %v1068_v59 }
  0x38   :  { %947 = vmatpush.bf16.msrb.mxu2 %v1526_v2  ;;  %v1075_v2 = vor.u32 %v1475_v61, %v1074_v60 }
  0x39   :  { %961 = vmatpush.bf16.msrb.mxu3 %v1534_v3  ;;  %v1079_v3 = vor.u32 %v1469_v62, %v1076_v63 }
  0x3a   :  { %920 = vmatpush.bf16.msrb.mxu0 %v1509_v4 }
  0x3b   :  { %934 = vmatpush.bf16.msrb.mxu1 %v1517_v5 }
  0x3c   :  { %948 = vmatpush.bf16.msrb.mxu2 %v1525_v6  ;;  %v1572_v6 = vld [vmem:[%s1963_s2] ss:$0 sm:$0xff] }
  0x3d   :  { %962 = vmatpush.bf16.msrb.mxu3 %v1533_v7 }
  0x3e   :  { %921 = vmatpush.bf16.msrb.mxu0 %v1508_v8 }
  0x3f   :  { %935 = vmatpush.bf16.msrb.mxu1 %v1516_v9 }
  0x40   :  { %949 = vmatpush.bf16.msrb.mxu2 %v1524_v10 }
  0x41   :  { %963 = vmatpush.bf16.msrb.mxu3 %v1532_v11  ;;  %922 = vmatmul.bf16.vlgmr.msrb.gmra.mxu0 %v1051_v24 }
  0x42   :  { %970 = vmatpush.bf16.msra.mxu0 %v1547_v12  ;;  %936 = vmatmul.bf16.vlgmr.msrb.gmra.mxu1 %v1055_v26 }
  0x43   :  { %984 = vmatpush.bf16.msra.mxu1 %v1555_v13  ;;  %950 = vmatmul.bf16.vlgmr.msrb.gmra.mxu2 %v1059_v25 }
  0x44   :  { %998 = vmatpush.bf16.msra.mxu2 %v1563_v22  ;;  %964 = vmatmul.bf16.vlgmr.msrb.gmra.mxu3 %v1063_v27 }
  0x45   :  { %1012 = vmatpush.bf16.msra.mxu3 %v1571_v23 }
  0x46   :  { %971 = vmatpush.bf16.msra.mxu0 %v1546_v28 }
  0x47   :  { %985 = vmatpush.bf16.msra.mxu1 %v1554_v29 }
  0x48   :  { %999 = vmatpush.bf16.msra.mxu2 %v1562_v30 }
  0x49   :  { %1013 = vmatpush.bf16.msra.mxu3 %v1570_v31 }
  0x4a   :  { %972 = vmatpush.bf16.msra.mxu0 %v1545_v32 }
  0x4b   :  { %986 = vmatpush.bf16.msra.mxu1 %v1553_v33 }
  0x4c   :  { %1000 = vmatpush.bf16.msra.mxu2 %v1561_v34 }
  0x4d   :  { %1014 = vmatpush.bf16.msra.mxu3 %v1569_v35 }
  0x4e   :  { %973 = vmatpush.bf16.msra.mxu0 %v1544_v36 }
  0x4f   :  { %987 = vmatpush.bf16.msra.mxu1 %v1552_v37 }
  0x50   :  { %1001 = vmatpush.bf16.msra.mxu2 %v1560_v38 }
  0x51   :  { %1015 = vmatpush.bf16.msra.mxu3 %v1568_v39 }
  0x52   :  { %974 = vmatpush.bf16.msra.mxu0 %v1543_v40 }
  0x53   :  { %988 = vmatpush.bf16.msra.mxu1 %v1551_v41 }
  0x54   :  { %1002 = vmatpush.bf16.msra.mxu2 %v1559_v42 }
  0x55   :  { %1016 = vmatpush.bf16.msra.mxu3 %v1567_v43 }
  0x56   :  { %975 = vmatpush.bf16.msra.mxu0 %v1542_v44 }
  0x57   :  { %989 = vmatpush.bf16.msra.mxu1 %v1550_v45 }
  0x58   :  { %1003 = vmatpush.bf16.msra.mxu2 %v1558_v46 }
  0x59   :  { %1017 = vmatpush.bf16.msra.mxu3 %v1566_v47 }
  0x5a   :  { %976 = vmatpush.bf16.msra.mxu0 %v1541_v48 }
  0x5b   :  { %990 = vmatpush.bf16.msra.mxu1 %v1549_v49 }
  0x5c   :  { %1004 = vmatpush.bf16.msra.mxu2 %v1557_v50 }
  0x5d   :  { %1018 = vmatpush.bf16.msra.mxu3 %v1565_v51 }
  0x5e   :  { %977 = vmatpush.bf16.msra.mxu0 %v1540_v52 }
  0x5f   :  { %991 = vmatpush.bf16.msra.mxu1 %v1548_v53 }
  0x60   :  { %1005 = vmatpush.bf16.msra.mxu2 %v1556_v54 }
  0x61   :  { %1019 = vmatpush.bf16.msra.mxu3 %v1564_v55  ;;  %978 = vmatmul.bf16.vlgmr.msra.gmra.mxu0 %v1067_v0 }
  0x62   :  { %992 = vmatmul.bf16.vlgmr.msra.gmra.mxu1 %v1071_v1 }
  0x63   :  { %1006 = vmatmul.bf16.vlgmr.msra.gmra.mxu2 %v1075_v2 }
  0x64   :  { %1020 = vmatmul.bf16.vlgmr.msra.gmra.mxu3 %v1079_v3 }
  0x9e   :  { %v867_v4 = vpop.f32.mrf.mxu0 }
  0x9f   :  { %v881_v5 = vpop.f32.mrf.mxu1  ;;  %v868_v9 = vadd.f32 %v1572_v6, %v867_v4 }
  0xa1   :  { %v882_v12 = vadd.f32 %v881_v5, %v868_v9 }
  0xa6   :  { %v895_v7 = vpop.f32.mrf.mxu2  ;;  %v869_v10 = vpop.f32.mrf.mxu0 }
  0xa7   :  { %v909_v8 = vpop.f32.mrf.mxu3  ;;  %v883_v11 = vpop.f32.mrf.mxu1  ;;  %v896_v15 = vadd.f32 %v895_v7, %v882_v12  ;;  %v870_v16 = vadd.f32 %v1572_v6, %v869_v10 }
  0xa9   :  { %v910_v18 = vadd.f32 %v909_v8, %v896_v15  ;;  %v884_v20 = vadd.f32 %v883_v11, %v870_v16 }
  0xae   :  { %v897_v13 = vpop.f32.mrf.mxu2 }
  0xaf   :  { %v911_v14 = vpop.f32.mrf.mxu3  ;;  %v898_v24 = vadd.f32 %v897_v13, %v884_v20 }
  0xb1   :  { %v912_v27 = vadd.f32 %v911_v14, %v898_v24 }
  0xbe   :  { %v923_v17 = vpop.f32.mrf.mxu0 }
  0xbf   :  { %v937_v19 = vpop.f32.mrf.mxu1  ;;  %v924_v21 = vadd.f32 %v923_v17, %v910_v18 }
  0xc1   :  { %v938_v25 = vadd.f32 %v937_v19, %v924_v21 }
  0xc6   :  { %v951_v22 = vpop.f32.mrf.mxu2  ;;  %v925_v26 = vpop.f32.mrf.mxu0 }
  0xc7   :  { %v965_v23 = vpop.f32.mrf.mxu3  ;;  %v939_v28 = vpop.f32.mrf.mxu1  ;;  %v952_v29 = vadd.f32 %v951_v22, %v938_v25  ;;  %v926_v30 = vadd.f32 %v925_v26, %v912_v27 }
  0xc9   :  { %v966_v33 = vadd.f32 %v965_v23, %v952_v29  ;;  %v940_v35 = vadd.f32 %v939_v28, %v926_v30 }
  0xce   :  { %v953_v31 = vpop.f32.mrf.mxu2 }
  0xcf   :  { %v967_v32 = vpop.f32.mrf.mxu3  ;;  %v954_v38 = vadd.f32 %v953_v31, %v940_v35 }
  0xd1   :  { %v968_v42 = vadd.f32 %v967_v32, %v954_v38 }
  0xde   :  { %v979_v34 = vpop.f32.mrf.mxu0 }
  0xdf   :  { %v980_v36 = vadd.f32 %v979_v34, %v966_v33  ;;  %v993_v37 = vpop.f32.mrf.mxu1 }
  0xe1   :  { %v994_v39 = vadd.f32 %v993_v37, %v980_v36 }
  0xe6   :  { %v1007_v40 = vpop.f32.mrf.mxu2  ;;  %v981_v44 = vpop.f32.mrf.mxu0 }
  0xe7   :  { %v1021_v41 = vpop.f32.mrf.mxu3  ;;  %v1008_v43 = vadd.f32 %v1007_v40, %v994_v39  ;;  %v982_v46 = vadd.f32 %v981_v44, %v968_v42  ;;  %v995_v47 = vpop.f32.mrf.mxu1 }
  0xe9   :  { %v1022_v45 = vadd.f32 %v1021_v41, %v1008_v43  ;;  %v996_v48 = vadd.f32 %v995_v47, %v982_v46 }
  0xeb   :  { %1026 = vst [vmem:[%s1965_s3] sm:$0xff] %v1022_v45 }
  0xee   :  { %v1009_v49 = vpop.f32.mrf.mxu2 }
  0xef   :  { %v1010_v50 = vadd.f32 %v1009_v49, %v996_v48  ;;  %v1023_v51 = vpop.f32.mrf.mxu3 }
  0xf1   :  { %v1024_v52 = vadd.f32 %v1023_v51, %v1010_v50 }
  0xf3   :  { %1027 = vst [vmem:[%s1965_s3 + $0x8] sm:$0xff] %v1024_v52 }

// kernel: vjepa_feature_extractor.6
= control target key start
LH: loop header
LB: loop body
LE: loop exit
PB: predicated region body
PF: predicated region fallthrough
CT: control target
= control target key end

     0   :  { %s365_s9 = smov 0   ;;  %s385_s0 = inlined_call_operand.vmem [shape: f32[2,2,512], index: 0, kind: input, shape index: {}]   ;;  %s386_s1 = inlined_call_operand.vmem [shape: f32[4,2], index: 1, kind: input, shape index: {}]   ;;  %s387_s2 = inlined_call_operand.vmem [shape: f32[2,4,512], index: 2, kind: output, shape index: {}]  }
   0x1 LB: > { %s313_s10 = sadd.s32 4294967295, %s348_s9   ;;  %p317_p0 = scmp.ge.s32.totalorder %s348_s9, 1  ;;  %s348_s9 = sphi %s365_s9, %s12_s9  }
   0x2   : > { %p112_p1 = scmp.lt.s32.totalorder %s348_s9, 3 }
   0x4   : > { %p113_p2 = pnand %p317_p0, %p112_p1 }
   0x5   : > { %p134_p3 = scmp.lt.s32.totalorder (!%p113_p2), %s313_s10, 1 }
   0x6   : > { %116 = sbr.rel (%p113_p2) target bundleno = 160 (0xa0), region = 28 }
   0xb   : > { %s389_s10 = smov (!%p134_p3, %s313_s10), 1  ;;  %vm156_vm0 = vcmask 1041408   ;;  %v144_v1 = vld [vmem:[%s386_s1] sm:$0xf]  ;;  %vm152_vm1 = vcmask 15360   ;;  %vm251_vm2 = vcmask 1043456  }
   0xc   : > { %s332_s11 = sshll.u32 %s389_s10, 3  ;;  %s333_s17 = sshll.u32 %s389_s10, 4 }
   0xd   : > { %s138_s14 = scalar_lea.vmem %s385_s0, %s332_s11  ;;  %s143_s20 = scalar_lea.vmem %s387_s2, %s333_s17 }
   0xe   : > { %v145_v0 = vld [vmem:[%s138_s14] sm:$0xff] }
   0xf   : > { %147 = vst [vmem:[#allocation1] ss:$4 sm:$0xff] %v145_v0 }
  0x16   : > { %v151_v2 = vld.sshfl [vmem:[#allocation1 + $0x18] sm:$0xff pattern:$0x73625140]  ;;  %v150_v3 = vld.sshfl [vmem:[#allocation1 + $0x10] sm:$0xff pattern:$0x73625140] }
  0x17   : > { %328 = vmatpush.msk.msra.mxu3 %vm156_vm0, %v151_v2  ;;  %326 = vmatpush.msk.msra.mxu2 %vm156_vm0, %v150_v3  ;;  %v149_v4 = vld.sshfl [vmem:[#allocation1 + $0x8] sm:$0xff pattern:$0x73625140]  ;;  %v148_v5 = vld.sshfl [vmem:[#allocation1] sm:$0xff pattern:$0x73625140] }
  0x18   : > { %329 = vmatmul.msk.f32.vlgmr.msra.gmra.mxu3 %vm152_vm1, %v144_v1  ;;  %327 = vmatmul.msk.f32.vlgmr.msra.gmra.mxu2 %vm152_vm1, %v144_v1 }
  0x19   : > { %324 = vmatpush.msk.msra.mxu1 %vm156_vm0, %v149_v4  ;;  %322 = vmatpush.msk.msra.mxu0 %vm156_vm0, %v148_v5 }
  0x1a   : > { %325 = vmatmul.msk.f32.vlgmr.msra.gmra.mxu1 %vm152_vm1, %v144_v1  ;;  %323 = vmatmul.msk.f32.vlgmr.msra.gmra.mxu0 %vm152_vm1, %v144_v1 }
  0x97   : > { %v202_v6 = vpop.f32.mrf.mxu1  ;;  %v182_v7 = vpop.f32.mrf.mxu0 }
  0x98   : > { %v249_v8 = vrot.slane %v202_v6, 4 }
  0x9a   : > { %v252_v9 = vsel %vm251_vm2, %v182_v7, %v249_v8 }
  0x9b   : > { %v242_v10 = vpop.f32.mrf.mxu3  ;;  %256 = vst [vmem:[%s143_s20] sm:$0xff] %v252_v9  ;;  %v222_v11 = vpop.f32.mrf.mxu2 }
  0x9c   : > { %v250_v12 = vrot.slane %v242_v10, 4 }
  0x9e   : > { %v253_v13 = vsel %vm251_vm2, %v222_v11, %v250_v12 }
  0x9f   : > { %257 = vst [vmem:[%s143_s20 + $0x8] sm:$0xff] %v253_v13 }
  0xa0 PF: > { %s12_s9 = sadd.s32 1, %s348_s9  }
  0xa1   : > { %p9_p4 = scmp.ge.s32.totalorder %s12_s9, 4  }
  0xa3   :  { %11 = sbr.rel (!%p9_p4) target bundleno = 1 (0x1), region = 58 }

// kernel: vjepa_feature_extractor.5
= control target key start
LH: loop header
LB: loop body
LE: loop exit
PB: predicated region body
PF: predicated region fallthrough
CT: control target
= control target key end

     0   :  { %s2871_s18 = smov 0   ;;  %s2873_s19 = smov 0   ;;  %s3260_s0 = inlined_call_operand.vmem [shape: f32[2,8,128], index: 0, kind: input, shape index: {}, may-alias: {0,15}]   ;;  %s3261_s1 = inlined_call_operand.vmem [shape: f32[2,1,128], index: 1, kind: input, shape index: {}]   ;;  %s3262_s2 = inlined_call_operand.vmem [shape: f32[2,1,128], index: 2, kind: input, shape index: {}]   ;;  %s3263_s3 = inlined_call_operand.vmem [shape: bf16[2,128,384], index: 3, kind: input, shape index: {}]   ;;  %s3264_s4 = inlined_call_operand.vmem [shape: f32[2,1,384], index: 4, kind: input, shape index: {}]   ;;  %s3265_s5 = inlined_call_operand.vmem [shape: bf16[2,128,128], index: 5, kind: input, shape index: {}]   ;;  %s3266_s6 = inlined_call_operand.vmem [shape: f32[2,1,128], index: 6, kind: input, shape index: {}]   ;;  %s3267_s7 = inlined_call_operand.vmem [shape: f32[2,1,128], index: 7, kind: input, shape index: {}]   ;;  %s3268_s8 = inlined_call_operand.vmem [shape: f32[2,1,128], index: 8, kind: input, shape index: {}]   ;;  %s3269_s9 = inlined_call_operand.vmem [shape: bf16[2,128,512], index: 9, kind: input, shape index: {}]   ;;  %s3270_s10 = inlined_call_operand.vmem [shape: f32[2,1,512], index: 10, kind: input, shape index: {}]   ;;  %s3271_s11 = inlined_call_operand.vmem [shape: bf16[2,512,128], index: 11, kind: input, shape index: {}]   ;;  %s3272_s12 = inlined_call_operand.vmem [shape: f32[2,1,128], index: 12, kind: input, shape index: {}]   ;;  %s3273_s13 = inlined_call_operand.vmem [shape: f32[1,128], index: 13, kind: input, shape index: {}]   ;;  %s3274_s14 = inlined_call_operand.vmem [shape: f32[1,128], index: 14, kind: input, shape index: {}]   ;;  %s3275_s15 = inlined_call_operand.vmem [shape: f32[2,8,128], index: 15, kind: output, shape index: {}, may-alias: {0,15}]  }
   0x1   :  { %3280 = sst [smem:[#allocation8_spill]] %s3260_s0  ;;  %s2875_s20 = smov 0  }
   0x2   :  { %3281 = sst [smem:[#allocation9_spill]] %s3262_s2  ;;  %s2877_s21 = smov 0  }
   0x3   :  { %3282 = sst [smem:[#allocation10_spill]] %s3263_s3  ;;  %s2879_s22 = smov 0  }
   0x4   :  { %3283 = sst [smem:[#allocation11_spill]] %s3264_s4 }
   0x5   :  { %3284 = sst [smem:[#allocation12_spill]] %s3265_s5 }
   0x6   :  { %3285 = sst [smem:[#allocation13_spill]] %s3273_s13 }
   0x7   :  { %3286 = sst [smem:[#allocation14_spill]] %s3274_s14 }
   0x8   :  { %3287 = sst [smem:[#allocation15_spill]] %s3275_s15 }
   0x9 LB: > { %3288 = sst [smem:[#allocation2_spill]] %s2769_s18  ;;  %s34_s23 = sadd.s32 1, %s2777_s20  ;;  %s2785_s22 = sphi %s2879_s22, %s25_s22   ;;  %s2781_s21 = sphi %s2877_s21, %s3315_s21   ;;  %s2777_s20 = sphi %s2875_s20, %s3314_s20   ;;  %s2773_s19 = sphi %s2873_s19, %s3313_s19   ;;  %s2769_s18 = sphi %s2871_s18, %s3312_s18  }
   0xa   : > { %3289 = sst [smem:[#allocation3_spill]] %s2777_s20  ;;  %s37_s24 = sadd.s32 1, %s2781_s21 }
   0xb   : > { %3290 = sst [smem:[#allocation4_spill]] %s2781_s21  ;;  %p35_p0 = scmp.ge.s32.totalorder %s34_s23, 2 }
   0xc   : > { %3291 = sst [smem:[#allocation5_spill]] %s2785_s22  ;;  %p2154_p1 = scmp.ge.s32.totalorder %s2785_s22, 1 }
   0xd   : > { %p554_p2 = scmp.lt.s32.totalorder %s2785_s22, 5  ;;  %s3317_s23 = smov (%p35_p0, %s34_s23), 0 }
   0xe   : > { %3292 = sst [smem:[#allocation6_spill]] %s3317_s23  ;;  %s3319_s24 = smov (!%p35_p0, %s37_s24), %s2781_s21 }
   0xf   : > { %p555_p3 = pnand %p2154_p1, %p554_p2  ;;  %p39_p4 = scmp.ge.s32.totalorder %s3319_s24, 2 }
  0x10   : > { %p646_p5 = scmp.lt.s32.totalorder (!%p555_p3), %s2773_s19, 1  ;;  %p650_p6 = scmp.lt.s32.totalorder (!%p555_p3), %s2769_s18, 1 }
  0x11   : > { %s3321_s24 = smov (%p39_p4, %s3319_s24), 0  ;;  %558 = sbr.rel (%p555_p3) target bundleno = 2480 (0x9b0), region = 80 }
  0x12   : > { %3293 = sst [smem:[#allocation7_spill]] %s3321_s24 }
  0x13   : > { %s3294_s0 = sld [smem:[#allocation8_spill]] (!%p555_p3) }
  0x14   : > { %s3296_s3 = sld [smem:[#allocation10_spill]] (!%p555_p3) }
  0x15   : > { %s3297_s5 = sld [smem:[#allocation12_spill]] (!%p555_p3) }
  0x16   : > { %s3323_s19 = smov (!%p646_p5, %s2773_s19), 1  ;;  %s3298_s4 = sld [smem:[#allocation11_spill]] }
  0x17   : > { %s2905_s25 = scalar_select %p650_p6, %s2769_s18, 1 }
  0x18   : > { %s2155_s26 = sshll.u32 %s3323_s19, 3  ;;  %s3300_s27 = sld [smem:[#allocation2_spill]] }
  0x19   : > { %s649_s29 = scalar_lea.vmem %s3294_s0, %s2155_s26  ;;  %s2661_s20 = smul.u32 192, %s2905_s25 }
  0x1a   : > { %s2662_s22 = smul.u32 3, %s2905_s25  ;;  %s2562_s14 = sshll.u32 %s2905_s25, 6 }
  0x1b   : > { %s2924_s19 = scalar_lea.vmem %s3296_s3, %s2661_s20  ;;  %s2929_s28 = scalar_lea.vmem %s3297_s5, %s2562_s14 }
  0x1c   : > { %s2934_s17 = scalar_lea.vmem %s3298_s4, %s2662_s22  ;;  %s2563_s15 = sshll.u32 %s2905_s25, 8 }
  0x1d   : > { %s2161_s14 = sshll.u32 %s2905_s25, 2  ;;  %s2953_s30 = scalar_lea.vmem %s3269_s9, %s2563_s15 }
  0x1e   : > { %s2958_s23 = scalar_lea.vmem %s3270_s10, %s2161_s14  ;;  %s2963_s0 = scalar_lea.vmem %s3271_s11, %s2563_s15 }
  0x1f   : > { %s695_s20 = scalar_lea.vmem %s3272_s12, %s2905_s25  ;;  %s3299_s4 = sld [smem:[#allocation15_spill]] }
  0x20   : > { %p2165_p7 = scmp.ne.s32.totalorder %s3300_s27, 0 }
  0x22   : > { %704 = sbr.rel (%p2165_p7) target bundleno = 41 (0x29), region = 84 }
  0x25   : > { %s2972_s5 = scalar_lea.vmem %s3299_s4, %s2155_s26 }
  0x27   : > { %v705_v0 = vld [vmem:[%s649_s29] sm:$0xff] }
  0x28   : > { %706 = vst [vmem:[%s2972_s5] sm:$0xff] %v705_v0 }
  0x29 PF: > { %v2787_v2 = vmov 128.0   ;;  %v2252_v3 = vld [vmem:[%s2924_s19 + $0xa8] sm:$0xf]  ;;  %v2587_v4 = vld [vmem:[%s2924_s19 + $0xb0] sm:$0xf0]  ;;  %s3301_s21 = scalar_lea.vmem %s3261_s1, %s2905_s25  ;;  %vm956_vm4 = vcmask 261120   ;;  %s3304_s16 = scalar_lea.vmem %s3266_s6, %s2905_s25 }
  0x2a   : > { %2713 = vrcp.f32 %v2787_v2  ;;  %v2586_v5 = vld [vmem:[%s2924_s19 + $0xac] sm:$0xf]  ;;  %v2253_v6 = vor.u32 %v2587_v4, %v2252_v3  ;;  %v2254_v7 = vld [vmem:[%s2924_s19 + $0xb4] sm:$0xf0]  ;;  %v2260_v8 = vld [vmem:[%s2924_s19 + $0xb0] sm:$0xf]  ;;  %s3305_s2 = scalar_lea.vmem %s3267_s7, %s2905_s25  ;;  %s3306_s3 = scalar_lea.vmem %s3268_s8, %s2905_s25 }
  0x2b   : > { %v2588_v9 = vld [vmem:[%s2924_s19 + $0xb8] sm:$0xf0]  ;;  %v2257_v10 = vor.u32 %v2586_v5, %v2254_v7  ;;  %v2240_v22 = vld [vmem:[%s2924_s19 + $0x90] sm:$0xf]  ;;  %v2583_v24 = vld [vmem:[%s2924_s19 + $0x94] sm:$0xf] }
  0x2c   : > { %v2261_v11 = vor.u32 %v2588_v9, %v2260_v8  ;;  %914 = vmatpush.bf16.msra.mxu0 %v2253_v6  ;;  %v2584_v23 = vld [vmem:[%s2924_s19 + $0x98] sm:$0xf0]  ;;  %v2242_v26 = vld [vmem:[%s2924_s19 + $0x9c] sm:$0xf0]  ;;  %v2248_v27 = vld [vmem:[%s2924_s19 + $0x98] sm:$0xf] }
  0x2d   : > { %927 = vmatpush.bf16.msra.mxu1 %v2257_v10  ;;  %v2241_v25 = vor.u32 %v2584_v23, %v2240_v22  ;;  %v2585_v28 = vld [vmem:[%s2924_s19 + $0xa0] sm:$0xf0]  ;;  %v2245_v29 = vor.u32 %v2583_v24, %v2242_v26  ;;  %v2228_v31 = vld [vmem:[%s2924_s19 + $0x78] sm:$0xf]  ;;  %v2580_v33 = vld [vmem:[%s2924_s19 + $0x7c] sm:$0xf] }
  0x2e   : > { %940 = vmatpush.bf16.msra.mxu2 %v2261_v11  ;;  %v2249_v30 = vor.u32 %v2585_v28, %v2248_v27  ;;  %v2581_v32 = vld [vmem:[%s2924_s19 + $0x80] sm:$0xf0]  ;;  %v2230_v35 = vld [vmem:[%s2924_s19 + $0x84] sm:$0xf0]  ;;  %v2236_v36 = vld [vmem:[%s2924_s19 + $0x80] sm:$0xf] }
  0x2f   : > { %v2977_v1 = vld [vmem:[%s2972_s5] sm:$0xff]  ;;  %v2229_v34 = vor.u32 %v2581_v32, %v2228_v31  ;;  %v2582_v37 = vld [vmem:[%s2924_s19 + $0x88] sm:$0xf0]  ;;  %v2233_v38 = vor.u32 %v2580_v33, %v2230_v35  ;;  %v2218_v44 = vld [vmem:[%s2924_s19 + $0x6c] sm:$0xf0]  ;;  %s2788_s15 = smov 64  }
  0x30   : > { %710 = vadd.xlane.f32.xlu0 %v2977_v1  ;;  %v2714_v12 = vpop.eup %2713  ;;  %915 = vmatpush.bf16.msra.mxu0 %v2241_v25  ;;  %v2237_v39 = vor.u32 %v2582_v37, %v2236_v36  ;;  %v2216_v40 = vld [vmem:[%s2924_s19 + $0x60] sm:$0xf]  ;;  %v2578_v41 = vld [vmem:[%s2924_s19 + $0x68] sm:$0xf0]  ;;  %v2577_v42 = vld [vmem:[%s2924_s19 + $0x64] sm:$0xf] }
  0x31   : > { %v713_v13 = vmul.f32 128.0, %v2714_v12  ;;  %vm717_vm0 = vweird.f32 %v2714_v12  ;;  %928 = vmatpush.bf16.msra.mxu1 %v2245_v29  ;;  %v2217_v43 = vor.u32 %v2578_v41, %v2216_v40  ;;  %v2224_v45 = vld [vmem:[%s2924_s19 + $0x68] sm:$0xf]  ;;  %v2579_v46 = vld [vmem:[%s2924_s19 + $0x70] sm:$0xf0]  ;;  %v2221_v47 = vor.u32 %v2577_v42, %v2218_v44  ;;  %s2789_s14 = smov 96  }
  0x32   : > { %941 = vmatpush.bf16.msra.mxu2 %v2249_v30  ;;  %v2225_v48 = vor.u32 %v2579_v46, %v2224_v45  ;;  %v2204_v49 = vld [vmem:[%s2924_s19 + $0x48] sm:$0xf]  ;;  %v2575_v50 = vld [vmem:[%s2924_s19 + $0x50] sm:$0xf0]  ;;  %v2574_v51 = vld [vmem:[%s2924_s19 + $0x4c] sm:$0xf] }
  0x33   : > { %v714_v14 = vsub.f32 1.0, %v713_v13  ;;  %v2205_v52 = vor.u32 %v2575_v50, %v2204_v49  ;;  %v2206_v53 = vld [vmem:[%s2924_s19 + $0x54] sm:$0xf0]  ;;  %v2212_v54 = vld [vmem:[%s2924_s19 + $0x50] sm:$0xf]  ;;  %vm992_vm5 = vcmask 1043456  }
  0x34   : > { %916 = vmatpush.bf16.msra.mxu0 %v2229_v34  ;;  %v2576_v55 = vld [vmem:[%s2924_s19 + $0x58] sm:$0xf0]  ;;  %v2209_v56 = vor.u32 %v2574_v51, %v2206_v53  ;;  %v2192_v58 = vld [vmem:[%s2924_s19 + $0x30] sm:$0xf]  ;;  %v2571_v60 = vld [vmem:[%s2924_s19 + $0x34] sm:$0xf] }
  0x35   : > { %v715_v15 = vmul.f32 %v2714_v12, %v714_v14  ;;  %929 = vmatpush.bf16.msra.mxu1 %v2233_v38  ;;  %v2213_v57 = vor.u32 %v2576_v55, %v2212_v54  ;;  %v2572_v59 = vld [vmem:[%s2924_s19 + $0x38] sm:$0xf0]  ;;  %v2194_v62 = vld [vmem:[%s2924_s19 + $0x3c] sm:$0xf0]  ;;  %v2200_v63 = vld [vmem:[%s2924_s19 + $0x38] sm:$0xf] }
  0x36   : > { %942 = vmatpush.bf16.msra.mxu2 %v2237_v39  ;;  %v2193_v61 = vor.u32 %v2572_v59, %v2192_v58  ;;  %v2573_v0 = vld [vmem:[%s2924_s19 + $0x40] sm:$0xf0]  ;;  %v2197_v2 = vor.u32 %v2571_v60, %v2194_v62  ;;  %v2180_v4 = vld [vmem:[%s2924_s19 + $0x18] sm:$0xf]  ;;  %v2568_v6 = vld [vmem:[%s2924_s19 + $0x1c] sm:$0xf] }
  0x37   : > { %v716_v16 = vadd.f32 %v2714_v12, %v715_v15  ;;  %v2201_v3 = vor.u32 %v2573_v0, %v2200_v63  ;;  %v2569_v5 = vld [vmem:[%s2924_s19 + $0x20] sm:$0xf0]  ;;  %v2182_v8 = vld [vmem:[%s2924_s19 + $0x24] sm:$0xf0]  ;;  %v2188_v9 = vld [vmem:[%s2924_s19 + $0x20] sm:$0xf] }
  0x38   : > { %917 = vmatpush.bf16.msra.mxu0 %v2217_v43  ;;  %v2181_v7 = vor.u32 %v2569_v5, %v2180_v4  ;;  %v2570_v10 = vld [vmem:[%s2924_s19 + $0x28] sm:$0xf0]  ;;  %v2185_v11 = vor.u32 %v2568_v6, %v2182_v8  ;;  %v2168_v13 = vld [vmem:[%s2924_s19] sm:$0xf]  ;;  %v2565_v15 = vld [vmem:[%s2924_s19 + $0x4] sm:$0xf] }
  0x39   : > { %v2986_v17 = vsel %vm717_vm0, %v2714_v12, %v716_v16  ;;  %930 = vmatpush.bf16.msra.mxu1 %v2221_v47  ;;  %v2189_v12 = vor.u32 %v2570_v10, %v2188_v9  ;;  %v2566_v14 = vld [vmem:[%s2924_s19 + $0x8] sm:$0xf0]  ;;  %v2707_v33 = vld [vmem:[%s3301_s21] ss:$0 sm:$0xff]  ;;  %vm976_vm6 = vcmask 64512   ;;  %vm1193_vm7 = vcmask 523264  }
  0x3a   : > { %943 = vmatpush.bf16.msra.mxu2 %v2225_v48  ;;  %v2169_v16 = vor.u32 %v2566_v14, %v2168_v13  ;;  %v778_v40 = vld [vmem:[%s2934_s17] sm:$0x7]  ;;  %s2790_s17 = smov 32   ;;  %vm1195_vm8 = vcmask 785408   ;;  %s3307_s4 = sld [smem:[#allocation2_spill]] }
  0x3b   : > { %v781_v41 = vperm.slane %v778_v40, 1  ;;  %v780_v45 = vperm.slane %v778_v40, 0 }
  0x3c   : > { %918 = vmatpush.bf16.msra.mxu0 %v2205_v52 }
  0x3d   : > { %931 = vmatpush.bf16.msra.mxu1 %v2209_v56 }
  0x3e   : > { %944 = vmatpush.bf16.msra.mxu2 %v2213_v57 }
  0x40   : > { %919 = vmatpush.bf16.msra.mxu0 %v2193_v61  ;;  %p2558_p8 = scmp.eq.s32.totalorder %s3307_s4, 1 }
  0x41   : > { %932 = vmatpush.bf16.msra.mxu1 %v2197_v2 }
  0x42   : > { %945 = vmatpush.bf16.msra.mxu2 %v2201_v3 }
  0x44   : > { %920 = vmatpush.bf16.msra.mxu0 %v2181_v7 }
  0x45   : > { %933 = vmatpush.bf16.msra.mxu1 %v2185_v11 }
  0x46   : > { %946 = vmatpush.bf16.msra.mxu2 %v2189_v12 }
  0x48   : > { %921 = vmatpush.bf16.msra.mxu0 %v2169_v16 }
  0xa3   : > { %v711_v18 = vpop.xlane.xlu0 %710 }
  0xa4   : > { %v719_v19 = vmul.f32 %v2986_v17, %v711_v18  ;;  %v2170_v18 = vld [vmem:[%s2924_s19 + $0xc] sm:$0xf0] }
  0xa5   : > { %v2173_v22 = vor.u32 %v2565_v15, %v2170_v18 }
  0xa6   : > { %v2990_v20 = vsub.f32 %v2977_v1, %v719_v19  ;;  %v2176_v19 = vld [vmem:[%s2924_s19 + $0x8] sm:$0xf] }
  0xa7   : > { %934 = vmatpush.bf16.msra.mxu1 %v2173_v22 }
  0xa8   : > { %v721_v21 = vmul.f32 %v2990_v20, %v2990_v20 }
  0xaa   : > { %722 = vadd.xlane.f32.xlu0 %v721_v21  ;;  %v2567_v21 = vld [vmem:[%s2924_s19 + $0x10] sm:$0xf0]  ;;  %s3302_s19 = sld [smem:[#allocation9_spill]] }
  0xab   : > { %v2177_v23 = vor.u32 %v2567_v21, %v2176_v19 }
  0xad   : > { %947 = vmatpush.bf16.msra.mxu2 %v2177_v23 }
  0xb0   : > { %s3303_s13 = scalar_lea.vmem %s3302_s19, %s2905_s25 }
  0xb1   : > { %v2708_v36 = vld [vmem:[%s3303_s13] ss:$0 sm:$0xff] }
 0x11d   : > { %v723_v24 = vpop.xlane.xlu0 %722 }
 0x11e   : > { %v724_v25 = vmul.f32 %v723_v24, %v2986_v17 }
 0x120   : > { %v725_v26 = vadd.f32 1e-06, %v724_v25 }
 0x122   : > { %2715 = vrsqrt.f32 %v725_v26  ;;  %vm732_vm2 = vweird.f32 %v725_v26 }
 0x128   : > { %v2716_v27 = vpop.eup %2715 }
 0x129   : > { %v727_v28 = vmul.f32 %v2716_v27, %v725_v26  ;;  %vm733_vm1 = vweird.f32 %v2716_v27 }
 0x12a   : > { %vm734_vm3 = vmor %vm732_vm2, %vm733_vm1 }
 0x12b   : > { %v728_v29 = vmul.f32 %v2716_v27, %v727_v28 }
 0x12d   : > { %v729_v30 = vmul.f32 0.5, %v728_v29 }
 0x12f   : > { %v730_v31 = vsub.f32 1.5, %v729_v30 }
 0x131   : > { %v731_v32 = vmul.f32 %v2716_v27, %v730_v31 }
 0x133   : > { %v735_v34 = vsel %vm734_vm3, %v2716_v27, %v731_v32 }
 0x134   : > { %v736_v35 = vmul.f32 %v735_v34, %v2990_v20  ;;  %v782_v20 = vperm.slane %v778_v40, 2 }
 0x136   : > { %v740_v37 = vmul.f32 %v2707_v33, %v736_v35 }
 0x138   : > { %v744_v38 = vadd.f32 %v2708_v36, %v740_v37 }
 0x13a   : > { %v745_v39 = vpack.c.bf16 %v744_v38, %v744_v38 }
 0x13c   : > { %922 = vmatmul.bf16.vlgmr.msra.gmra.mxu0 %v745_v39  ;;  %935 = vmatmul.bf16.vlgmr.msra.gmra.mxu1 %v745_v39 }
 0x13d   : > { %948 = vmatmul.bf16.vlgmr.msra.gmra.mxu2 %v745_v39 }
 0x1b9   : > { %v923_v42 = vpop.f32.mrf.mxu0  ;;  %v936_v43 = vpop.f32.mrf.mxu1 }
 0x1ba   : > { %v937_v44 = vadd.f32 %v936_v43, %v781_v41  ;;  %v924_v48 = vadd.f32 %v923_v42, %v780_v45 }
 0x1bc   : > { %v954_v46 = vpack.c.bf16 %v937_v44, %v937_v44  ;;  %v953_v54 = vpack.c.bf16 %v924_v48, %v924_v48 }
 0x1be   : > { %1070 = vrot.lane.b32.xlu0 %v954_v46, %s2788_s15  ;;  %1013 = vrot.lane.b32.xlu2 %v954_v46, %s2789_s14  ;;  %v961_v47 = vsel %vm956_vm4, %v954_v46, 0 }
 0x1bf   : > { %970 = vmatpush.bf16.xpose.msra.mxu3 %v961_v47 }
 0x1c0   : > { %v949_v49 = vpop.f32.mrf.mxu2 }
 0x1c1   : > { %v950_v50 = vadd.f32 %v949_v49, %v782_v20  ;;  %v925_v51 = vpop.f32.mrf.mxu0  ;;  %v938_v52 = vpop.f32.mrf.mxu1 }
 0x1c3   : > { %v3052_v53 = vpack.c.bf16 %v950_v50, %v950_v50 }
 0x1c5   : > { %v994_v55 = vsel %vm992_vm5, %v3052_v53, 0 }
 0x1c6   : > { %1010 = vrot.lane.b32.xlu2 %v953_v54, %s2789_s14  ;;  %2262 = vmatmul.msk.bf16.vlgmr.msra.gmra.mxu3 %vm956_vm4, %v953_v54 }
 0x1c7   : > { %1003 = vmatpush.bf16.msrb.mxu3 %v994_v55 }
 0x1c8   : > { %v951_v56 = vpop.f32.mrf.mxu2 }
 0x1ce   : > { %1068 = vrot.lane.b32.xlu2 %v953_v54, %s2788_s15 }
 0x1d6   : > { %1124 = vrot.lane.b32.xlu2 %v953_v54, %s2790_s17 }
 0x218   : > { %v1014_v57 = vpop.permute.xlu2 %1013 }
 0x219   : > { %v1019_v58 = vsel %vm956_vm4, %v1014_v57, 0 }
 0x21a   : > { %1028 = vmatpush.bf16.xpose.msra.mxu3 %v1019_v58 }
 0x220   : > { %v1011_v59 = vpop.permute.xlu2 %1010 }
 0x228   : > { %v1069_v62 = vpop.permute.xlu2 %1068 }
 0x230   : > { %v1071_v60 = vpop.permute.xlu0 %1070  ;;  %v1125_v22 = vpop.permute.xlu2 %1124 }
 0x231   : > { %v1076_v61 = vsel %vm956_vm4, %v1071_v60, 0 }
 0x232   : > { %1085 = vmatpush.bf16.xpose.msrb.mxu2 %v1076_v61 }
 0x239   : > { %2266 = vmatmul.msk.bf16.vlgmr.msrb.gmra.mxu2 %vm956_vm4, %v1069_v62 }
 0x249   : > { %v972_v63 = vpop.f32.mrf.mxu3 }
 0x24a   : > { %v977_v0 = vsel %vm976_vm6, %v972_v63, -inf }
 0x24b   : > { %978 = vmax.xlane.f32.xlu1 %v977_v0  ;;  %v2595_v0 = vld [vmem:[%s2929_s28 + $0x30] sm:$0xff] }
 0x251   : > { %v974_v2 = vpop.f32.mrf.mxu3 }
 0x2bc   : > { %v1087_v3 = vpop.f32.mrf.mxu2 }
 0x2bd   : > { %v1091_v4 = vsel %vm976_vm6, %v1087_v3, -inf }
 0x2be   : > { %1092 = vmax.xlane.f32.xlu0 %v1091_v4  ;;  %v979_v5 = vpop.xlane.xlu1 %978  ;;  %v2593_v4 = vld [vmem:[%s2929_s28 + $0x20] sm:$0xff] }
 0x2bf   : > { %v980_v6 = vsub.f32 %v972_v63, %v979_v5  ;;  %v2596_v63 = vld [vmem:[%s2929_s28 + $0x38] sm:$0xff] }
 0x2c0   : > { %1262 = vmatpush.bf16.msrb.mxu1 %v2596_v63  ;;  %v2592_v5 = vld [vmem:[%s2929_s28 + $0x18] sm:$0xff]  ;;  %v2368_v63 = vld [vmem:[%s2953_s30 + $0x80] sm:$0xf] }
 0x2c1   : > { %v981_v7 = vmul.f32 1.442695, %v980_v6 }
 0x2c3   : > { %2717 = vpow2.f32 %v981_v7 }
 0x2c4   : > { %v1089_v8 = vpop.f32.mrf.mxu2  ;;  %1263 = vmatpush.bf16.msrb.mxu1 %v2595_v0  ;;  %v2615_v0 = vld [vmem:[%s2953_s30 + $0x8c] sm:$0xf0] }
 0x2c5   : > { %v2591_v8 = vld [vmem:[%s2929_s28 + $0x10] sm:$0xff] }
 0x2c9   : > { %v2718_v9 = vpop.eup %2717 }
 0x2ca   : > { %v983_v10 = vsel %vm976_vm6, %v2718_v9, 0.0 }
 0x2cb   : > { %984 = vadd.xlane.f32.xlu1 %v983_v10  ;;  %v2589_v10 = vld [vmem:[%s2929_s28] sm:$0xff] }
 0x2d2   : > { %1047 = vrot.lane.b32.xlu0 %v3052_v53, %s2789_s14 }
 0x2e4   : > { %1126 = vrot.lane.b32.xlu1 %v954_v46, %s2790_s17 }
 0x331   : > { %v1093_v11 = vpop.xlane.xlu0 %1092 }
 0x332   : > { %v1094_v24 = vsub.f32 %v1087_v3, %v1093_v11  ;;  %v2594_v3 = vld [vmem:[%s2929_s28 + $0x28] sm:$0xff] }
 0x333   : > { %1264 = vmatpush.bf16.msrb.mxu1 %v2594_v3  ;;  %v2369_v3 = vor.u32 %v2615_v0, %v2368_v63  ;;  %v2652_v63 = vld [vmem:[%s2963_s0 + $0xb8] sm:$0xff] }
 0x334   : > { %v1095_v26 = vmul.f32 1.442695, %v1094_v24  ;;  %v2660_v0 = vld [vmem:[%s2963_s0 + $0xf8] sm:$0xff] }
 0x337   : > { %1265 = vmatpush.bf16.msrb.mxu1 %v2593_v4  ;;  %v2370_v4 = vld [vmem:[%s2953_s30 + $0x90] sm:$0xf0] }
 0x33b   : > { %1266 = vmatpush.bf16.msrb.mxu1 %v2592_v5  ;;  %v2376_v5 = vld [vmem:[%s2953_s30 + $0x88] sm:$0xf] }
 0x33e   : > { %v985_v12 = vpop.xlane.xlu1 %984 }
 0x33f   : > { %2719 = vrcp.f32 %v985_v12  ;;  %1267 = vmatpush.bf16.msrb.mxu1 %v2591_v8 }
 0x340   : > { %2721 = vpow2.f32 %v1095_v26  ;;  %v2627_v26 = vld [vmem:[%s2953_s30 + $0xec] sm:$0xf0] }
 0x344   : > { %v1048_v13 = vpop.permute.xlu0 %1047 }
 0x345   : > { %v1053_v14 = vsel %vm992_vm5, %v1048_v13, 0  ;;  %v2720_v15 = vpop.eup %2719 }
 0x346   : > { %1062 = vmatpush.bf16.msrb.mxu0 %v1053_v14  ;;  %v987_v16 = vmul.f32 %v2720_v15, %v2718_v9  ;;  %v2722_v29 = vpop.eup %2721  ;;  %v2590_v9 = vld [vmem:[%s2929_s28 + $0x8] sm:$0xff] }
 0x347   : > { %v1097_v31 = vsel %vm976_vm6, %v2722_v29, 0.0  ;;  %1268 = vmatpush.bf16.msrb.mxu1 %v2590_v9  ;;  %v2614_v9 = vld [vmem:[%s2953_s30 + $0x8c] sm:$0xf] }
 0x348   : > { %v988_v18 = vpack.c.bf16 %v987_v16, %v987_v16 }
 0x34a   : > { %2263 = vmatmul.msk.bf16.vlgmr.msrb.gmra.mxu3 %vm976_vm6, %v988_v18 }
 0x34b   : > { %1269 = vmatpush.bf16.msrb.mxu1 %v2589_v10  ;;  %v2378_v10 = vld [vmem:[%s2953_s30 + $0x98] sm:$0xf0] }
 0x356   : > { %v1127_v19 = vpop.permute.xlu1 %1126 }
 0x357   : > { %v1132_v21 = vsel %vm956_vm4, %v1127_v19, 0  ;;  %v2709_v19 = vld [vmem:[%s3304_s16] ss:$0 sm:$0xff] }
 0x358   : > { %1141 = vmatpush.bf16.xpose.msrb.mxu3 %v1132_v21 }
 0x35a   : > { %2264 = vmatmul.msk.bf16.vlgmr.msra.gmra.mxu3 %vm956_vm4, %v1011_v59 }
 0x36a   : > { %2268 = vmatmul.msk.bf16.vlgmr.msrb.gmra.mxu3 %vm956_vm4, %v1125_v22 }
 0x3cd   : > { %v3074_v23 = vpop.f32.mrf.mxu3 }
 0x3d5   : > { %v1007_v25 = vpop.f32.mrf.mxu3 }
 0x3d6   : > { %v2416_v25 = vld [vmem:[%s2953_s30 + $0xe0] sm:$0xf] }
 0x3dd   : > { %v1030_v27 = vpop.f32.mrf.mxu3 }
 0x3de   : > { %v1034_v28 = vsel %vm976_vm6, %v1030_v27, -inf }
 0x3df   : > { %1035 = vmax.xlane.f32.xlu2 %v1034_v28  ;;  %v2417_v28 = vor.u32 %v2627_v26, %v2416_v25  ;;  %v2362_v25 = vld [vmem:[%s2953_s30 + $0x78] sm:$0xf0] }
 0x3e5   : > { %v1032_v30 = vpop.f32.mrf.mxu3 }
 0x3e6   : > { %v2424_v30 = vld [vmem:[%s2953_s30 + $0xe8] sm:$0xf] }
 0x3e7   : > { %1098 = vadd.xlane.f32.xlu2 %v1097_v31  ;;  %v2628_v31 = vld [vmem:[%s2953_s30 + $0xf4] sm:$0xf0] }
 0x3ed   : > { %v1143_v32 = vpop.f32.mrf.mxu3 }
 0x3ee   : > { %v1147_v33 = vsel %vm976_vm6, %v1143_v32, -inf }
 0x3ef   : > { %1148 = vmax.xlane.f32.xlu1 %v1147_v33  ;;  %v2425_v33 = vor.u32 %v2628_v31, %v2424_v30  ;;  %v2338_v31 = vld [vmem:[%s2953_s30 + $0x50] sm:$0xf0] }
 0x3f5   : > { %v1145_v34 = vpop.f32.mrf.mxu3 }
 0x3f6   : > { %v2626_v34 = vld [vmem:[%s2953_s30 + $0xec] sm:$0xf] }
 0x452   : > { %v1036_v35 = vpop.xlane.xlu2 %1035 }
 0x453   : > { %v1037_v36 = vsub.f32 %v1030_v27, %v1036_v35  ;;  %v2625_v27 = vld [vmem:[%s2953_s30 + $0xe4] sm:$0xf] }
 0x455   : > { %v1038_v37 = vmul.f32 1.442695, %v1037_v36 }
 0x457   : > { %2723 = vpow2.f32 %v1038_v37 }
 0x45a   : > { %v1099_v45 = vpop.xlane.xlu2 %1098 }
 0x45d   : > { %v2724_v38 = vpop.eup %2723 }
 0x45e   : > { %v1040_v39 = vsel %vm976_vm6, %v2724_v38, 0.0 }
 0x45f   : > { %1041 = vadd.xlane.f32.xlu2 %v1040_v39 }
 0x462   : > { %v1149_v40 = vpop.xlane.xlu1 %1148 }
 0x463   : > { %v1150_v41 = vsub.f32 %v1143_v32, %v1149_v40  ;;  %v2400_v40 = vld [vmem:[%s2953_s30 + $0xc0] sm:$0xf] }
 0x465   : > { %v1151_v42 = vmul.f32 1.442695, %v1150_v41  ;;  %v2623_v41 = vld [vmem:[%s2953_s30 + $0xcc] sm:$0xf0] }
 0x467   : > { %2725 = vpow2.f32 %v1151_v42  ;;  %v2621_v42 = vld [vmem:[%s2953_s30 + $0xc4] sm:$0xf] }
 0x468   : > { %2727 = vrcp.f32 %v1099_v45  ;;  %v2408_v45 = vld [vmem:[%s2953_s30 + $0xc8] sm:$0xf] }
 0x46d   : > { %v2726_v43 = vpop.eup %2725 }
 0x46e   : > { %v1153_v44 = vsel %vm976_vm6, %v2726_v43, 0.0  ;;  %v2728_v20 = vpop.eup %2727 }
 0x46f   : > { %1154 = vadd.xlane.f32.xlu1 %v1153_v44  ;;  %v1101_v48 = vmul.f32 %v2728_v20, %v2722_v29  ;;  %v2418_v29 = vld [vmem:[%s2953_s30 + $0xf0] sm:$0xf0] }
 0x470   : > { %v2421_v32 = vor.u32 %v2625_v27, %v2418_v29  ;;  %v2402_v44 = vld [vmem:[%s2953_s30 + $0xd0] sm:$0xf0]  ;;  %v2336_v27 = vld [vmem:[%s2953_s30 + $0x40] sm:$0xf]  ;;  %v2605_v29 = vld [vmem:[%s2953_s30 + $0x44] sm:$0xf] }
 0x471   : > { %v1102_v54 = vpack.c.bf16 %v1101_v48, %v1101_v48  ;;  %v2405_v20 = vor.u32 %v2621_v42, %v2402_v44  ;;  %v2622_v48 = vld [vmem:[%s2953_s30 + $0xcc] sm:$0xf]  ;;  %v2328_v44 = vld [vmem:[%s2953_s30 + $0x28] sm:$0xf] }
 0x472   : > { %1527 = vmatpush.bf16.msra.mxu3 %v2421_v32  ;;  %v2344_v32 = vld [vmem:[%s2953_s30 + $0x48] sm:$0xf] }
 0x476   : > { %1528 = vmatpush.bf16.msra.mxu3 %v2405_v20 }
 0x477   : > { %1103 = vrot.lane.b32.xlu2 %v3052_v53, %s2788_s15 }
 0x488   : > { %1159 = vrot.lane.b32.xlu1 %v3052_v53, %s2790_s17 }
 0x4d2   : > { %v1042_v46 = vpop.xlane.xlu2 %1041 }
 0x4d3   : > { %2729 = vrcp.f32 %v1042_v46  ;;  %v2624_v46 = vld [vmem:[%s2953_s30 + $0xd4] sm:$0xf0] }
 0x4d9   : > { %v2730_v47 = vpop.eup %2729 }
 0x4da   : > { %v1044_v49 = vmul.f32 %v2730_v47, %v2724_v38  ;;  %v1104_v50 = vpop.permute.xlu2 %1103  ;;  %v2409_v47 = vor.u32 %v2624_v46, %v2408_v45  ;;  %v2604_v45 = vld [vmem:[%s2953_s30 + $0x34] sm:$0xf0] }
 0x4db   : > { %v1109_v51 = vsel %vm992_vm5, %v1104_v50, 0  ;;  %v2329_v20 = vor.u32 %v2604_v45, %v2328_v44  ;;  %v2653_v44 = vld [vmem:[%s2963_s0 + $0xc0] sm:$0xff]  ;;  %v2630_v45 = vld [vmem:[%s2963_s0 + $0x8] sm:$0xff] }
 0x4dc   : > { %1118 = vmatpush.bf16.msra.mxu2 %v1109_v51  ;;  %v1045_v52 = vpack.c.bf16 %v1044_v49, %v1044_v49  ;;  %v2410_v49 = vld [vmem:[%s2953_s30 + $0xd8] sm:$0xf0]  ;;  %v2384_v51 = vld [vmem:[%s2953_s30 + $0xa0] sm:$0xf] }
 0x4dd   : > { %v2413_v50 = vor.u32 %v2622_v48, %v2410_v49  ;;  %v2330_v48 = vld [vmem:[%s2953_s30 + $0x38] sm:$0xf0]  ;;  %v2304_v49 = vld [vmem:[%s2953_s30] sm:$0xf] }
 0x4de   : > { %2265 = vmatmul.msk.bf16.vlgmr.msrb.gmra.mxu0 %vm976_vm6, %v1045_v52  ;;  %v2619_v52 = vld [vmem:[%s2953_s30 + $0xac] sm:$0xf0] }
 0x4df   : > { %2267 = vmatmul.msk.bf16.vlgmr.msra.gmra.mxu2 %vm976_vm6, %v1102_v54  ;;  %v2617_v54 = vld [vmem:[%s2953_s30 + $0xa4] sm:$0xf] }
 0x4e0   : > { %1514 = vmatpush.bf16.msrb.mxu2 %v2417_v28  ;;  %v2607_v28 = vld [vmem:[%s2953_s30 + $0x4c] sm:$0xf0] }
 0x4e1   : > { %v2337_v30 = vor.u32 %v2607_v28, %v2336_v27  ;;  %v2649_v27 = vld [vmem:[%s2963_s0 + $0xa0] sm:$0xff] }
 0x4e2   : > { %v1155_v53 = vpop.xlane.xlu1 %1154  ;;  %v2657_v28 = vld [vmem:[%s2963_s0 + $0xe0] sm:$0xff] }
 0x4e3   : > { %2731 = vrcp.f32 %v1155_v53  ;;  %v2385_v53 = vor.u32 %v2619_v52, %v2384_v51  ;;  %v2599_v51 = vld [vmem:[%s2953_s30 + $0xc] sm:$0xf0]  ;;  %v2597_v52 = vld [vmem:[%s2953_s30 + $0x4] sm:$0xf] }
 0x4e9   : > { %v2732_v55 = vpop.eup %2731 }
 0x4ea   : > { %v1157_v56 = vmul.f32 %v2732_v55, %v2726_v43  ;;  %v2401_v43 = vor.u32 %v2623_v41, %v2400_v40  ;;  %v2386_v55 = vld [vmem:[%s2953_s30 + $0xb0] sm:$0xf0]  ;;  %v2603_v40 = vld [vmem:[%s2953_s30 + $0x2c] sm:$0xf0]  ;;  %v2601_v41 = vld [vmem:[%s2953_s30 + $0x24] sm:$0xf] }
 0x4ec   : > { %v1158_v59 = vpack.c.bf16 %v1157_v56, %v1157_v56  ;;  %1515 = vmatpush.bf16.msrb.mxu2 %v2401_v43  ;;  %v2392_v56 = vld [vmem:[%s2953_s30 + $0xa8] sm:$0xf]  ;;  %v2322_v43 = vld [vmem:[%s2953_s30 + $0x30] sm:$0xf0] }
 0x4ed   : > { %v2325_v46 = vor.u32 %v2601_v41, %v2322_v43  ;;  %v2631_v41 = vld [vmem:[%s2963_s0 + $0x10] sm:$0xff]  ;;  %v2645_v43 = vld [vmem:[%s2963_s0 + $0x80] sm:$0xff] }
 0x4f0   : > { %1516 = vmatpush.bf16.msrb.mxu2 %v2385_v53  ;;  %v2305_v53 = vor.u32 %v2599_v51, %v2304_v49  ;;  %v2629_v49 = vld [vmem:[%s2963_s0] sm:$0xff] }
 0x4f4   : > { %1517 = vmatpush.bf16.msrb.mxu2 %v2369_v3 }
 0x4fa   : > { %v1160_v57 = vpop.permute.xlu1 %1159 }
 0x4fb   : > { %v1165_v58 = vsel %vm992_vm5, %v1160_v57, 0  ;;  %v2620_v57 = vld [vmem:[%s2953_s30 + $0xb4] sm:$0xf0] }
 0x4fc   : > { %1174 = vmatpush.bf16.msra.mxu0 %v1165_v58  ;;  %v2389_v58 = vor.u32 %v2617_v54, %v2386_v55  ;;  %v2306_v54 = vld [vmem:[%s2953_s30 + $0x10] sm:$0xf0] }
 0x4fd   : > { %v2309_v55 = vor.u32 %v2597_v52, %v2306_v54 }
 0x4fe   : > { %1529 = vmatpush.bf16.msra.mxu3 %v2389_v58  ;;  %v2598_v58 = vld [vmem:[%s2953_s30 + $0xc] sm:$0xf] }
 0x4ff   : > { %2269 = vmatmul.msk.bf16.vlgmr.msra.gmra.mxu0 %vm976_vm6, %v1158_v59  ;;  %v2393_v59 = vor.u32 %v2620_v57, %v2392_v56  ;;  %v2312_v56 = vld [vmem:[%s2953_s30 + $0x8] sm:$0xf]  ;;  %v2600_v57 = vld [vmem:[%s2953_s30 + $0x14] sm:$0xf0] }
 0x500   : > { %1540 = vmatpush.bf16.msrb.mxu0 %v2425_v33  ;;  %v2608_v33 = vld [vmem:[%s2953_s30 + $0x54] sm:$0xf0] }
 0x504   : > { %1541 = vmatpush.bf16.msrb.mxu0 %v2409_v47  ;;  %v2602_v47 = vld [vmem:[%s2953_s30 + $0x2c] sm:$0xf] }
 0x508   : > { %1542 = vmatpush.bf16.msrb.mxu0 %v2393_v59  ;;  %v2313_v59 = vor.u32 %v2600_v57, %v2312_v56 }
 0x55b   : > { %v1064_v60 = vpop.f32.mrf.mxu0 }
 0x55c   : > { %1181 = vrot.lane.b32.xlu0 %v1064_v60, %s2790_s17  ;;  %v2618_v60 = vld [vmem:[%s2953_s30 + $0xac] sm:$0xf] }
 0x562   : > { %v1120_v61 = vpop.f32.mrf.mxu2 }
 0x563   : > { %v1066_v62 = vpop.f32.mrf.mxu0 }
 0x564   : > { %1185 = vrot.lane.b32.xlu0 %v1120_v61, %s2788_s15  ;;  %v2394_v61 = vld [vmem:[%s2953_s30 + $0xb8] sm:$0xf0] }
 0x565   : > { %v2397_v62 = vor.u32 %v2618_v60, %v2394_v61  ;;  %v2314_v60 = vld [vmem:[%s2953_s30 + $0x18] sm:$0xf0] }
 0x566   : > { %v2317_v61 = vor.u32 %v2598_v58, %v2314_v60 }
 0x56a   : > { %v1122_v2 = vpop.f32.mrf.mxu2 }
 0x56b   : > { %v2613_v2 = vld [vmem:[%s2953_s30 + $0x84] sm:$0xf] }
 0x57c   : > { %v1176_v6 = vpop.f32.mrf.mxu0 }
 0x57d   : > { %1189 = vrot.lane.b32.xlu2 %v1176_v6, %s2789_s14  ;;  %v2616_v6 = vld [vmem:[%s2953_s30 + $0x94] sm:$0xf0] }
 0x57e   : > { %v2377_v8 = vor.u32 %v2616_v6, %v2376_v5 }
 0x580   : > { %1543 = vmatpush.bf16.msrb.mxu0 %v2377_v8 }
 0x584   : > { %v1178_v7 = vpop.f32.mrf.mxu0 }
 0x585   : > { %v2373_v7 = vor.u32 %v2613_v2, %v2370_v4 }
 0x587   : > { %1530 = vmatpush.bf16.msra.mxu3 %v2373_v7 }
 0x5ce   : > { %v1182_v11 = vpop.permute.xlu0 %1181 }
 0x5cf   : > { %v1192_v12 = vsel %vm956_vm4, %v3074_v23, %v1182_v11  ;;  %v2381_v11 = vor.u32 %v2614_v9, %v2378_v10  ;;  %v2710_v10 = vld [vmem:[%s3305_s2] ss:$0 sm:$0xff] }
 0x5d6   : > { %v1186_v13 = vpop.permute.xlu0 %1185 }
 0x5d7   : > { %v1194_v14 = vsel %vm1193_vm7, %v1192_v12, %v1186_v13  ;;  %v1190_v15 = vpop.permute.xlu2 %1189  ;;  %v2352_v12 = vld [vmem:[%s2953_s30 + $0x60] sm:$0xf]  ;;  %v2611_v13 = vld [vmem:[%s2953_s30 + $0x6c] sm:$0xf0] }
 0x5d8   : > { %v1196_v16 = vsel %vm1195_vm8, %v1194_v14, %v1190_v15  ;;  %v2609_v14 = vld [vmem:[%s2953_s30 + $0x64] sm:$0xf]  ;;  %v2353_v15 = vor.u32 %v2611_v13, %v2352_v12  ;;  %v2711_v13 = vld [vmem:[%s3306_s3] ss:$0 sm:$0xff] }
 0x5d9   : > { %v1197_v18 = vpack.c.bf16 %v1196_v16, %v1196_v16  ;;  %v2354_v16 = vld [vmem:[%s2953_s30 + $0x70] sm:$0xf0] }
 0x5da   : > { %1518 = vmatpush.bf16.msrb.mxu2 %v2353_v15 }
 0x5db   : > { %1270 = vmatmul.bf16.vlgmr.msrb.gmra.mxu1 %v1197_v18  ;;  %v2360_v18 = vld [vmem:[%s2953_s30 + $0x68] sm:$0xf] }
 0x5de   : > { %1519 = vmatpush.bf16.msrb.mxu2 %v2337_v30  ;;  %v2642_v30 = vld [vmem:[%s2963_s0 + $0x68] sm:$0xff] }
 0x658   : > { %v1271_v21 = vpop.f32.mrf.mxu1 }
 0x659   : > { %v1275_v22 = vadd.f32 %v1271_v21, %v2977_v1  ;;  %v2426_v1 = vld [vmem:[%s2953_s30 + $0xf8] sm:$0xf0]  ;;  %v2357_v21 = vor.u32 %v2609_v14, %v2354_v16 }
 0x65a   : > { %v2429_v35 = vor.u32 %v2626_v34, %v2426_v1  ;;  %v2341_v34 = vor.u32 %v2605_v29, %v2338_v31  ;;  %v2345_v1 = vor.u32 %v2608_v33, %v2344_v32  ;;  %v2634_v29 = vld [vmem:[%s2963_s0 + $0x28] sm:$0xff]  ;;  %v2648_v31 = vld [vmem:[%s2963_s0 + $0x98] sm:$0xff]  ;;  %v2633_v33 = vld [vmem:[%s2963_s0 + $0x20] sm:$0xff] }
 0x65b   : > { %v3109_v23 = vadd.f32 %v2709_v19, %v1275_v22  ;;  %v2612_v19 = vld [vmem:[%s2953_s30 + $0x74] sm:$0xf0]  ;;  %1531 = vmatpush.bf16.msra.mxu3 %v2357_v21 }
 0x65c   : > { %1553 = vmatpush.bf16.msra.mxu1 %v2429_v35  ;;  %v2361_v22 = vor.u32 %v2612_v19, %v2360_v18  ;;  %v2606_v35 = vld [vmem:[%s2953_s30 + $0x4c] sm:$0xf]  ;;  %v2651_v18 = vld [vmem:[%s2963_s0 + $0xb0] sm:$0xff]  ;;  %v2644_v21 = vld [vmem:[%s2963_s0 + $0x78] sm:$0xff] }
 0x65d   : > { %1283 = vadd.xlane.f32.xlu0 %v3109_v23  ;;  %v2659_v19 = vld [vmem:[%s2963_s0 + $0xf0] sm:$0xff]  ;;  %v2656_v32 = vld [vmem:[%s2963_s0 + $0xd8] sm:$0xff] }
 0x65e   : > { %1544 = vmatpush.bf16.msrb.mxu0 %v2361_v22  ;;  %v2650_v22 = vld [vmem:[%s2963_s0 + $0xa8] sm:$0xff] }
 0x65f   : > { %1532 = vmatpush.bf16.msra.mxu3 %v2341_v34  ;;  %v2641_v34 = vld [vmem:[%s2963_s0 + $0x60] sm:$0xff] }
 0x660   : > { %v1273_v24 = vpop.f32.mrf.mxu1  ;;  %1554 = vmatpush.bf16.msra.mxu1 %v2413_v50  ;;  %v2333_v50 = vor.u32 %v2602_v47, %v2330_v48 }
 0x661   : > { %v2610_v24 = vld [vmem:[%s2953_s30 + $0x6c] sm:$0xf] }
 0x662   : > { %v2365_v26 = vor.u32 %v2610_v24, %v2362_v25  ;;  %1545 = vmatpush.bf16.msrb.mxu0 %v2345_v1  ;;  %v2658_v24 = vld [vmem:[%s2963_s0 + $0xe8] sm:$0xff]  ;;  %v2635_v25 = vld [vmem:[%s2963_s0 + $0x30] sm:$0xff] }
 0x663   : > { %1533 = vmatpush.bf16.msra.mxu3 %v2325_v46  ;;  %v2647_v1 = vld [vmem:[%s2963_s0 + $0x90] sm:$0xff]  ;;  %v2638_v46 = vld [vmem:[%s2963_s0 + $0x48] sm:$0xff] }
 0x664   : > { %1555 = vmatpush.bf16.msra.mxu1 %v2397_v62 }
 0x666   : > { %1546 = vmatpush.bf16.msrb.mxu0 %v2329_v20  ;;  %v1344_v20 = vld [vmem:[%s2958_s23] sm:$0xf] }
 0x667   : > { %1534 = vmatpush.bf16.msra.mxu3 %v2309_v55  ;;  %v1348_v47 = vperm.slane %v1344_v20, 2  ;;  %v1349_v48 = vperm.slane %v1344_v20, 3  ;;  %v1346_v55 = vperm.slane %v1344_v20, 0  ;;  %v1347_v56 = vperm.slane %v1344_v20, 1 }
 0x668   : > { %1556 = vmatpush.bf16.msra.mxu1 %v2381_v11 }
 0x66a   : > { %1547 = vmatpush.bf16.msrb.mxu0 %v2313_v59 }
 0x66b   : > { %1875 = vmatpush.bf16.msrb.mxu3 %v2644_v21 }
 0x66c   : > { %1557 = vmatpush.bf16.msra.mxu1 %v2365_v26  ;;  %v2643_v26 = vld [vmem:[%s2963_s0 + $0x70] sm:$0xff] }
 0x66e   : > { %1888 = vmatpush.bf16.msra.mxu0 %v2652_v63 }
 0x66f   : > { %1876 = vmatpush.bf16.msrb.mxu3 %v2643_v26 }
 0x672   : > { %1889 = vmatpush.bf16.msra.mxu0 %v2651_v18 }
 0x673   : > { %1877 = vmatpush.bf16.msrb.mxu3 %v2642_v30 }
 0x676   : > { %1890 = vmatpush.bf16.msra.mxu0 %v2650_v22 }
 0x677   : > { %1878 = vmatpush.bf16.msrb.mxu3 %v2641_v34 }
 0x67a   : > { %1891 = vmatpush.bf16.msra.mxu0 %v2649_v27 }
 0x67e   : > { %1892 = vmatpush.bf16.msra.mxu0 %v2648_v31 }
 0x682   : > { %1893 = vmatpush.bf16.msra.mxu0 %v2647_v1 }
 0x6d0   : > { %v1284_v36 = vpop.xlane.xlu0 %1283 }
 0x6d1   : > { %v1285_v37 = vmul.f32 %v1284_v36, %v2986_v17  ;;  %v2346_v36 = vld [vmem:[%s2953_s30 + $0x58] sm:$0xf0] }
 0x6d3   : > { %v3122_v38 = vsub.f32 %v3109_v23, %v1285_v37  ;;  %v2349_v37 = vor.u32 %v2606_v35, %v2346_v36  ;;  %v2655_v35 = vld [vmem:[%s2963_s0 + $0xd0] sm:$0xff]  ;;  %v2632_v36 = vld [vmem:[%s2963_s0 + $0x18] sm:$0xff] }
 0x6d5   : > { %v1287_v39 = vmul.f32 %v3122_v38, %v3122_v38  ;;  %1558 = vmatpush.bf16.msra.mxu1 %v2349_v37  ;;  %v2640_v37 = vld [vmem:[%s2963_s0 + $0x58] sm:$0xff] }
 0x6d6   : > { %1879 = vmatpush.bf16.msrb.mxu3 %v2640_v37 }
 0x6d7   : > { %1288 = vadd.xlane.f32.xlu1 %v1287_v39  ;;  %v2320_v39 = vld [vmem:[%s2953_s30 + $0x20] sm:$0xf] }
 0x6d8   : > { %v2321_v42 = vor.u32 %v2603_v40, %v2320_v39  ;;  %v2646_v39 = vld [vmem:[%s2963_s0 + $0x88] sm:$0xff] }
 0x6d9   : > { %1559 = vmatpush.bf16.msra.mxu1 %v2333_v50  ;;  %v2654_v40 = vld [vmem:[%s2963_s0 + $0xc8] sm:$0xff]  ;;  %1894 = vmatpush.bf16.msra.mxu0 %v2646_v39  ;;  %v2637_v50 = vld [vmem:[%s2963_s0 + $0x40] sm:$0xff] }
 0x6da   : > { %1520 = vmatpush.bf16.msrb.mxu2 %v2321_v42  ;;  %v2639_v42 = vld [vmem:[%s2963_s0 + $0x50] sm:$0xff] }
 0x6db   : > { %1880 = vmatpush.bf16.msrb.mxu3 %v2639_v42 }
 0x6dd   : > { %1560 = vmatpush.bf16.msra.mxu1 %v2317_v61  ;;  %1895 = vmatpush.bf16.msra.mxu0 %v2645_v43 }
 0x6de   : > { %1521 = vmatpush.bf16.msrb.mxu2 %v2305_v53 }
 0x6df   : > { %1881 = vmatpush.bf16.msrb.mxu3 %v2638_v46 }
 0x6e1   : > { %1901 = vmatpush.bf16.msrb.mxu1 %v2660_v0 }
 0x6e3   : > { %1882 = vmatpush.bf16.msrb.mxu3 %v2637_v50 }
 0x6e5   : > { %1902 = vmatpush.bf16.msrb.mxu1 %v2659_v19 }
 0x6e9   : > { %1903 = vmatpush.bf16.msrb.mxu1 %v2658_v24 }
 0x6ed   : > { %1904 = vmatpush.bf16.msrb.mxu1 %v2657_v28 }
 0x6f1   : > { %1905 = vmatpush.bf16.msrb.mxu1 %v2656_v32 }
 0x6f5   : > { %1906 = vmatpush.bf16.msrb.mxu1 %v2655_v35 }
 0x6f9   : > { %1907 = vmatpush.bf16.msrb.mxu1 %v2654_v40 }
 0x6fd   : > { %1908 = vmatpush.bf16.msrb.mxu1 %v2653_v44 }
 0x74a   : > { %v1289_v62 = vpop.xlane.xlu1 %1288 }
 0x74b   : > { %v1290_v2 = vmul.f32 %v1289_v62, %v2986_v17 }
 0x74d   : > { %v1291_v3 = vadd.f32 1e-06, %v1290_v2 }
 0x74f   : > { %2733 = vrsqrt.f32 %v1291_v3  ;;  %vm1298_vm10 = vweird.f32 %v1291_v3 }
 0x755   : > { %v2734_v4 = vpop.eup %2733 }
 0x756   : > { %v1293_v5 = vmul.f32 %v2734_v4, %v1291_v3  ;;  %vm1299_vm9 = vweird.f32 %v2734_v4 }
 0x757   : > { %vm1300_vm11 = vmor %vm1298_vm10, %vm1299_vm9 }
 0x758   : > { %v1294_v6 = vmul.f32 %v2734_v4, %v1293_v5 }
 0x75a   : > { %v1295_v7 = vmul.f32 0.5, %v1294_v6 }
 0x75c   : > { %v1296_v8 = vsub.f32 1.5, %v1295_v7 }
 0x75e   : > { %v1297_v9 = vmul.f32 %v2734_v4, %v1296_v8 }
 0x760   : > { %v1301_v11 = vsel %vm1300_vm11, %v2734_v4, %v1297_v9 }
 0x761   : > { %v1302_v12 = vmul.f32 %v1301_v11, %v3122_v38  ;;  %v2636_v38 = vld [vmem:[%s2963_s0 + $0x38] sm:$0xff] }
 0x762   : > { %1862 = vmatpush.bf16.msra.mxu2 %v2636_v38 }
 0x763   : > { %v1306_v14 = vmul.f32 %v2710_v10, %v1302_v12 }
 0x765   : > { %v1310_v15 = vadd.f32 %v2711_v13, %v1306_v14 }
 0x766   : > { %1863 = vmatpush.bf16.msra.mxu2 %v2635_v25 }
 0x767   : > { %v1311_v16 = vpack.c.bf16 %v1310_v15, %v1310_v15 }
 0x769   : > { %1522 = vmatmul.bf16.vlgmr.msrb.gmra.mxu2 %v1311_v16  ;;  %1535 = vmatmul.bf16.vlgmr.msra.gmra.mxu3 %v1311_v16 }
 0x76a   : > { %1548 = vmatmul.bf16.vlgmr.msrb.gmra.mxu0 %v1311_v16  ;;  %1561 = vmatmul.bf16.vlgmr.msra.gmra.mxu1 %v1311_v16 }
 0x76b   : > { %1864 = vmatpush.bf16.msra.mxu2 %v2634_v29 }
 0x76f   : > { %1865 = vmatpush.bf16.msra.mxu2 %v2633_v33 }
 0x773   : > { %1866 = vmatpush.bf16.msra.mxu2 %v2632_v36 }
 0x777   : > { %1867 = vmatpush.bf16.msra.mxu2 %v2631_v41 }
 0x77b   : > { %1868 = vmatpush.bf16.msra.mxu2 %v2630_v45 }
 0x77f   : > { %1869 = vmatpush.bf16.msra.mxu2 %v2629_v49 }
 0x7e7   : > { %v1549_v51 = vpop.f32.mrf.mxu0  ;;  %v1562_v52 = vpop.f32.mrf.mxu1 }
 0x7e8   : > { %v1550_v54 = vadd.f32 %v1549_v51, %v1348_v47  ;;  %v1563_v53 = vadd.f32 %v1562_v52, %v1349_v48  ;;  %v2712_v52 = vld [vmem:[%s695_s20] ss:$0 sm:$0xff] }
 0x7ea   : > { %v1568_v57 = vmul.f32 %v1550_v54, %v1550_v54  ;;  %v1569_v58 = vmul.f32 %v1563_v53, %v1563_v53 }
 0x7ec   : > { %v1572_v59 = vmul.f32 %v1568_v57, %v1550_v54  ;;  %v1573_v60 = vmul.f32 %v1569_v58, %v1563_v53  ;;  %v1523_v61 = vpop.f32.mrf.mxu2  ;;  %v1536_v62 = vpop.f32.mrf.mxu3 }
 0x7ed   : > { %v1524_v63 = vadd.f32 %v1523_v61, %v1346_v55  ;;  %v1537_v0 = vadd.f32 %v1536_v62, %v1347_v56 }
 0x7ee   : > { %v1576_v2 = vmul.f32 0.044715, %v1572_v59  ;;  %v1577_v3 = vmul.f32 0.044715, %v1573_v60 }
 0x7ef   : > { %v1566_v4 = vmul.f32 %v1524_v63, %v1524_v63  ;;  %v1567_v5 = vmul.f32 %v1537_v0, %v1537_v0  ;;  %v1551_v6 = vpop.f32.mrf.mxu0  ;;  %v1564_v7 = vpop.f32.mrf.mxu1 }
 0x7f0   : > { %v1580_v8 = vadd.f32 %v1576_v2, %v1550_v54  ;;  %v1581_v9 = vadd.f32 %v1577_v3, %v1563_v53 }
 0x7f1   : > { %v1570_v10 = vmul.f32 %v1566_v4, %v1524_v63  ;;  %v1571_v11 = vmul.f32 %v1567_v5, %v1537_v0 }
 0x7f2   : > { %v1584_v12 = vmul.f32 0.7978846, %v1580_v8  ;;  %v1585_v13 = vmul.f32 0.7978846, %v1581_v9 }
 0x7f3   : > { %v1574_v14 = vmul.f32 0.044715, %v1570_v10  ;;  %v1575_v15 = vmul.f32 0.044715, %v1571_v11 }
 0x7f4   : > { %2735 = vtanh.f32 %v1584_v12  ;;  %v1525_v16 = vpop.f32.mrf.mxu2  ;;  %v1538_v18 = vpop.f32.mrf.mxu3 }
 0x7f5   : > { %2737 = vtanh.f32 %v1585_v13  ;;  %v1578_v19 = vadd.f32 %v1574_v14, %v1524_v63  ;;  %v1579_v38 = vadd.f32 %v1575_v15, %v1537_v0 }
 0x7f7   : > { %v1582_v21 = vmul.f32 0.7978846, %v1578_v19  ;;  %v1583_v22 = vmul.f32 0.7978846, %v1579_v38 }
 0x7f9   : > { %2739 = vtanh.f32 %v1582_v21 }
 0x7fa   : > { %v2736_v24 = vpop.eup %2735  ;;  %2741 = vtanh.f32 %v1583_v22 }
 0x7fb   : > { %v2738_v25 = vpop.eup %2737  ;;  %v1592_v26 = vadd.f32 1.0, %v2736_v24 }
 0x7fc   : > { %v1593_v27 = vadd.f32 1.0, %v2738_v25 }
 0x7fd   : > { %v1596_v28 = vmul.f32 0.5, %v1592_v26 }
 0x7fe   : > { %v1597_v29 = vmul.f32 0.5, %v1593_v27 }
 0x7ff   : > { %v2740_v30 = vpop.eup %2739  ;;  %v1600_v31 = vmul.f32 %v1596_v28, %v1550_v54 }
 0x800   : > { %v2742_v32 = vpop.eup %2741  ;;  %v1601_v33 = vmul.f32 %v1597_v29, %v1563_v53  ;;  %v1590_v34 = vadd.f32 1.0, %v2740_v30 }
 0x801   : > { %v1604_v1 = vpack.c.bf16 %v1600_v31, %v1600_v31  ;;  %v1591_v35 = vadd.f32 1.0, %v2742_v32 }
 0x802   : > { %v1605_v36 = vpack.c.bf16 %v1601_v33, %v1601_v33  ;;  %v1594_v37 = vmul.f32 0.5, %v1590_v34 }
 0x803   : > { %1896 = vmatmul.bf16.vlgmr.msra.gmra.mxu0 %v1604_v1  ;;  %v1595_v39 = vmul.f32 0.5, %v1591_v35 }
 0x804   : > { %1909 = vmatmul.bf16.vlgmr.msrb.gmra.mxu1 %v1605_v36  ;;  %v1598_v40 = vmul.f32 %v1594_v37, %v1524_v63 }
 0x805   : > { %v1599_v41 = vmul.f32 %v1595_v39, %v1537_v0 }
 0x806   : > { %v1602_v42 = vpack.c.bf16 %v1598_v40, %v1598_v40 }
 0x807   : > { %v1603_v43 = vpack.c.bf16 %v1599_v41, %v1599_v41 }
 0x808   : > { %1870 = vmatmul.bf16.vlgmr.msra.gmra.mxu2 %v1602_v42 }
 0x809   : > { %1883 = vmatmul.bf16.vlgmr.msrb.gmra.mxu3 %v1603_v43 }
 0x880   : > { %v1897_v44 = vpop.f32.mrf.mxu0 }
 0x881   : > { %v1910_v45 = vpop.f32.mrf.mxu1 }
 0x888   : > { %v1899_v46 = vpop.f32.mrf.mxu0 }
 0x889   : > { %v1912_v20 = vpop.f32.mrf.mxu1 }
 0x88b   : > { %v1871_v47 = vpop.f32.mrf.mxu2 }
 0x88c   : > { %v1884_v48 = vpop.f32.mrf.mxu3 }
 0x88d   : > { %v1885_v49 = vadd.f32 %v1884_v48, %v1871_v47 }
 0x88f   : > { %v1898_v50 = vadd.f32 %v1897_v44, %v1885_v49 }
 0x891   : > { %v1911_v51 = vadd.f32 %v1910_v45, %v1898_v50  ;;  %1923 = sbr.rel (%p2558_p8) target bundleno = 2200 (0x898), region = 88 }
 0x893   : > { %v1914_v54 = vadd.f32 %v1911_v51, %v3109_v23  ;;  %v1873_v53 = vpop.f32.mrf.mxu2 }
 0x894   : > { %v1886_v55 = vpop.f32.mrf.mxu3 }
 0x895   : > { %v1919_v56 = vadd.f32 %v2712_v52, %v1914_v54 }
 0x897   : > { %1924 = vst [vmem:[%s2972_s5] sm:$0xff] %v1919_v56 }
 0x898 PF: > { %s3308_s21 = sld [smem:[#allocation2_spill]] }
 0x89e   : > { %p2559_p9 = scmp.ne.s32.totalorder %s3308_s21, 1 }
 0x89f   : > { %s3309_s26 = sld [smem:[#allocation13_spill]] (!%p2559_p9) }
 0x8a0   : > { %1928 = sbr.rel (%p2559_p9) target bundleno = 2480 (0x9b0), region = 92  ;;  %s3310_s13 = sld [smem:[#allocation14_spill]] (!%p2559_p9) }
 0x8a5   : > { %1931 = vadd.xlane.f32.xlu0 %v1919_v56  ;;  %v2743_v6 = vld [vmem:[%s3309_s26] ss:$0 sm:$0xff] }
 0x918   : > { %v1932_v57 = vpop.xlane.xlu0 %1931 }
 0x919   : > { %v1933_v58 = vmul.f32 %v1932_v57, %v2986_v17 }
 0x91b   : > { %v1934_v59 = vsub.f32 %v1919_v56, %v1933_v58 }
 0x91d   : > { %v1935_v60 = vmul.f32 %v1934_v59, %v1934_v59 }
 0x91f   : > { %1936 = vadd.xlane.f32.xlu0 %v1935_v60 }
 0x992   : > { %v1937_v23 = vpop.xlane.xlu0 %1936 }
 0x993   : > { %v1938_v61 = vmul.f32 %v1937_v23, %v2986_v17  ;;  %v2744_v17 = vld [vmem:[%s3310_s13] ss:$0 sm:$0xff] }
 0x995   : > { %v1939_v62 = vadd.f32 1e-06, %v1938_v61 }
 0x997   : > { %2745 = vrsqrt.f32 %v1939_v62  ;;  %vm1946_vm13 = vweird.f32 %v1939_v62 }
 0x99d   : > { %v2746_v63 = vpop.eup %2745 }
 0x99e   : > { %v1941_v0 = vmul.f32 %v2746_v63, %v1939_v62  ;;  %vm1947_vm12 = vweird.f32 %v2746_v63 }
 0x99f   : > { %vm1948_vm14 = vmor %vm1946_vm13, %vm1947_vm12 }
 0x9a0   : > { %v1942_v2 = vmul.f32 %v2746_v63, %v1941_v0 }
 0x9a2   : > { %v1943_v3 = vmul.f32 0.5, %v1942_v2 }
 0x9a4   : > { %v1944_v4 = vsub.f32 1.5, %v1943_v3 }
 0x9a6   : > { %v1945_v5 = vmul.f32 %v2746_v63, %v1944_v4 }
 0x9a8   : > { %v1949_v7 = vsel %vm1948_vm14, %v2746_v63, %v1945_v5 }
 0x9a9   : > { %v1950_v8 = vmul.f32 %v1949_v7, %v1934_v59 }
 0x9ab   : > { %v1954_v9 = vmul.f32 %v2743_v6, %v1950_v8 }
 0x9ad   : > { %v1958_v10 = vadd.f32 %v2744_v17, %v1954_v9 }
 0x9af   : > { %1959 = vst [vmem:[%s2972_s5] sm:$0xff] %v1958_v10 }
 0x9b0 PF: > { %s3311_s15 = sld [smem:[#allocation5_spill]] }
 0x9b1   : > { %s3312_s18 = sld [smem:[#allocation3_spill]] }
 0x9b2   : > { %s3313_s19 = sld [smem:[#allocation4_spill]] }
 0x9b3   : > { %s3314_s20 = sld [smem:[#allocation6_spill]] }
 0x9b4   : > { %s3315_s21 = sld [smem:[#allocation7_spill]] }
 0x9b6   : > { %s25_s22 = sadd.s32 1, %s3311_s15  }
 0x9b7   : > { %p22_p10 = scmp.ge.s32.totalorder %s25_s22, 6  }
 0x9b9   :  { %24 = sbr.rel (!%p22_p10) target bundleno = 9 (0x9), region = 158 }

// kernel: vjepa_feature_extractor.7
= control target key start
LH: loop header
LB: loop body
LE: loop exit
PB: predicated region body
PF: predicated region fallthrough
CT: control target
= control target key end

     0   :  { %8 = vsyncpa [#allocation3], 0  ;;  %s1260_s0 = inlined_call_operand.vmem [shape: f32[8,2,2,128], index: 0, kind: input, shape index: {}]   ;;  %s1261_s1 = inlined_call_operand.vmem [shape: f32[32,2], index: 1, kind: input, shape index: {}, may-alias: {1,2}]   ;;  %s1262_s2 = inlined_call_operand.vmem [shape: f32[32,2], index: 2, kind: input, shape index: {}, may-alias: {1,2}]   ;;  %s1263_s3 = inlined_call_operand.hbm [shape: f32[8,32,32,128], index: 3, kind: output, shape index: {}]  }
   0x1   :  { %10 = vsyncpa [#allocation3 + $0x1], 0  ;;  %s1014_s12 = smov 0   ;;  %s1016_s13 = smov 0  }
   0x2   :  { %s1018_s14 = smov 0   ;;  %s1020_s15 = smov 0  }
   0x3   :  { %s1022_s16 = smov 0   ;;  %s1024_s17 = smov 0  }
   0x4   :  { %s1026_s18 = smov 0   ;;  %s1028_s19 = smov 0  }
   0x5 LB: > { %s703_s20 = sadd.s32 4294967295, %s989_s19   ;;  %s704_s21 = sadd.s32 4294967294, %s989_s19   ;;  %s989_s19 = sphi %s1028_s19, %s16_s19   ;;  %s985_s18 = sphi %s1026_s18, %s1272_s18   ;;  %s981_s17 = sphi %s1024_s17, %s1271_s17   ;;  %s977_s16 = sphi %s1022_s16, %s1270_s16   ;;  %s973_s15 = sphi %s1020_s15, %s1269_s15   ;;  %s969_s14 = sphi %s1018_s14, %s1268_s14   ;;  %s965_s13 = sphi %s1016_s13, %s1267_s13   ;;  %s961_s12 = sphi %s1014_s12, %s1266_s12  }
   0x6   : > { %s25_s22 = sadd.s32 1, %s981_s17  ;;  %s28_s23 = sadd.s32 1, %s985_s18 }
   0x7   : > { %p26_p0 = scmp.ge.s32.totalorder %s25_s22, 4  ;;  %p120_p1 = scmp.ne.s32.totalorder %s969_s14, %s965_s13 }
   0x8   : > { %p121_p2 = scmp.eq.s32.totalorder %s703_s20, 31  ;;  %p126_p5 = scmp.ne.s32.totalorder %s965_s13, %s961_s12 }
   0x9   : > { %s1274_s22 = smov (%p26_p0, %s25_s22), 0  ;;  %s1276_s23 = smov (!%p26_p0, %s28_s23), %s985_s18 }
   0xa   : > { %s106_s24 = ssub.s32 %s981_s17, %s1274_s22  ;;  %p1065_p3 = por %p121_p2, %p120_p1 }
   0xb   : > { %p30_p4 = scmp.ge.s32.totalorder %s1276_s23, 8  ;;  %p127_p6 = scmp.eq.s32.totalorder %s704_s21, 31 }
   0xc   : > { %p707_p7 = scmp.ge.s32.totalorder %s989_s19, 1  ;;  %p163_p9 = scmp.lt.s32.totalorder %s989_s19, 33 }
   0xd   : > { %s1278_s23 = smov (%p30_p4, %s1276_s23), 0  ;;  %p1074_p8 = por %p127_p6, %p126_p5 }
   0xe   : > { %s105_s27 = ssub.s32 %s985_s18, %s1278_s23  ;;  %s110_s28 = sadd.s32 1, %s969_s14 }
   0xf   : > { %s107_s29 = sor.u32 %s106_s24, %s105_s27  ;;  %p164_p10 = pnand %p707_p7, %p163_p9 }
  0x10   : > { %p108_p11 = scmp.eq.s32.totalorder %s107_s29, 0  ;;  %p196_p12 = scmp.lt.s32.totalorder (!%p164_p10), %s973_s15, 3 }
  0x11   : > { %167 = sbr.rel (%p164_p10) target bundleno = 402 (0x192), region = 32  ;;  %s991_s9 = smov (!%p164_p10), 127  }
  0x12   : > { %s1083_s30 = scalar_select %p108_p11, %s969_s14, %s110_s28  }
  0x13   : > { %p191_p13 = scmp.lt.s32.totalorder (!%p164_p10), %s977_s16, 7 }
  0x16   : > { %s197_s4 = scalar_select %p196_p12, %s973_s15, 3  ;;  %vm230_vm0 = vcmask 1041408   ;;  %v1105_v24 = vld [vmem:[%s1262_s2] sm:$0xff]  ;;  %vm217_vm1 = vcmask 15360   ;;  %v204_v39 = vld [vmem:[%s1262_s2 + $0x8] sm:$0xff]  ;;  %v205_v59 = vld [vmem:[%s1262_s2 + $0x10] sm:$0xff] }
  0x17   : > { %s192_s10 = scalar_select %p191_p13, %s977_s16, 7  ;;  %v206_v61 = vld [vmem:[%s1262_s2 + $0x18] sm:$0xff] }
  0x18   : > { %s711_s5 = sshll.u32 %s197_s4, 3 }
  0x19   : > { %s199_s8 = scalar_lea.vmem %s1261_s1, %s711_s5  ;;  %s787_s11 = sshll.u32 %s192_s10, 2 }
  0x1a   : > { %v207_v0 = vld [vmem:[%s199_s8] sm:$0xff]  ;;  %s195_s24 = scalar_lea.vmem %s1260_s0, %s787_s11 }
  0x1b   : > { %211 = vrot.lane.b32.xlu0 %v207_v0, %s991_s9  ;;  %v314_v1 = vrot.slane %v207_v0, 2  ;;  %789 = vpush %v207_v0  ;;  %v408_v2 = vrot.slane %v207_v0, 4  ;;  %v267_v3 = vrot.slane %v207_v0, 1  ;;  %v361_v4 = vrot.slane %v207_v0, 3  ;;  %v1095_v16 = vld [vmem:[%s195_s24] sm:$0x3] }
  0x1c   : > { %v455_v5 = vrot.slane %v207_v0, 5  ;;  %v502_v6 = vrot.slane %v207_v0, 6  ;;  %v549_v7 = vrot.slane %v207_v0, 7  ;;  %v1097_v18 = vld [vmem:[%s195_s24 + $0x2] sm:$0x3]  ;;  %s788_s24 = sshll.u32 %s973_s15, 5 }
  0x1d   : > { %318 = vrot.lane.b32.xlu1 %v314_v1, %s991_s9  ;;  %412 = vrot.lane.b32.xlu2 %v408_v2, %s991_s9 }
  0x23   : > { %271 = vrot.lane.b32.xlu0 %v267_v3, %s991_s9 }
  0x25   : > { %365 = vrot.lane.b32.xlu1 %v361_v4, %s991_s9  ;;  %459 = vrot.lane.b32.xlu2 %v455_v5, %s991_s9 }
  0x2b   : > { %506 = vrot.lane.b32.xlu0 %v502_v6, %s991_s9 }
  0x2d   : > { %553 = vrot.lane.b32.xlu1 %v549_v7, %s991_s9 }
  0x4c   : > { %s790_s27 = spop %789 }
  0x4d   : > { %v209_v17 = vstv %s790_s27 }
  0x4e   : > { %v210_v19 = vmul.f32 %v209_v17, %v1095_v16 }
  0x77   : > { %v413_v10 = vpop.permute.xlu2 %412 }
  0x7f   : > { %v460_v13 = vpop.permute.xlu2 %459 }
  0x8d   : > { %v212_v8 = vpop.permute.xlu0 %211 }
  0x8e   : > { %791 = vpush %v212_v8 }
  0x8f   : > { %v319_v9 = vpop.permute.xlu1 %318  ;;  %793 = vpush %v267_v3 }
  0x95   : > { %v272_v11 = vpop.permute.xlu0 %271 }
  0x96   : > { %795 = vpush %v272_v11 }
  0x97   : > { %797 = vpush %v314_v1  ;;  %v366_v12 = vpop.permute.xlu1 %365 }
  0x98   : > { %799 = vpush %v319_v9 }
  0x99   : > { %801 = vpush %v361_v4 }
  0x9a   : > { %803 = vpush %v366_v12 }
  0x9b   : > { %805 = vpush %v408_v2 }
  0x9c   : > { %807 = vpush %v413_v10 }
  0x9d   : > { %v507_v14 = vpop.permute.xlu0 %506  ;;  %809 = vpush %v455_v5 }
  0x9e   : > { %811 = vpush %v460_v13 }
  0x9f   : > { %v554_v15 = vpop.permute.xlu1 %553  ;;  %813 = vpush %v502_v6 }
  0xa0   : > { %815 = vpush %v507_v14 }
  0xa1   : > { %817 = vpush %v549_v7 }
  0xa2   : > { %819 = vpush %v554_v15 }
  0xbf   : > { %s792_s28 = spop %791 }
  0xc0   : > { %v214_v20 = vstv %s792_s28  ;;  %s794_s29 = spop %793 }
  0xc1   : > { %v215_v21 = vmul.f32 %v214_v20, %v1097_v18  ;;  %v269_v23 = vstv %s794_s29 }
  0xc2   : > { %v270_v25 = vmul.f32 %v269_v23, %v1095_v16 }
  0xc3   : > { %v216_v22 = vadd.f32 %v215_v21, %v210_v19 }
  0xc5   : > { %712 = vmatpush.msk.msra.mxu0 %vm230_vm0, %v216_v22 }
  0xc6   : > { %713 = vmatmul.msk.f32.vlgmr.msra.gmra.mxu0 %vm217_vm1, %v1105_v24 }
  0xc7   : > { %s796_s6 = spop %795 }
  0xc8   : > { %v274_v26 = vstv %s796_s6  ;;  %s798_s7 = spop %797 }
  0xc9   : > { %v275_v27 = vmul.f32 %v274_v26, %v1097_v18  ;;  %v316_v28 = vstv %s798_s7  ;;  %s800_s8 = spop %799 }
  0xca   : > { %v317_v29 = vmul.f32 %v316_v28, %v1095_v16  ;;  %v321_v30 = vstv %s800_s8  ;;  %s802_s9 = spop %801 }
  0xcb   : > { %v322_v31 = vmul.f32 %v321_v30, %v1097_v18  ;;  %v363_v32 = vstv %s802_s9  ;;  %s804_s10 = spop %803  ;;  %v276_v33 = vadd.f32 %v275_v27, %v270_v25 }
  0xcc   : > { %v364_v34 = vmul.f32 %v363_v32, %v1095_v16  ;;  %v368_v35 = vstv %s804_s10  ;;  %s806_s11 = spop %805 }
  0xcd   : > { %v369_v36 = vmul.f32 %v368_v35, %v1097_v18  ;;  %v410_v37 = vstv %s806_s11  ;;  %s808_s20 = spop %807  ;;  %v323_v38 = vadd.f32 %v322_v31, %v317_v29  ;;  %717 = vmatpush.msk.msra.mxu1 %vm230_vm0, %v276_v33  ;;  %s188_s11 = sand.u32 1, %s965_s13  }
  0xce   : > { %v411_v40 = vmul.f32 %v410_v37, %v1095_v16  ;;  %v415_v41 = vstv %s808_s20  ;;  %s810_s27 = spop %809  ;;  %718 = vmatmul.msk.f32.vlgmr.msra.gmra.mxu1 %vm217_vm1, %v1105_v24  ;;  %714 = vmatmul.msk.f32.gmra.mxu0 %vm217_vm1, %v204_v39  ;;  %s708_s20 = sshll.u32 %s188_s11, 8 }
  0xcf   : > { %v416_v42 = vmul.f32 %v415_v41, %v1097_v18  ;;  %726 = vmatpush.msk.msra.mxu2 %vm230_vm0, %v323_v38  ;;  %v370_v43 = vadd.f32 %v369_v36, %v364_v34  ;;  %v457_v44 = vstv %s810_s27  ;;  %s812_s28 = spop %811  ;;  %s1180_s21 = scalar_lea.vmem [#allocation2], %s708_s20 }
  0xd0   : > { %v458_v45 = vmul.f32 %v457_v44, %v1095_v16  ;;  %v462_v46 = vstv %s812_s28  ;;  %s814_s29 = spop %813  ;;  %727 = vmatmul.msk.f32.vlgmr.msra.gmra.mxu2 %vm217_vm1, %v1105_v24  ;;  %s783_s27 = sshll.u32 %s977_s16, 7 }
  0xd1   : > { %v417_v47 = vadd.f32 %v416_v42, %v411_v40  ;;  %735 = vmatpush.msk.msra.mxu3 %vm230_vm0, %v370_v43  ;;  %v463_v48 = vmul.f32 %v462_v46, %v1097_v18  ;;  %v504_v49 = vstv %s814_s29  ;;  %s816_s4 = spop %815  ;;  %s609_s28 = sadd.s32 %s788_s24, %s783_s27 }
  0xd2   : > { %v505_v50 = vmul.f32 %v504_v49, %v1095_v16  ;;  %v509_v51 = vstv %s816_s4  ;;  %s818_s5 = spop %817  ;;  %736 = vmatmul.msk.f32.vlgmr.msra.gmra.mxu3 %vm217_vm1, %v1105_v24  ;;  %s784_s29 = sshll.u32 %s609_s28, 3 }
  0xd3   : > { %744 = vmatpush.msk.msrb.mxu0 %vm230_vm0, %v417_v47  ;;  %v464_v52 = vadd.f32 %v463_v48, %v458_v45  ;;  %v510_v53 = vmul.f32 %v509_v51, %v1097_v18  ;;  %v551_v54 = vstv %s818_s5  ;;  %s820_s6 = spop %819  ;;  %s611_s15 = scalar_lea.hbm %s1263_s3, %s784_s29 }
  0xd4   : > { %v552_v55 = vmul.f32 %v551_v54, %v1095_v16  ;;  %v556_v56 = vstv %s820_s6  ;;  %s612_s16 = sshll.u32 %s1180_s21, 4  ;;  %s614_s6 = sshll.u32 %s611_s15, 4  ;;  %s613_s16 = int_to_ptr.vmem [resolvable:$true] %s612_s16  ;;  %s615_s6 = int_to_ptr.hbm [resolvable:$true] %s614_s6 }
  0xd5   : > { %v511_v57 = vadd.f32 %v510_v53, %v505_v50  ;;  %v557_v58 = vmul.f32 %v556_v56, %v1097_v18  ;;  %753 = vmatpush.msk.msrb.mxu1 %vm230_vm0, %v464_v52  ;;  %s597_s7 = scalar_lea.sflag [#allocation3], %s188_s11  ;;  %s909_s8 = sshra.s32 %s615_s6, 4  ;;  %s910_s8 = int_to_ptr.hbm [resolvable:$true] %s909_s8 }
  0xd6   : > { %719 = vmatmul.msk.f32.gmra.mxu1 %vm217_vm1, %v204_v39  ;;  %715 = vmatmul.msk.f32.gmra.mxu0 %vm217_vm1, %v205_v59  ;;  %s911_s9 = scalar_lea.hbm %s910_s8, 256  ;;  %s915_s24 = scalar_lea.hbm %s1263_s3, 8192 }
  0xd7   : > { %v558_v60 = vadd.f32 %v557_v58, %v552_v55  ;;  %762 = vmatpush.msk.msrb.mxu2 %vm230_vm0, %v511_v57  ;;  %p912_p0 = scmp.ne.s32.totalorder %s910_s8, %s911_s9  ;;  %p916_p4 = scmp.lt.s32.totalorder %s910_s8, %s1263_s3 }
  0xd8   : > { %728 = vmatmul.msk.f32.gmra.mxu2 %vm217_vm1, %v204_v39  ;;  %p917_p5 = scmp.lt.s32.totalorder %s915_s24, %s911_s9 }
  0xd9   : > { %771 = vmatpush.msk.msrb.mxu3 %vm230_vm0, %v558_v60  ;;  %p913_p1 = pnand %p912_p0, %p1065_p3 }
  0xda   : > { %737 = vmatmul.msk.f32.gmra.mxu3 %vm217_vm1, %v204_v39  ;;  %p918_p6 = por %p917_p5, %p916_p4 }
  0xdb   : > { %p914_p2 = pneg %p913_p1 }
  0xdd   : > { %p919_p7 = pnand %p918_p6, %p914_p2 }
  0xde   : > { %720 = vmatmul.msk.f32.gmra.mxu1 %vm217_vm1, %v205_v59  ;;  %716 = vmatmul.msk.f32.gmra.mxu0 %vm217_vm1, %v206_v61 }
  0xe0   : > { %729 = vmatmul.msk.f32.gmra.mxu2 %vm217_vm1, %v205_v59 }
  0xe2   : > { %738 = vmatmul.msk.f32.gmra.mxu3 %vm217_vm1, %v205_v59 }
  0xe6   : > { %721 = vmatmul.msk.f32.gmra.mxu1 %vm217_vm1, %v206_v61  ;;  %745 = vmatmul.msk.f32.vlgmr.msrb.gmra.mxu0 %vm217_vm1, %v1105_v24 }
  0xe8   : > { %730 = vmatmul.msk.f32.gmra.mxu2 %vm217_vm1, %v206_v61 }
  0xea   : > { %739 = vmatmul.msk.f32.gmra.mxu3 %vm217_vm1, %v206_v61 }
  0xee   : > { %754 = vmatmul.msk.f32.vlgmr.msrb.gmra.mxu1 %vm217_vm1, %v1105_v24  ;;  %746 = vmatmul.msk.f32.gmra.mxu0 %vm217_vm1, %v204_v39 }
  0xf0   : > { %763 = vmatmul.msk.f32.vlgmr.msrb.gmra.mxu2 %vm217_vm1, %v1105_v24 }
  0xf2   : > { %772 = vmatmul.msk.f32.vlgmr.msrb.gmra.mxu3 %vm217_vm1, %v1105_v24 }
  0xf6   : > { %755 = vmatmul.msk.f32.gmra.mxu1 %vm217_vm1, %v204_v39  ;;  %747 = vmatmul.msk.f32.gmra.mxu0 %vm217_vm1, %v205_v59 }
  0xf8   : > { %764 = vmatmul.msk.f32.gmra.mxu2 %vm217_vm1, %v204_v39 }
  0xfa   : > { %773 = vmatmul.msk.f32.gmra.mxu3 %vm217_vm1, %v204_v39 }
  0xfe   : > { %756 = vmatmul.msk.f32.gmra.mxu1 %vm217_vm1, %v205_v59  ;;  %748 = vmatmul.msk.f32.gmra.mxu0 %vm217_vm1, %v206_v61 }
 0x100   : > { %765 = vmatmul.msk.f32.gmra.mxu2 %vm217_vm1, %v205_v59 }
 0x102   : > { %774 = vmatmul.msk.f32.gmra.mxu3 %vm217_vm1, %v205_v59 }
 0x106   : > { %757 = vmatmul.msk.f32.gmra.mxu1 %vm217_vm1, %v206_v61 }
 0x108   : > { %766 = vmatmul.msk.f32.gmra.mxu2 %vm217_vm1, %v206_v61 }
 0x10a   : > { %775 = vmatmul.msk.f32.gmra.mxu3 %vm217_vm1, %v206_v61 }
 0x143   : > { %v251_v62 = vpop.f32.mrf.mxu0 }
 0x144   : > { %263 = vst [vmem:[%s1180_s21] sm:$0xff] %v251_v62 }
 0x14b   : > { %v297_v63 = vpop.f32.mrf.mxu1  ;;  %v254_v0 = vpop.f32.mrf.mxu0 }
 0x14c   : > { %722 = vst [vmem:[%s1180_s21 + $0x20] sm:$0xff] %v297_v63 }
 0x14d   : > { %264 = vst [vmem:[%s1180_s21 + $0x8] sm:$0xff] %v254_v0 }
 0x153   : > { %v344_v1 = vpop.f32.mrf.mxu2  ;;  %v300_v2 = vpop.f32.mrf.mxu1 }
 0x154   : > { %731 = vst [vmem:[%s1180_s21 + $0x40] sm:$0xff] %v344_v1  ;;  %v257_v3 = vpop.f32.mrf.mxu0 }
 0x155   : > { %v391_v4 = vpop.f32.mrf.mxu3  ;;  %723 = vst [vmem:[%s1180_s21 + $0x28] sm:$0xff] %v300_v2 }
 0x156   : > { %740 = vst [vmem:[%s1180_s21 + $0x60] sm:$0xff] %v391_v4 }
 0x157   : > { %265 = vst [vmem:[%s1180_s21 + $0x10] sm:$0xff] %v257_v3 }
 0x15b   : > { %v347_v5 = vpop.f32.mrf.mxu2  ;;  %v303_v6 = vpop.f32.mrf.mxu1 }
 0x15c   : > { %732 = vst [vmem:[%s1180_s21 + $0x48] sm:$0xff] %v347_v5  ;;  %v260_v7 = vpop.f32.mrf.mxu0 }
 0x15d   : > { %v394_v8 = vpop.f32.mrf.mxu3  ;;  %724 = vst [vmem:[%s1180_s21 + $0x30] sm:$0xff] %v303_v6 }
 0x15e   : > { %741 = vst [vmem:[%s1180_s21 + $0x68] sm:$0xff] %v394_v8 }
 0x15f   : > { %266 = vst [vmem:[%s1180_s21 + $0x18] sm:$0xff] %v260_v7 }
 0x163   : > { %v350_v9 = vpop.f32.mrf.mxu2  ;;  %v306_v10 = vpop.f32.mrf.mxu1 }
 0x164   : > { %733 = vst [vmem:[%s1180_s21 + $0x50] sm:$0xff] %v350_v9  ;;  %v438_v11 = vpop.f32.mrf.mxu0 }
 0x165   : > { %v397_v12 = vpop.f32.mrf.mxu3  ;;  %725 = vst [vmem:[%s1180_s21 + $0x38] sm:$0xff] %v306_v10 }
 0x166   : > { %742 = vst [vmem:[%s1180_s21 + $0x70] sm:$0xff] %v397_v12 }
 0x167   : > { %749 = vst [vmem:[%s1180_s21 + $0x80] sm:$0xff] %v438_v11 }
 0x16b   : > { %v353_v13 = vpop.f32.mrf.mxu2  ;;  %v485_v14 = vpop.f32.mrf.mxu1 }
 0x16c   : > { %734 = vst [vmem:[%s1180_s21 + $0x58] sm:$0xff] %v353_v13  ;;  %v441_v15 = vpop.f32.mrf.mxu0 }
 0x16d   : > { %v400_v16 = vpop.f32.mrf.mxu3  ;;  %758 = vst [vmem:[%s1180_s21 + $0xa0] sm:$0xff] %v485_v14 }
 0x16e   : > { %743 = vst [vmem:[%s1180_s21 + $0x78] sm:$0xff] %v400_v16 }
 0x16f   : > { %750 = vst [vmem:[%s1180_s21 + $0x88] sm:$0xff] %v441_v15 }
 0x173   : > { %v532_v17 = vpop.f32.mrf.mxu2  ;;  %v488_v18 = vpop.f32.mrf.mxu1 }
 0x174   : > { %767 = vst [vmem:[%s1180_s21 + $0xc0] sm:$0xff] %v532_v17  ;;  %v444_v19 = vpop.f32.mrf.mxu0 }
 0x175   : > { %v579_v20 = vpop.f32.mrf.mxu3  ;;  %759 = vst [vmem:[%s1180_s21 + $0xa8] sm:$0xff] %v488_v18 }
 0x176   : > { %776 = vst [vmem:[%s1180_s21 + $0xe0] sm:$0xff] %v579_v20 }
 0x177   : > { %751 = vst [vmem:[%s1180_s21 + $0x90] sm:$0xff] %v444_v19 }
 0x17b   : > { %v535_v21 = vpop.f32.mrf.mxu2  ;;  %v491_v22 = vpop.f32.mrf.mxu1 }
 0x17c   : > { %768 = vst [vmem:[%s1180_s21 + $0xc8] sm:$0xff] %v535_v21  ;;  %v447_v23 = vpop.f32.mrf.mxu0 }
 0x17d   : > { %v582_v24 = vpop.f32.mrf.mxu3  ;;  %760 = vst [vmem:[%s1180_s21 + $0xb0] sm:$0xff] %v491_v22 }
 0x17e   : > { %777 = vst [vmem:[%s1180_s21 + $0xe8] sm:$0xff] %v582_v24 }
 0x17f   : > { %752 = vst [vmem:[%s1180_s21 + $0x98] sm:$0xff] %v447_v23 }
 0x183   : > { %v538_v25 = vpop.f32.mrf.mxu2  ;;  %v494_v26 = vpop.f32.mrf.mxu1 }
 0x184   : > { %769 = vst [vmem:[%s1180_s21 + $0xd0] sm:$0xff] %v538_v25 }
 0x185   : > { %v585_v27 = vpop.f32.mrf.mxu3  ;;  %761 = vst [vmem:[%s1180_s21 + $0xb8] sm:$0xff] %v494_v26 }
 0x186   : > { %778 = vst [vmem:[%s1180_s21 + $0xf0] sm:$0xff] %v585_v27 }
 0x18b   : > { %v541_v28 = vpop.f32.mrf.mxu2 }
 0x18c   : > { %770 = vst [vmem:[%s1180_s21 + $0xd8] sm:$0xff] %v541_v28 }
 0x18d   : > { %v588_v29 = vpop.f32.mrf.mxu3 }
 0x18e   : > { %779 = vst [vmem:[%s1180_s21 + $0xf8] sm:$0xff] %v588_v29 }
 0x18f   : > { %922 = shalt.err (!%p919_p7)
}
 0x190   : > { %s992_s11 = smov 128   ;;  %s993_s21 = smov 8  }
 0x191   : > { %821 = dma.vmem_to_hbm [thread:$0]  (%p1065_p3), %s613_s16, 4096, %s615_s6, %s597_s7, %s992_s11, %s992_s11, %s993_s21  }
 0x192 PF: > { %p827_p9 = scmp.ge.s32.totalorder %s989_s19, 2  ;;  %s629_s29 = sand.u32 1, %s961_s12  }
 0x193   : > { %s630_s4 = scalar_lea.sflag [#allocation3], %s629_s29 }
 0x194   : > { %p824_p10 = pnand %p827_p9, %p1074_p8 }
 0x196   : > { %p825_p11 = pneg %p824_p10 }
 0x198   : > { %956 = dma.done.wait (%p825_p11), %s630_s4, 4096  }
 0x199   : > { %958 = vsyncadd (%p825_p11), %s630_s4, 4294963200  ;;  %s16_s19 = sadd.s32 1, %s989_s19   ;;  %s1266_s12 = smov %s965_s13 }
 0x19a   : > { %p13_p12 = scmp.ge.s32.totalorder %s16_s19, 34   ;;  %s1267_s13 = smov %s969_s14 }
 0x19b   : > { %s1268_s14 = smov %s1083_s30  ;;  %s1269_s15 = smov %s981_s17 }
 0x19c   : > { %s1270_s16 = smov %s985_s18  ;;  %s1271_s17 = smov %s1274_s22 }
 0x19d   : > { %s1272_s18 = smov %s1278_s23  ;;  %15 = sbr.rel (!%p13_p12) target bundleno = 5 (0x5), region = 77 }
 0x1a2   :  { %636 = vsyncpa [#allocation3], 1 }
 0x1a3   :  { %638 = vsyncpa [#allocation3 + $0x1], 1 }

</bundles_post_ra>
